<compile_context>
chip_gen: v7x
topology: tpu7x:2x2x1
jax: 0.10.0
libtpu: 0.0.40
codegen_flags: <defaults>
</compile_context>

<pallas_src>
import functools

import jax
import jax.numpy as jnp
import numpy as np
from jax.experimental import pallas as pl
from jax.experimental.pallas import tpu as pltpu

# ----------------------------- config (small, synthetic) -----------------------------
BATCH = 2
IMG = 64                 # img_size
NUM_CLASSES = 5
FEAT_LEN = 68            # feature_vec_length (handcrafted features)
HIDDEN = 256             # scaled-down stand-in for AlexNet's 4096-wide classifier
LANE = 128               # lane width: all kernel outputs padded to a multiple of this

# (out_channels, kernel, stride, pad) -- AlexNet conv stack pattern, channels scaled down
CONV_CFG = [
    (16, 11, 4, 2),
    (32, 5, 1, 2),
    (48, 3, 1, 1),
    (32, 3, 1, 1),
    (32, 3, 1, 1),
]
POOL_AFTER = {0, 1, 4}   # MaxPool2d(3, stride=2) after conv1, conv2, conv5

VMEM_LIMIT = 32 * 1024 * 1024


def _round_up(x, m):
    return ((x + m - 1) // m) * m


def _final_spatial(img):
    h = img
    for idx, (_, k, s, p) in enumerate(CONV_CFG):
        h = (h + 2 * p - k) // s + 1
        if idx in POOL_AFTER:
            h = (h - 3) // 2 + 1
    return h


FINAL_SPATIAL = _final_spatial(IMG)
FLAT_DIM = CONV_CFG[-1][0] * FINAL_SPATIAL * FINAL_SPATIAL          # logical (NCHW) flatten dim
FLAT_DIM_PAD = LANE * FINAL_SPATIAL * FINAL_SPATIAL                 # padded (NHWC) flatten dim


def _pick_tk(K, cap=2048):
    """Largest K-tile <= cap that divides K and is a multiple of 128 (else K itself)."""
    if K <= cap:
        return K
    for cand in range(cap, 0, -128):
        if K % cand == 0:
            return cand
    return K


# --------------------------------- Pallas kernels ------------------------------------
def _gemm_bias_act_kernel(x_ref, w_ref, b_ref, o_ref, acc_ref, *, relu):
    """(tm, tk) x (tk, N) K-accumulating GEMM with fused f32 bias (+ReLU) epilogue."""
    @pl.when(pl.program_id(1) == 0)
    def _():
        acc_ref[...] = jnp.zeros_like(acc_ref)

    acc_ref[...] += jnp.dot(x_ref[...], w_ref[...], preferred_element_type=jnp.float32)

    @pl.when(pl.program_id(1) == pl.num_programs(1) - 1)
    def _():
        y = acc_ref[...] + b_ref[...]
        if relu:
            y = jnp.maximum(y, 0.0)
        o_ref[...] = y.astype(o_ref.dtype)


def matmul_bias_act(x, w, b, *, relu=True, out_dtype=jnp.bfloat16):
    """y = act(x @ w + b). x: (M, K) bf16, w: (K, N) bf16 (N % 128 == 0), b: (1, N) f32."""
    M, K = x.shape
    K2, N = w.shape
    assert K == K2 and N % LANE == 0
    tm = min(256, _round_up(M, 8))
    tk = _pick_tk(K)
    nk = K // tk
    grid = (pl.cdiv(M, tm), nk)
    bytes_accessed = int(M * K * x.dtype.itemsize + K * N * w.dtype.itemsize
                         + M * N * jnp.dtype(out_dtype).itemsize + N * 4)
    return pl.pallas_call(
        functools.partial(_gemm_bias_act_kernel, relu=relu),
        out_shape=jax.ShapeDtypeStruct((M, N), out_dtype),
        grid=grid,
        in_specs=[
            pl.BlockSpec((tm, tk), lambda i, k: (i, k)),
            pl.BlockSpec((tk, N), lambda i, k: (k, 0)),
            pl.BlockSpec((1, N), lambda i, k: (0, 0)),
        ],
        out_specs=pl.BlockSpec((tm, N), lambda i, k: (i, 0)),
        scratch_shapes=[pltpu.VMEM((tm, N), jnp.float32)],
        compiler_params=pltpu.CompilerParams(
            dimension_semantics=("parallel", "arbitrary"),
            vmem_limit_bytes=VMEM_LIMIT,
        ),
        cost_estimate=pl.CostEstimate(
            flops=2 * M * K * N, transcendentals=0, bytes_accessed=bytes_accessed),
    )(x, w, b)


def conv2d_bias_relu(x, w_packed, b_packed, *, kh, kw, stride, pad):
    """Conv2d + bias + ReLU.  x: NHWC bf16 (C padded), w_packed: (kh*kw*C, 128) bf16.

    Patch extraction (im2col) is XLA glue in bf16; the GEMM + bias + ReLU run in Pallas.
    """
    # TODO(synk): im2col still materialises kh*kw-expanded patches in HBM; full fusion of the
    # patch extraction into the GEMM kernel needs strided in-kernel loads.
    if pad:
        x = jnp.pad(x, ((0, 0), (pad, pad), (pad, pad), (0, 0)))
    N, H, W, C = x.shape
    OH = (H - kh) // stride + 1
    OW = (W - kw) // stride + 1
    cols = []
    for i in range(kh):
        for j in range(kw):
            cols.append(
                jax.lax.slice(
                    x,
                    (0, i, j, 0),
                    (N, i + stride * (OH - 1) + 1, j + stride * (OW - 1) + 1, C),
                    (1, stride, stride, 1),
                )
            )
    patches = jnp.concatenate(cols, axis=-1).reshape(N * OH * OW, kh * kw * C)
    y = matmul_bias_act(patches, w_packed, b_packed, relu=True, out_dtype=jnp.bfloat16)
    return y.reshape(N, OH, OW, LANE)


def _maxpool_kernel(xe_ref, xo_ref, o_ref, *, OH, OW):
    # xe_ref: (1, H, OW+1, C) even columns; xo_ref: (1, H, OW, C) odd columns; C = 128.
    xe = xe_ref[0]
    xo = xo_ref[0]
    # max over the 3 columns {2k, 2k+1, 2k+2} for each output column k.
    colmax = jnp.maximum(jnp.maximum(xe[:, :OW, :], xo), xe[:, 1:OW + 1, :])
    for oh in range(OH):                     # OH <= 7: small static unrolled loop
        o_ref[0, oh] = jnp.max(colmax[2 * oh:2 * oh + 3], axis=0)


def maxpool3x3s2(x):
    """MaxPool2d(kernel=3, stride=2, padding=0) on an NHWC (C=128, lane-dense) tensor."""
    N, H, W, C = x.shape
    OH = (H - 3) // 2 + 1
    OW = (W - 3) // 2 + 1
    # Cheap even/odd column split outside (1x the activation, not 9x).
    xe = jax.lax.slice(x, (0, 0, 0, 0), (N, H, 2 * OW + 1, C), (1, 1, 2, 1))
    xo = jax.lax.slice(x, (0, 0, 1, 0), (N, H, 2 * OW, C), (1, 1, 2, 1))
    return pl.pallas_call(
        functools.partial(_maxpool_kernel, OH=OH, OW=OW),
        out_shape=jax.ShapeDtypeStruct((N, OH, OW, C), x.dtype),
        grid=(N,),
        in_specs=[
            pl.BlockSpec((1, H, OW + 1, C), lambda n: (n, 0, 0, 0)),
            pl.BlockSpec((1, H, OW, C), lambda n: (n, 0, 0, 0)),
        ],
        out_specs=pl.BlockSpec((1, OH, OW, C), lambda n: (n, 0, 0, 0)),
        compiler_params=pltpu.CompilerParams(
            dimension_semantics=("parallel",),
            vmem_limit_bytes=VMEM_LIMIT,
        ),
    )(xe, xo)


def _tail_kernel(h_ref, f_ref, w1_ref, b1_ref, w2_ref, b2_ref, wh_ref, wf_ref, bf_ref, o_ref):
    """Fused classifier tail: fc1+ReLU -> fc2+ReLU -> fc_final (concat folded into 2 dots)."""
    # TODO(synk): Dropout layers are treated as identity (eval mode).
    f32 = jnp.float32
    h1 = jnp.dot(h_ref[...], w1_ref[...], preferred_element_type=f32) + b1_ref[...]
    h1 = jnp.maximum(h1, 0.0).astype(jnp.bfloat16)
    h2 = jnp.dot(h1, w2_ref[...], preferred_element_type=f32) + b2_ref[...]
    h2 = jnp.maximum(h2, 0.0).astype(jnp.bfloat16)
    out = (jnp.dot(h2, wh_ref[...], preferred_element_type=f32)
           + jnp.dot(f_ref[...], wf_ref[...], preferred_element_type=f32)
           + bf_ref[...])
    o_ref[...] = out.astype(o_ref.dtype)


def classifier_tail(h, f, kp):
    mb, kh = h.shape
    kf = f.shape[1]
    flops = 2 * mb * (kh * HIDDEN + HIDDEN * HIDDEN + HIDDEN * LANE + kf * LANE)
    weight_bytes = 2 * (kh * HIDDEN + HIDDEN * HIDDEN + HIDDEN * LANE + kf * LANE)
    return pl.pallas_call(
        _tail_kernel,
        out_shape=jax.ShapeDtypeStruct((mb, LANE), jnp.float32),
        grid=(1,),
        in_specs=[
            pl.BlockSpec((mb, kh), lambda i: (0, 0)),
            pl.BlockSpec((mb, kf), lambda i: (0, 0)),
            pl.BlockSpec((kh, HIDDEN), lambda i: (0, 0)),
            pl.BlockSpec((1, HIDDEN), lambda i: (0, 0)),
            pl.BlockSpec((HIDDEN, HIDDEN), lambda i: (0, 0)),
            pl.BlockSpec((1, HIDDEN), lambda i: (0, 0)),
            pl.BlockSpec((HIDDEN, LANE), lambda i: (0, 0)),
            pl.BlockSpec((kf, LANE), lambda i: (0, 0)),
            pl.BlockSpec((1, LANE), lambda i: (0, 0)),
        ],
        out_specs=pl.BlockSpec((mb, LANE), lambda i: (0, 0)),
        compiler_params=pltpu.CompilerParams(
            dimension_semantics=("arbitrary",),
            vmem_limit_bytes=VMEM_LIMIT,
        ),
        cost_estimate=pl.CostEstimate(
            flops=flops, transcendentals=0, bytes_accessed=int(weight_bytes)),
    )(h, f, kp["fc1_w"], kp["fc1_b"], kp["fc2_w"], kp["fc2_b"],
      kp["fcf_wh"], kp["fcf_wf"], kp["fcf_b"])


# ------------------------------------ params ------------------------------------------
def init_params(key):
    """Logical (PyTorch-layout) f32 parameters, used by the reference."""
    keys = jax.random.split(key, 32)
    ki = iter(range(32))

    def w(shape, scale=0.05):
        return jax.random.normal(keys[next(ki)], shape, jnp.float32) * scale

    p = {}
    in_ch = 3
    for idx, (out_ch, k, _, _) in enumerate(CONV_CFG, start=1):
        p[f"conv{idx}_w"] = w((out_ch, in_ch, k, k))
        p[f"conv{idx}_b"] = w((out_ch,))
        in_ch = out_ch
    # classifier (AlexNet classifier with the last Linear removed):
    #   Dropout, Linear(flat, HIDDEN), ReLU, Dropout, Linear(HIDDEN, HIDDEN), ReLU
    p["fc1_w"] = w((FLAT_DIM, HIDDEN))
    p["fc1_b"] = w((HIDDEN,))
    p["fc2_w"] = w((HIDDEN, HIDDEN))
    p["fc2_b"] = w((HIDDEN,))
    # fc_final = Linear(feature_vec_length + base_network_output_dim, num_classes)
    p["fc_final_w"] = w((FEAT_LEN + HIDDEN, NUM_CLASSES))
    p["fc_final_b"] = w((NUM_CLASSES,))
    return p


def pack_params(p):
    """One-time re-layout of parameters into the kernel format (lane-padded, bf16, GEMM-ready)."""
    kp = {}
    cin_true, cin_pad = 3, 3
    for idx, (cout, k, _, _) in enumerate(CONV_CFG, start=1):
        w = p[f"conv{idx}_w"]                         # (cout, cin_true, k, k)
        wp = jnp.zeros((k, k, cin_pad, LANE), jnp.float32)
        wp = wp.at[:, :, :cin_true, :cout].set(jnp.transpose(w, (2, 3, 1, 0)))
        kp[f"conv{idx}_w"] = wp.reshape(k * k * cin_pad, LANE).astype(jnp.bfloat16)
        bp = jnp.zeros((1, LANE), jnp.float32).at[0, :cout].set(p[f"conv{idx}_b"])
        kp[f"conv{idx}_b"] = bp
        cin_true, cin_pad = cout, LANE

    # fc1: permute rows from NCHW-flatten order to NHWC-flatten order with channel padding.
    hf = FINAL_SPATIAL
    ctrue = CONV_CFG[-1][0]
    src = np.arange(FLAT_DIM)
    c = src // (hf * hf)
    rem = src % (hf * hf)
    y = rem // hf
    x = rem % hf
    dst = (y * hf + x) * LANE + c
    w1 = jnp.zeros((FLAT_DIM_PAD, HIDDEN), jnp.float32).at[dst].set(p["fc1_w"])
    kp["fc1_w"] = w1.astype(jnp.bfloat16)
    kp["fc1_b"] = p["fc1_b"].reshape(1, HIDDEN)
    kp["fc2_w"] = p["fc2_w"].astype(jnp.bfloat16)
    kp["fc2_b"] = p["fc2_b"].reshape(1, HIDDEN)

    # fc_final: split into the handcrafted-feature block and the hidden block, pad N=5 -> 128.
    wf = p["fc_final_w"]
    wff = jnp.zeros((FEAT_LEN, LANE), jnp.float32).at[:, :NUM_CLASSES].set(wf[:FEAT_LEN])
    wfh = jnp.zeros((HIDDEN, LANE), jnp.float32).at[:, :NUM_CLASSES].set(wf[FEAT_LEN:])
    kp["fcf_wf"] = wff.astype(jnp.bfloat16)
    kp["fcf_wh"] = wfh.astype(jnp.bfloat16)
    kp["fcf_b"] = jnp.zeros((1, LANE), jnp.float32).at[0, :NUM_CLASSES].set(p["fc_final_b"])
    return kp


# ------------------------------------ forward -----------------------------------------
def forward(kp, images_nchw, features):
    # images: (N, 3, H, W) as in PyTorch; transpose to NHWC once and cast to bf16.
    x = jnp.transpose(images_nchw, (0, 2, 3, 1)).astype(jnp.bfloat16)
    for idx, (_, k, s, p) in enumerate(CONV_CFG, start=1):
        x = conv2d_bias_relu(x, kp[f"conv{idx}_w"], kp[f"conv{idx}_b"],
                             kh=k, kw=k, stride=s, pad=p)
        if (idx - 1) in POOL_AFTER:
            x = maxpool3x3s2(x)
    b = x.shape[0]
    # flatten directly in NHWC(+channel-pad) order; fc1_w rows were permuted to match.
    h = x.reshape(b, -1)
    mb = _round_up(max(b, 8), 8)
    h = jnp.pad(h, ((0, mb - b), (0, 0)))
    f = jnp.pad(features.astype(jnp.bfloat16), ((0, mb - b), (0, 0)))
    out = classifier_tail(h, f, kp)              # (mb, 128) f32, lane-dense
    return out[:b, :NUM_CLASSES]


# -------------------------- pure-JAX reference (for checking) ------------------------
def reference_forward(params, images_nchw, features):
    x = jnp.transpose(images_nchw, (0, 2, 3, 1)).astype(jnp.float32)
    hi = jax.lax.Precision.HIGHEST

    def conv(x, w, b, stride, pad):
        y = jax.lax.conv_general_dilated(
            x, w, window_strides=(stride, stride),
            padding=[(pad, pad), (pad, pad)],
            dimension_numbers=("NHWC", "OIHW", "NHWC"),
            precision=hi,
        )
        return jax.nn.relu(y + b.reshape(1, 1, 1, -1))

    def pool(x):
        return jax.lax.reduce_window(
            x, -jnp.inf, jax.lax.max, (1, 3, 3, 1), (1, 2, 2, 1), "VALID"
        )

    for idx, (_, _, s, p) in enumerate(CONV_CFG):
        x = conv(x, params[f"conv{idx + 1}_w"], params[f"conv{idx + 1}_b"], s, p)
        if idx in POOL_AFTER:
            x = pool(x)
    h = jnp.transpose(x, (0, 3, 1, 2)).reshape(x.shape[0], -1)
    h = jax.nn.relu(jnp.dot(h, params["fc1_w"], precision=hi) + params["fc1_b"])
    h = jax.nn.relu(jnp.dot(h, params["fc2_w"], precision=hi) + params["fc2_b"])
    joint = jnp.concatenate([features, h], axis=1)
    return jnp.dot(joint, params["fc_final_w"], precision=hi) + params["fc_final_b"]


# ------------------------------------- main -------------------------------------------
if __name__ == "__main__":
    key = jax.random.PRNGKey(0)
    k_params, k_img, k_feat = jax.random.split(key, 3)

    params = init_params(k_params)
    kparams = pack_params(params)
    images = jax.random.normal(k_img, (BATCH, 3, IMG, IMG), jnp.float32)
    handcrafted = jax.random.normal(k_feat, (BATCH, FEAT_LEN), jnp.float32)

    out = jax.jit(forward)(kparams, images, handcrafted)
    out = jax.block_until_ready(out)
    assert out.shape == (BATCH, NUM_CLASSES), out.shape

    ref = reference_forward(params, images, handcrafted)
    # bf16 operands with f32 accumulation: tolerance loosened vs a pure-f32 comparison.
    np.testing.assert_allclose(np.asarray(out), np.asarray(ref), rtol=5e-2, atol=3e-2)

    print("KERNEL_OK")
</pallas_src>

<mosaic_0001>
module attributes {stable_mosaic.version = 11 : i64} {
  func.func @_gemm_bias_act_kernel(%arg0: i32, %arg1: i32, %arg2: memref<256x363xbf16, #tpu.memory_space<vmem>>, %arg3: memref<363x128xbf16, #tpu.memory_space<vmem>>, %arg4: memref<1x128xf32, #tpu.memory_space<vmem>>, %arg5: memref<256x128xbf16, #tpu.memory_space<vmem>>, %arg6: memref<256x128xf32, #tpu.memory_space<vmem>>) attributes {dimension_semantics = [#tpu.dimension_semantics<parallel>, #tpu.dimension_semantics<arbitrary>], iteration_bounds = array<i64: 2, 1>, scalar_prefetch = 0 : i64, scratch_operands = 1 : i64, tpu.core_type = #tpu.core_type<tc>, window_params = [{transform_indices = @transform_0, window_bounds = array<i64: 256, 363>}, {transform_indices = @transform_1, window_bounds = array<i64: 363, 128>}, {pipeline_mode = #tpu.pipeline_mode<synchronous>, transform_indices = @transform_2, window_bounds = array<i64: 1, 128>}, {transform_indices = @transform_3, window_bounds = array<i64: 256, 128>}]} {
    %c0_i32 = arith.constant 0 : i32
    %0 = arith.cmpi eq, %arg1, %c0_i32 : i32
    %1 = arith.extui %0 : i1 to i32
    %c0_i32_0 = arith.constant 0 : i32
    %2 = arith.cmpi ne, %1, %c0_i32_0 : i32
    scf.if %2 {
      %cst_10 = arith.constant 0.000000e+00 : f32
      %12 = vector.broadcast %cst_10 : f32 to vector<256x128xf32>
      %c0_11 = arith.constant 0 : index
      %c0_12 = arith.constant 0 : index
      %13 = vector.load %arg6[%c0_11, %c0_12] : memref<256x128xf32, #tpu.memory_space<vmem>>, vector<256x128xf32>
      tpu.vector_store %arg6[%c0_11, %c0_12], %12 {strides = array<i32>} : memref<256x128xf32, #tpu.memory_space<vmem>>, vector<256x128xf32>,
    } else {
    }
    %c0 = arith.constant 0 : index
    %c0_1 = arith.constant 0 : index
    %3 = vector.load %arg6[%c0, %c0_1] : memref<256x128xf32, #tpu.memory_space<vmem>>, vector<256x128xf32>
    %c0_2 = arith.constant 0 : index
    %c0_3 = arith.constant 0 : index
    %4 = vector.load %arg2[%c0_2, %c0_3] : memref<256x363xbf16, #tpu.memory_space<vmem>>, vector<256x363xbf16>
    %c0_4 = arith.constant 0 : index
    %c0_5 = arith.constant 0 : index
    %5 = vector.load %arg3[%c0_4, %c0_5] : memref<363x128xbf16, #tpu.memory_space<vmem>>, vector<363x128xbf16>
    %cst = arith.constant dense<0.000000e+00> : vector<256x128xf32>
    %6 = tpu.matmul %4, %5, %cst {dimension_numbers = #tpu.dot_dimension_numbers<[1], [0], [0], [1], [0, 0, 1, 1], [], []>} : vector<256x363xbf16>, vector<363x128xbf16>, vector<256x128xf32> -> vector<256x128xf32>
    %7 = arith.addf %3, %6 : vector<256x128xf32>
    %c0_6 = arith.constant 0 : index
    %c0_7 = arith.constant 0 : index
    %8 = vector.load %arg6[%c0_6, %c0_7] : memref<256x128xf32, #tpu.memory_space<vmem>>, vector<256x128xf32>
    tpu.vector_store %arg6[%c0_6, %c0_7], %7 {strides = array<i32>} : memref<256x128xf32, #tpu.memory_space<vmem>>, vector<256x128xf32>,
    %c0_i32_8 = arith.constant 0 : i32
    %9 = arith.cmpi eq, %arg1, %c0_i32_8 : i32
    %10 = arith.extui %9 : i1 to i32
    %c0_i32_9 = arith.constant 0 : i32
    %11 = arith.cmpi ne, %10, %c0_i32_9 : i32
    scf.if %11 {
      %c0_10 = arith.constant 0 : index
      %c0_11 = arith.constant 0 : index
      %12 = vector.load %arg6[%c0_10, %c0_11] : memref<256x128xf32, #tpu.memory_space<vmem>>, vector<256x128xf32>
      %c0_12 = arith.constant 0 : index
      %c0_13 = arith.constant 0 : index
      %13 = vector.load %arg4[%c0_12, %c0_13] : memref<1x128xf32, #tpu.memory_space<vmem>>, vector<1x128xf32>
      %14 = vector.broadcast %13 : vector<1x128xf32> to vector<256x128xf32>
      %15 = arith.addf %12, %14 : vector<256x128xf32>
      %cst_14 = arith.constant 0.000000e+00 : f32
      %16 = vector.broadcast %cst_14 : f32 to vector<256x128xf32>
      %17 = arith.maximumf %15, %16 : vector<256x128xf32>
      %18 = arith.truncf %17 : vector<256x128xf32> to vector<256x128xbf16>
      %c0_15 = arith.constant 0 : index
      %c0_16 = arith.constant 0 : index
      %19 = vector.load %arg5[%c0_15, %c0_16] : memref<256x128xbf16, #tpu.memory_space<vmem>>, vector<256x128xbf16>
      tpu.vector_store %arg5[%c0_15, %c0_16], %18 {strides = array<i32>} : memref<256x128xbf16, #tpu.memory_space<vmem>>, vector<256x128xbf16>,
    } else {
    }
    return
  }
  func.func @transform_0(%arg0: i32, %arg1: i32) -> (i32, i32) {
    %c0_i32 = arith.constant 0 : i32
    return %arg0, %arg1 : i32, i32
  }
  func.func @transform_1(%arg0: i32, %arg1: i32) -> (i32, i32) {
    %c0_i32 = arith.constant 0 : i32
    %c0_i32_0 = arith.constant 0 : i32
    return %arg1, %c0_i32 : i32, i32
  }
  func.func @transform_2(%arg0: i32, %arg1: i32) -> (i32, i32) {
    %c0_i32 = arith.constant 0 : i32
    %c0_i32_0 = arith.constant 0 : i32
    %c0_i32_1 = arith.constant 0 : i32
    return %c0_i32, %c0_i32_0 : i32, i32
  }
  func.func @transform_3(%arg0: i32, %arg1: i32) -> (i32, i32) {
    %c0_i32 = arith.constant 0 : i32
    %c0_i32_0 = arith.constant 0 : i32
    return %arg0, %c0_i32 : i32, i32
  }
}

module attributes {stable_mosaic.version = 11 : i64} {
  func.func @_maxpool_kernel(%arg0: i32, %arg1: memref<1x15x8x128xbf16, #tpu.memory_space<vmem>>, %arg2: memref<1x15x7x128xbf16, #tpu.memory_space<vmem>>, %arg3: memref<1x7x7x128xbf16, #tpu.memory_space<vmem>>) attributes {dimension_semantics = [#tpu.dimension_semantics<parallel>], iteration_bounds = array<i64: 2>, scalar_prefetch = 0 : i64, scratch_operands = 0 : i64, tpu.core_type = #tpu.core_type<tc>, window_params = [{transform_indices = @transform_0, window_bounds = array<i64: 1, 15, 8, 128>}, {transform_indices = @transform_1, window_bounds = array<i64: 1, 15, 7, 128>}, {transform_indices = @transform_2, window_bounds = array<i64: 1, 7, 7, 128>}]} {
    %c0 = arith.constant 0 : index
    %c0_0 = arith.constant 0 : index
    %c0_1 = arith.constant 0 : index
    %c0_2 = arith.constant 0 : index
    %0 = vector.load %arg1[%c0, %c0_0, %c0_1, %c0_2] : memref<1x15x8x128xbf16, #tpu.memory_space<vmem>>, vector<1x15x8x128xbf16>
    %1 = vector.shape_cast %0 : vector<1x15x8x128xbf16> to vector<15x8x128xbf16>
    %c0_3 = arith.constant 0 : index
    %c0_4 = arith.constant 0 : index
    %c0_5 = arith.constant 0 : index
    %c0_6 = arith.constant 0 : index
    %2 = vector.load %arg2[%c0_3, %c0_4, %c0_5, %c0_6] : memref<1x15x7x128xbf16, #tpu.memory_space<vmem>>, vector<1x15x7x128xbf16>
    %3 = vector.shape_cast %2 : vector<1x15x7x128xbf16> to vector<15x7x128xbf16>
    %4 = vector.extract_strided_slice %1 {offsets = [0, 0, 0], sizes = [15, 7, 128], strides = [1, 1, 1]} : vector<15x8x128xbf16> to vector<15x7x128xbf16>
    %5 = arith.maximumf %4, %3 : vector<15x7x128xbf16>
    %6 = vector.extract_strided_slice %1 {offsets = [0, 1, 0], sizes = [15, 7, 128], strides = [1, 1, 1]} : vector<15x8x128xbf16> to vector<15x7x128xbf16>
    %7 = arith.maximumf %5, %6 : vector<15x7x128xbf16>
    %8 = vector.extract_strided_slice %7 {offsets = [0, 0, 0], sizes = [3, 7, 128], strides = [1, 1, 1]} : vector<15x7x128xbf16> to vector<3x7x128xbf16>
    %cst = arith.constant dense<0xFF80> : vector<7x128xbf16>
    %9 = vector.multi_reduction <maximumf>, %8, %cst [0] : vector<3x7x128xbf16> to vector<7x128xbf16>
    %c0_7 = arith.constant 0 : index
    %c0_8 = arith.constant 0 : index
    %c0_9 = arith.constant 0 : index
    %c0_10 = arith.constant 0 : index
    %10 = vector.load %arg3[%c0_7, %c0_8, %c0_9, %c0_10] : memref<1x7x7x128xbf16, #tpu.memory_space<vmem>>, vector<1x1x7x128xbf16>
    %11 = vector.shape_cast %10 : vector<1x1x7x128xbf16> to vector<7x128xbf16>
    %12 = vector.shape_cast %9 : vector<7x128xbf16> to vector<1x1x7x128xbf16>
    tpu.vector_store %arg3[%c0_7, %c0_8, %c0_9, %c0_10], %12 {strides = array<i32>} : memref<1x7x7x128xbf16, #tpu.memory_space<vmem>>, vector<1x1x7x128xbf16>,
    %13 = vector.extract_strided_slice %7 {offsets = [2, 0, 0], sizes = [3, 7, 128], strides = [1, 1, 1]} : vector<15x7x128xbf16> to vector<3x7x128xbf16>
    %cst_11 = arith.constant dense<0xFF80> : vector<7x128xbf16>
    %14 = vector.multi_reduction <maximumf>, %13, %cst_11 [0] : vector<3x7x128xbf16> to vector<7x128xbf16>
    %c0_12 = arith.constant 0 : index
    %c1 = arith.constant 1 : index
    %c0_13 = arith.constant 0 : index
    %c0_14 = arith.constant 0 : index
    %15 = vector.load %arg3[%c0_12, %c1, %c0_13, %c0_14] : memref<1x7x7x128xbf16, #tpu.memory_space<vmem>>, vector<1x1x7x128xbf16>
    %16 = vector.shape_cast %15 : vector<1x1x7x128xbf16> to vector<7x128xbf16>
    %17 = vector.shape_cast %14 : vector<7x128xbf16> to vector<1x1x7x128xbf16>
    tpu.vector_store %arg3[%c0_12, %c1, %c0_13, %c0_14], %17 {strides = array<i32>} : memref<1x7x7x128xbf16, #tpu.memory_space<vmem>>, vector<1x1x7x128xbf16>,
    %18 = vector.extract_strided_slice %7 {offsets = [4, 0, 0], sizes = [3, 7, 128], strides = [1, 1, 1]} : vector<15x7x128xbf16> to vector<3x7x128xbf16>
    %cst_15 = arith.constant dense<0xFF80> : vector<7x128xbf16>
    %19 = vector.multi_reduction <maximumf>, %18, %cst_15 [0] : vector<3x7x128xbf16> to vector<7x128xbf16>
    %c0_16 = arith.constant 0 : index
    %c2 = arith.constant 2 : index
    %c0_17 = arith.constant 0 : index
    %c0_18 = arith.constant 0 : index
    %20 = vector.load %arg3[%c0_16, %c2, %c0_17, %c0_18] : memref<1x7x7x128xbf16, #tpu.memory_space<vmem>>, vector<1x1x7x128xbf16>
    %21 = vector.shape_cast %20 : vector<1x1x7x128xbf16> to vector<7x128xbf16>
    %22 = vector.shape_cast %19 : vector<7x128xbf16> to vector<1x1x7x128xbf16>
    tpu.vector_store %arg3[%c0_16, %c2, %c0_17, %c0_18], %22 {strides = array<i32>} : memref<1x7x7x128xbf16, #tpu.memory_space<vmem>>, vector<1x1x7x128xbf16>,
    %23 = vector.extract_strided_slice %7 {offsets = [6, 0, 0], sizes = [3, 7, 128], strides = [1, 1, 1]} : vector<15x7x128xbf16> to vector<3x7x128xbf16>
    %cst_19 = arith.constant dense<0xFF80> : vector<7x128xbf16>
    %24 = vector.multi_reduction <maximumf>, %23, %cst_19 [0] : vector<3x7x128xbf16> to vector<7x128xbf16>
    %c0_20 = arith.constant 0 : index
    %c3 = arith.constant 3 : index
    %c0_21 = arith.constant 0 : index
    %c0_22 = arith.constant 0 : index
    %25 = vector.load %arg3[%c0_20, %c3, %c0_21, %c0_22] : memref<1x7x7x128xbf16, #tpu.memory_space<vmem>>, vector<1x1x7x128xbf16>
    %26 = vector.shape_cast %25 : vector<1x1x7x128xbf16> to vector<7x128xbf16>
    %27 = vector.shape_cast %24 : vector<7x128xbf16> to vector<1x1x7x128xbf16>
    tpu.vector_store %arg3[%c0_20, %c3, %c0_21, %c0_22], %27 {strides = array<i32>} : memref<1x7x7x128xbf16, #tpu.memory_space<vmem>>, vector<1x1x7x128xbf16>,
    %28 = vector.extract_strided_slice %7 {offsets = [8, 0, 0], sizes = [3, 7, 128], strides = [1, 1, 1]} : vector<15x7x128xbf16> to vector<3x7x128xbf16>
    %cst_23 = arith.constant dense<0xFF80> : vector<7x128xbf16>
    %29 = vector.multi_reduction <maximumf>, %28, %cst_23 [0] : vector<3x7x128xbf16> to vector<7x128xbf16>
    %c0_24 = arith.constant 0 : index
    %c4 = arith.constant 4 : index
    %c0_25 = arith.constant 0 : index
    %c0_26 = arith.constant 0 : index
    %30 = vector.load %arg3[%c0_24, %c4, %c0_25, %c0_26] : memref<1x7x7x128xbf16, #tpu.memory_space<vmem>>, vector<1x1x7x128xbf16>
    %31 = vector.shape_cast %30 : vector<1x1x7x128xbf16> to vector<7x128xbf16>
    %32 = vector.shape_cast %29 : vector<7x128xbf16> to vector<1x1x7x128xbf16>
    tpu.vector_store %arg3[%c0_24, %c4, %c0_25, %c0_26], %32 {strides = array<i32>} : memref<1x7x7x128xbf16, #tpu.memory_space<vmem>>, vector<1x1x7x128xbf16>,
    %33 = vector.extract_strided_slice %7 {offsets = [10, 0, 0], sizes = [3, 7, 128], strides = [1, 1, 1]} : vector<15x7x128xbf16> to vector<3x7x128xbf16>
    %cst_27 = arith.constant dense<0xFF80> : vector<7x128xbf16>
    %34 = vector.multi_reduction <maximumf>, %33, %cst_27 [0] : vector<3x7x128xbf16> to vector<7x128xbf16>
    %c0_28 = arith.constant 0 : index
    %c5 = arith.constant 5 : index
    %c0_29 = arith.constant 0 : index
    %c0_30 = arith.constant 0 : index
    %35 = vector.load %arg3[%c0_28, %c5, %c0_29, %c0_30] : memref<1x7x7x128xbf16, #tpu.memory_space<vmem>>, vector<1x1x7x128xbf16>
    %36 = vector.shape_cast %35 : vector<1x1x7x128xbf16> to vector<7x128xbf16>
    %37 = vector.shape_cast %34 : vector<7x128xbf16> to vector<1x1x7x128xbf16>
    tpu.vector_store %arg3[%c0_28, %c5, %c0_29, %c0_30], %37 {strides = array<i32>} : memref<1x7x7x128xbf16, #tpu.memory_space<vmem>>, vector<1x1x7x128xbf16>,
    %38 = vector.extract_strided_slice %7 {offsets = [12, 0, 0], sizes = [3, 7, 128], strides = [1, 1, 1]} : vector<15x7x128xbf16> to vector<3x7x128xbf16>
    %cst_31 = arith.constant dense<0xFF80> : vector<7x128xbf16>
    %39 = vector.multi_reduction <maximumf>, %38, %cst_31 [0] : vector<3x7x128xbf16> to vector<7x128xbf16>
    %c0_32 = arith.constant 0 : index
    %c6 = arith.constant 6 : index
    %c0_33 = arith.constant 0 : index
    %c0_34 = arith.constant 0 : index
    %40 = vector.load %arg3[%c0_32, %c6, %c0_33, %c0_34] : memref<1x7x7x128xbf16, #tpu.memory_space<vmem>>, vector<1x1x7x128xbf16>
    %41 = vector.shape_cast %40 : vector<1x1x7x128xbf16> to vector<7x128xbf16>
    %42 = vector.shape_cast %39 : vector<7x128xbf16> to vector<1x1x7x128xbf16>
    tpu.vector_store %arg3[%c0_32, %c6, %c0_33, %c0_34], %42 {strides = array<i32>} : memref<1x7x7x128xbf16, #tpu.memory_space<vmem>>, vector<1x1x7x128xbf16>,
    return
  }
  func.func @transform_0(%arg0: i32) -> (i32, i32, i32, i32) {
    %c0_i32 = arith.constant 0 : i32
    %c0_i32_0 = arith.constant 0 : i32
    %c0_i32_1 = arith.constant 0 : i32
    %c0_i32_2 = arith.constant 0 : i32
    return %arg0, %c0_i32, %c0_i32_0, %c0_i32_1 : i32, i32, i32, i32
  }
  func.func @transform_1(%arg0: i32) -> (i32, i32, i32, i32) {
    %c0_i32 = arith.constant 0 : i32
    %c0_i32_0 = arith.constant 0 : i32
    %c0_i32_1 = arith.constant 0 : i32
    %c0_i32_2 = arith.constant 0 : i32
    return %arg0, %c0_i32, %c0_i32_0, %c0_i32_1 : i32, i32, i32, i32
  }
  func.func @transform_2(%arg0: i32) -> (i32, i32, i32, i32) {
    %c0_i32 = arith.constant 0 : i32
    %c0_i32_0 = arith.constant 0 : i32
    %c0_i32_1 = arith.constant 0 : i32
    %c0_i32_2 = arith.constant 0 : i32
    return %arg0, %c0_i32, %c0_i32_0, %c0_i32_1 : i32, i32, i32, i32
  }
}

module attributes {stable_mosaic.version = 11 : i64} {
  func.func @_gemm_bias_act_kernel(%arg0: i32, %arg1: i32, %arg2: memref<104x640xbf16, #tpu.memory_space<vmem>>, %arg3: memref<640x128xbf16, #tpu.memory_space<vmem>>, %arg4: memref<1x128xf32, #tpu.memory_space<vmem>>, %arg5: memref<104x128xbf16, #tpu.memory_space<vmem>>, %arg6: memref<104x128xf32, #tpu.memory_space<vmem>>) attributes {dimension_semantics = [#tpu.dimension_semantics<parallel>, #tpu.dimension_semantics<arbitrary>], iteration_bounds = array<i64: 1, 5>, scalar_prefetch = 0 : i64, scratch_operands = 1 : i64, tpu.core_type = #tpu.core_type<tc>, window_params = [{transform_indices = @transform_0, window_bounds = array<i64: 104, 640>}, {transform_indices = @transform_1, window_bounds = array<i64: 640, 128>}, {pipeline_mode = #tpu.pipeline_mode<synchronous>, transform_indices = @transform_2, window_bounds = array<i64: 1, 128>}, {transform_indices = @transform_3, window_bounds = array<i64: 104, 128>}]} {
    %c0_i32 = arith.constant 0 : i32
    %0 = arith.cmpi eq, %arg1, %c0_i32 : i32
    %1 = arith.extui %0 : i1 to i32
    %c0_i32_0 = arith.constant 0 : i32
    %2 = arith.cmpi ne, %1, %c0_i32_0 : i32
    scf.if %2 {
      %cst_9 = arith.constant 0.000000e+00 : f32
      %12 = vector.broadcast %cst_9 : f32 to vector<104x128xf32>
      %c0_10 = arith.constant 0 : index
      %c0_11 = arith.constant 0 : index
      %13 = vector.load %arg6[%c0_10, %c0_11] : memref<104x128xf32, #tpu.memory_space<vmem>>, vector<104x128xf32>
      tpu.vector_store %arg6[%c0_10, %c0_11], %12 {strides = array<i32>} : memref<104x128xf32, #tpu.memory_space<vmem>>, vector<104x128xf32>,
    } else {
    }
    %c0 = arith.constant 0 : index
    %c0_1 = arith.constant 0 : index
    %3 = vector.load %arg6[%c0, %c0_1] : memref<104x128xf32, #tpu.memory_space<vmem>>, vector<104x128xf32>
    %c0_2 = arith.constant 0 : index
    %c0_3 = arith.constant 0 : index
    %4 = vector.load %arg2[%c0_2, %c0_3] : memref<104x640xbf16, #tpu.memory_space<vmem>>, vector<104x640xbf16>
    %c0_4 = arith.constant 0 : index
    %c0_5 = arith.constant 0 : index
    %5 = vector.load %arg3[%c0_4, %c0_5] : memref<640x128xbf16, #tpu.memory_space<vmem>>, vector<640x128xbf16>
    %cst = arith.constant dense<0.000000e+00> : vector<104x128xf32>
    %6 = tpu.matmul %4, %5, %cst {dimension_numbers = #tpu.dot_dimension_numbers<[1], [0], [0], [1], [0, 0, 1, 1], [], []>} : vector<104x640xbf16>, vector<640x128xbf16>, vector<104x128xf32> -> vector<104x128xf32>
    %7 = arith.addf %3, %6 : vector<104x128xf32>
    %c0_6 = arith.constant 0 : index
    %c0_7 = arith.constant 0 : index
    %8 = vector.load %arg6[%c0_6, %c0_7] : memref<104x128xf32, #tpu.memory_space<vmem>>, vector<104x128xf32>
    tpu.vector_store %arg6[%c0_6, %c0_7], %7 {strides = array<i32>} : memref<104x128xf32, #tpu.memory_space<vmem>>, vector<104x128xf32>,
    %c4_i32 = arith.constant 4 : i32
    %9 = arith.cmpi eq, %arg1, %c4_i32 : i32
    %10 = arith.extui %9 : i1 to i32
    %c0_i32_8 = arith.constant 0 : i32
    %11 = arith.cmpi ne, %10, %c0_i32_8 : i32
    scf.if %11 {
      %c0_9 = arith.constant 0 : index
      %c0_10 = arith.constant 0 : index
      %12 = vector.load %arg6[%c0_9, %c0_10] : memref<104x128xf32, #tpu.memory_space<vmem>>, vector<104x128xf32>
      %c0_11 = arith.constant 0 : index
      %c0_12 = arith.constant 0 : index
      %13 = vector.load %arg4[%c0_11, %c0_12] : memref<1x128xf32, #tpu.memory_space<vmem>>, vector<1x128xf32>
      %14 = vector.broadcast %13 : vector<1x128xf32> to vector<104x128xf32>
      %15 = arith.addf %12, %14 : vector<104x128xf32>
      %cst_13 = arith.constant 0.000000e+00 : f32
      %16 = vector.broadcast %cst_13 : f32 to vector<104x128xf32>
      %17 = arith.maximumf %15, %16 : vector<104x128xf32>
      %18 = arith.truncf %17 : vector<104x128xf32> to vector<104x128xbf16>
      %c0_14 = arith.constant 0 : index
      %c0_15 = arith.constant 0 : index
      %19 = vector.load %arg5[%c0_14, %c0_15] : memref<104x128xbf16, #tpu.memory_space<vmem>>, vector<104x128xbf16>
      tpu.vector_store %arg5[%c0_14, %c0_15], %18 {strides = array<i32>} : memref<104x128xbf16, #tpu.memory_space<vmem>>, vector<104x128xbf16>,
    } else {
    }
    return
  }
  func.func @transform_0(%arg0: i32, %arg1: i32) -> (i32, i32) {
    %c0_i32 = arith.constant 0 : i32
    return %arg0, %arg1 : i32, i32
  }
  func.func @transform_1(%arg0: i32, %arg1: i32) -> (i32, i32) {
    %c0_i32 = arith.constant 0 : i32
    %c0_i32_0 = arith.constant 0 : i32
    return %arg1, %c0_i32 : i32, i32
  }
  func.func @transform_2(%arg0: i32, %arg1: i32) -> (i32, i32) {
    %c0_i32 = arith.constant 0 : i32
    %c0_i32_0 = arith.constant 0 : i32
    %c0_i32_1 = arith.constant 0 : i32
    return %c0_i32, %c0_i32_0 : i32, i32
  }
  func.func @transform_3(%arg0: i32, %arg1: i32) -> (i32, i32) {
    %c0_i32 = arith.constant 0 : i32
    %c0_i32_0 = arith.constant 0 : i32
    return %arg0, %c0_i32 : i32, i32
  }
}

module attributes {stable_mosaic.version = 11 : i64} {
  func.func @_maxpool_kernel(%arg0: i32, %arg1: memref<1x7x4x128xbf16, #tpu.memory_space<vmem>>, %arg2: memref<1x7x3x128xbf16, #tpu.memory_space<vmem>>, %arg3: memref<1x3x3x128xbf16, #tpu.memory_space<vmem>>) attributes {dimension_semantics = [#tpu.dimension_semantics<parallel>], iteration_bounds = array<i64: 2>, scalar_prefetch = 0 : i64, scratch_operands = 0 : i64, tpu.core_type = #tpu.core_type<tc>, window_params = [{transform_indices = @transform_0, window_bounds = array<i64: 1, 7, 4, 128>}, {transform_indices = @transform_1, window_bounds = array<i64: 1, 7, 3, 128>}, {transform_indices = @transform_2, window_bounds = array<i64: 1, 3, 3, 128>}]} {
    %c0 = arith.constant 0 : index
    %c0_0 = arith.constant 0 : index
    %c0_1 = arith.constant 0 : index
    %c0_2 = arith.constant 0 : index
    %0 = vector.load %arg1[%c0, %c0_0, %c0_1, %c0_2] : memref<1x7x4x128xbf16, #tpu.memory_space<vmem>>, vector<1x7x4x128xbf16>
    %1 = vector.shape_cast %0 : vector<1x7x4x128xbf16> to vector<7x4x128xbf16>
    %c0_3 = arith.constant 0 : index
    %c0_4 = arith.constant 0 : index
    %c0_5 = arith.constant 0 : index
    %c0_6 = arith.constant 0 : index
    %2 = vector.load %arg2[%c0_3, %c0_4, %c0_5, %c0_6] : memref<1x7x3x128xbf16, #tpu.memory_space<vmem>>, vector<1x7x3x128xbf16>
    %3 = vector.shape_cast %2 : vector<1x7x3x128xbf16> to vector<7x3x128xbf16>
    %4 = vector.extract_strided_slice %1 {offsets = [0, 0, 0], sizes = [7, 3, 128], strides = [1, 1, 1]} : vector<7x4x128xbf16> to vector<7x3x128xbf16>
    %5 = arith.maximumf %4, %3 : vector<7x3x128xbf16>
    %6 = vector.extract_strided_slice %1 {offsets = [0, 1, 0], sizes = [7, 3, 128], strides = [1, 1, 1]} : vector<7x4x128xbf16> to vector<7x3x128xbf16>
    %7 = arith.maximumf %5, %6 : vector<7x3x128xbf16>
    %8 = vector.extract_strided_slice %7 {offsets = [0, 0, 0], sizes = [3, 3, 128], strides = [1, 1, 1]} : vector<7x3x128xbf16> to vector<3x3x128xbf16>
    %cst = arith.constant dense<0xFF80> : vector<3x128xbf16>
    %9 = vector.multi_reduction <maximumf>, %8, %cst [0] : vector<3x3x128xbf16> to vector<3x128xbf16>
    %c0_7 = arith.constant 0 : index
    %c0_8 = arith.constant 0 : index
    %c0_9 = arith.constant 0 : index
    %c0_10 = arith.constant 0 : index
    %10 = vector.load %arg3[%c0_7, %c0_8, %c0_9, %c0_10] : memref<1x3x3x128xbf16, #tpu.memory_space<vmem>>, vector<1x1x3x128xbf16>
    %11 = vector.shape_cast %10 : vector<1x1x3x128xbf16> to vector<3x128xbf16>
    %12 = vector.shape_cast %9 : vector<3x128xbf16> to vector<1x1x3x128xbf16>
    tpu.vector_store %arg3[%c0_7, %c0_8, %c0_9, %c0_10], %12 {strides = array<i32>} : memref<1x3x3x128xbf16, #tpu.memory_space<vmem>>, vector<1x1x3x128xbf16>,
    %13 = vector.extract_strided_slice %7 {offsets = [2, 0, 0], sizes = [3, 3, 128], strides = [1, 1, 1]} : vector<7x3x128xbf16> to vector<3x3x128xbf16>
    %cst_11 = arith.constant dense<0xFF80> : vector<3x128xbf16>
    %14 = vector.multi_reduction <maximumf>, %13, %cst_11 [0] : vector<3x3x128xbf16> to vector<3x128xbf16>
    %c0_12 = arith.constant 0 : index
    %c1 = arith.constant 1 : index
    %c0_13 = arith.constant 0 : index
    %c0_14 = arith.constant 0 : index
    %15 = vector.load %arg3[%c0_12, %c1, %c0_13, %c0_14] : memref<1x3x3x128xbf16, #tpu.memory_space<vmem>>, vector<1x1x3x128xbf16>
    %16 = vector.shape_cast %15 : vector<1x1x3x128xbf16> to vector<3x128xbf16>
    %17 = vector.shape_cast %14 : vector<3x128xbf16> to vector<1x1x3x128xbf16>
    tpu.vector_store %arg3[%c0_12, %c1, %c0_13, %c0_14], %17 {strides = array<i32>} : memref<1x3x3x128xbf16, #tpu.memory_space<vmem>>, vector<1x1x3x128xbf16>,
    %18 = vector.extract_strided_slice %7 {offsets = [4, 0, 0], sizes = [3, 3, 128], strides = [1, 1, 1]} : vector<7x3x128xbf16> to vector<3x3x128xbf16>
    %cst_15 = arith.constant dense<0xFF80> : vector<3x128xbf16>
    %19 = vector.multi_reduction <maximumf>, %18, %cst_15 [0] : vector<3x3x128xbf16> to vector<3x128xbf16>
    %c0_16 = arith.constant 0 : index
    %c2 = arith.constant 2 : index
    %c0_17 = arith.constant 0 : index
    %c0_18 = arith.constant 0 : index
    %20 = vector.load %arg3[%c0_16, %c2, %c0_17, %c0_18] : memref<1x3x3x128xbf16, #tpu.memory_space<vmem>>, vector<1x1x3x128xbf16>
    %21 = vector.shape_cast %20 : vector<1x1x3x128xbf16> to vector<3x128xbf16>
    %22 = vector.shape_cast %19 : vector<3x128xbf16> to vector<1x1x3x128xbf16>
    tpu.vector_store %arg3[%c0_16, %c2, %c0_17, %c0_18], %22 {strides = array<i32>} : memref<1x3x3x128xbf16, #tpu.memory_space<vmem>>, vector<1x1x3x128xbf16>,
    return
  }
  func.func @transform_0(%arg0: i32) -> (i32, i32, i32, i32) {
    %c0_i32 = arith.constant 0 : i32
    %c0_i32_0 = arith.constant 0 : i32
    %c0_i32_1 = arith.constant 0 : i32
    %c0_i32_2 = arith.constant 0 : i32
    return %arg0, %c0_i32, %c0_i32_0, %c0_i32_1 : i32, i32, i32, i32
  }
  func.func @transform_1(%arg0: i32) -> (i32, i32, i32, i32) {
    %c0_i32 = arith.constant 0 : i32
    %c0_i32_0 = arith.constant 0 : i32
    %c0_i32_1 = arith.constant 0 : i32
    %c0_i32_2 = arith.constant 0 : i32
    return %arg0, %c0_i32, %c0_i32_0, %c0_i32_1 : i32, i32, i32, i32
  }
  func.func @transform_2(%arg0: i32) -> (i32, i32, i32, i32) {
    %c0_i32 = arith.constant 0 : i32
    %c0_i32_0 = arith.constant 0 : i32
    %c0_i32_1 = arith.constant 0 : i32
    %c0_i32_2 = arith.constant 0 : i32
    return %arg0, %c0_i32, %c0_i32_0, %c0_i32_1 : i32, i32, i32, i32
  }
}

module attributes {stable_mosaic.version = 11 : i64} {
  func.func @_gemm_bias_act_kernel(%arg0: i32, %arg1: i32, %arg2: memref<24x1152xbf16, #tpu.memory_space<vmem>>, %arg3: memref<1152x128xbf16, #tpu.memory_space<vmem>>, %arg4: memref<1x128xf32, #tpu.memory_space<vmem>>, %arg5: memref<24x128xbf16, #tpu.memory_space<vmem>>, %arg6: memref<24x128xf32, #tpu.memory_space<vmem>>) attributes {dimension_semantics = [#tpu.dimension_semantics<parallel>, #tpu.dimension_semantics<arbitrary>], iteration_bounds = array<i64: 1, 1>, scalar_prefetch = 0 : i64, scratch_operands = 1 : i64, tpu.core_type = #tpu.core_type<tc>, window_params = [{transform_indices = @transform_0, window_bounds = array<i64: 24, 1152>}, {transform_indices = @transform_1, window_bounds = array<i64: 1152, 128>}, {pipeline_mode = #tpu.pipeline_mode<synchronous>, transform_indices = @transform_2, window_bounds = array<i64: 1, 128>}, {transform_indices = @transform_3, window_bounds = array<i64: 24, 128>}]} {
    %c0_i32 = arith.constant 0 : i32
    %0 = arith.cmpi eq, %arg1, %c0_i32 : i32
    %1 = arith.extui %0 : i1 to i32
    %c0_i32_0 = arith.constant 0 : i32
    %2 = arith.cmpi ne, %1, %c0_i32_0 : i32
    scf.if %2 {
      %cst_10 = arith.constant 0.000000e+00 : f32
      %12 = vector.broadcast %cst_10 : f32 to vector<24x128xf32>
      %c0_11 = arith.constant 0 : index
      %c0_12 = arith.constant 0 : index
      %13 = vector.load %arg6[%c0_11, %c0_12] : memref<24x128xf32, #tpu.memory_space<vmem>>, vector<24x128xf32>
      tpu.vector_store %arg6[%c0_11, %c0_12], %12 {strides = array<i32>} : memref<24x128xf32, #tpu.memory_space<vmem>>, vector<24x128xf32>,
    } else {
    }
    %c0 = arith.constant 0 : index
    %c0_1 = arith.constant 0 : index
    %3 = vector.load %arg6[%c0, %c0_1] : memref<24x128xf32, #tpu.memory_space<vmem>>, vector<24x128xf32>
    %c0_2 = arith.constant 0 : index
    %c0_3 = arith.constant 0 : index
    %4 = vector.load %arg2[%c0_2, %c0_3] : memref<24x1152xbf16, #tpu.memory_space<vmem>>, vector<24x1152xbf16>
    %c0_4 = arith.constant 0 : index
    %c0_5 = arith.constant 0 : index
    %5 = vector.load %arg3[%c0_4, %c0_5] : memref<1152x128xbf16, #tpu.memory_space<vmem>>, vector<1152x128xbf16>
    %cst = arith.constant dense<0.000000e+00> : vector<24x128xf32>
    %6 = tpu.matmul %4, %5, %cst {dimension_numbers = #tpu.dot_dimension_numbers<[1], [0], [0], [1], [0, 0, 1, 1], [], []>} : vector<24x1152xbf16>, vector<1152x128xbf16>, vector<24x128xf32> -> vector<24x128xf32>
    %7 = arith.addf %3, %6 : vector<24x128xf32>
    %c0_6 = arith.constant 0 : index
    %c0_7 = arith.constant 0 : index
    %8 = vector.load %arg6[%c0_6, %c0_7] : memref<24x128xf32, #tpu.memory_space<vmem>>, vector<24x128xf32>
    tpu.vector_store %arg6[%c0_6, %c0_7], %7 {strides = array<i32>} : memref<24x128xf32, #tpu.memory_space<vmem>>, vector<24x128xf32>,
    %c0_i32_8 = arith.constant 0 : i32
    %9 = arith.cmpi eq, %arg1, %c0_i32_8 : i32
    %10 = arith.extui %9 : i1 to i32
    %c0_i32_9 = arith.constant 0 : i32
    %11 = arith.cmpi ne, %10, %c0_i32_9 : i32
    scf.if %11 {
      %c0_10 = arith.constant 0 : index
      %c0_11 = arith.constant 0 : index
      %12 = vector.load %arg6[%c0_10, %c0_11] : memref<24x128xf32, #tpu.memory_space<vmem>>, vector<24x128xf32>
      %c0_12 = arith.constant 0 : index
      %c0_13 = arith.constant 0 : index
      %13 = vector.load %arg4[%c0_12, %c0_13] : memref<1x128xf32, #tpu.memory_space<vmem>>, vector<1x128xf32>
      %14 = vector.broadcast %13 : vector<1x128xf32> to vector<24x128xf32>
      %15 = arith.addf %12, %14 : vector<24x128xf32>
      %cst_14 = arith.constant 0.000000e+00 : f32
      %16 = vector.broadcast %cst_14 : f32 to vector<24x128xf32>
      %17 = arith.maximumf %15, %16 : vector<24x128xf32>
      %18 = arith.truncf %17 : vector<24x128xf32> to vector<24x128xbf16>
      %c0_15 = arith.constant 0 : index
      %c0_16 = arith.constant 0 : index
      %19 = vector.load %arg5[%c0_15, %c0_16] : memref<24x128xbf16, #tpu.memory_space<vmem>>, vector<24x128xbf16>
      tpu.vector_store %arg5[%c0_15, %c0_16], %18 {strides = array<i32>} : memref<24x128xbf16, #tpu.memory_space<vmem>>, vector<24x128xbf16>,
    } else {
    }
    return
  }
  func.func @transform_0(%arg0: i32, %arg1: i32) -> (i32, i32) {
    %c0_i32 = arith.constant 0 : i32
    return %arg0, %arg1 : i32, i32
  }
  func.func @transform_1(%arg0: i32, %arg1: i32) -> (i32, i32) {
    %c0_i32 = arith.constant 0 : i32
    %c0_i32_0 = arith.constant 0 : i32
    return %arg1, %c0_i32 : i32, i32
  }
  func.func @transform_2(%arg0: i32, %arg1: i32) -> (i32, i32) {
    %c0_i32 = arith.constant 0 : i32
    %c0_i32_0 = arith.constant 0 : i32
    %c0_i32_1 = arith.constant 0 : i32
    return %c0_i32, %c0_i32_0 : i32, i32
  }
  func.func @transform_3(%arg0: i32, %arg1: i32) -> (i32, i32) {
    %c0_i32 = arith.constant 0 : i32
    %c0_i32_0 = arith.constant 0 : i32
    return %arg0, %c0_i32 : i32, i32
  }
}

module attributes {stable_mosaic.version = 11 : i64} {
  func.func @_maxpool_kernel(%arg0: i32, %arg1: memref<1x3x2x128xbf16, #tpu.memory_space<vmem>>, %arg2: memref<1x3x1x128xbf16, #tpu.memory_space<vmem>>, %arg3: memref<1x1x1x128xbf16, #tpu.memory_space<vmem>>) attributes {dimension_semantics = [#tpu.dimension_semantics<parallel>], iteration_bounds = array<i64: 2>, scalar_prefetch = 0 : i64, scratch_operands = 0 : i64, tpu.core_type = #tpu.core_type<tc>, window_params = [{transform_indices = @transform_0, window_bounds = array<i64: 1, 3, 2, 128>}, {transform_indices = @transform_1, window_bounds = array<i64: 1, 3, 1, 128>}, {transform_indices = @transform_2, window_bounds = array<i64: 1, 1, 1, 128>}]} {
    %c0 = arith.constant 0 : index
    %c0_0 = arith.constant 0 : index
    %c0_1 = arith.constant 0 : index
    %c0_2 = arith.constant 0 : index
    %0 = vector.load %arg1[%c0, %c0_0, %c0_1, %c0_2] : memref<1x3x2x128xbf16, #tpu.memory_space<vmem>>, vector<1x3x2x128xbf16>
    %1 = vector.shape_cast %0 : vector<1x3x2x128xbf16> to vector<3x2x128xbf16>
    %c0_3 = arith.constant 0 : index
    %c0_4 = arith.constant 0 : index
    %c0_5 = arith.constant 0 : index
    %c0_6 = arith.constant 0 : index
    %2 = vector.load %arg2[%c0_3, %c0_4, %c0_5, %c0_6] : memref<1x3x1x128xbf16, #tpu.memory_space<vmem>>, vector<1x3x1x128xbf16>
    %3 = vector.shape_cast %2 : vector<1x3x1x128xbf16> to vector<3x1x128xbf16>
    %4 = vector.extract_strided_slice %1 {offsets = [0, 0, 0], sizes = [3, 1, 128], strides = [1, 1, 1]} : vector<3x2x128xbf16> to vector<3x1x128xbf16>
    %5 = arith.maximumf %4, %3 : vector<3x1x128xbf16>
    %6 = vector.extract_strided_slice %1 {offsets = [0, 1, 0], sizes = [3, 1, 128], strides = [1, 1, 1]} : vector<3x2x128xbf16> to vector<3x1x128xbf16>
    %7 = arith.maximumf %5, %6 : vector<3x1x128xbf16>
    %cst = arith.constant dense<0xFF80> : vector<1x128xbf16>
    %8 = vector.multi_reduction <maximumf>, %7, %cst [0] : vector<3x1x128xbf16> to vector<1x128xbf16>
    %c0_7 = arith.constant 0 : index
    %c0_8 = arith.constant 0 : index
    %c0_9 = arith.constant 0 : index
    %c0_10 = arith.constant 0 : index
    %9 = vector.load %arg3[%c0_7, %c0_8, %c0_9, %c0_10] : memref<1x1x1x128xbf16, #tpu.memory_space<vmem>>, vector<1x1x1x128xbf16>
    %10 = vector.shape_cast %9 : vector<1x1x1x128xbf16> to vector<1x128xbf16>
    %11 = vector.shape_cast %8 : vector<1x128xbf16> to vector<1x1x1x128xbf16>
    tpu.vector_store %arg3[%c0_7, %c0_8, %c0_9, %c0_10], %11 {strides = array<i32>} : memref<1x1x1x128xbf16, #tpu.memory_space<vmem>>, vector<1x1x1x128xbf16>,
    return
  }
  func.func @transform_0(%arg0: i32) -> (i32, i32, i32, i32) {
    %c0_i32 = arith.constant 0 : i32
    %c0_i32_0 = arith.constant 0 : i32
    %c0_i32_1 = arith.constant 0 : i32
    %c0_i32_2 = arith.constant 0 : i32
    return %arg0, %c0_i32, %c0_i32_0, %c0_i32_1 : i32, i32, i32, i32
  }
  func.func @transform_1(%arg0: i32) -> (i32, i32, i32, i32) {
    %c0_i32 = arith.constant 0 : i32
    %c0_i32_0 = arith.constant 0 : i32
    %c0_i32_1 = arith.constant 0 : i32
    %c0_i32_2 = arith.constant 0 : i32
    return %arg0, %c0_i32, %c0_i32_0, %c0_i32_1 : i32, i32, i32, i32
  }
  func.func @transform_2(%arg0: i32) -> (i32, i32, i32, i32) {
    %c0_i32 = arith.constant 0 : i32
    %c0_i32_0 = arith.constant 0 : i32
    %c0_i32_1 = arith.constant 0 : i32
    %c0_i32_2 = arith.constant 0 : i32
    return %arg0, %c0_i32, %c0_i32_0, %c0_i32_1 : i32, i32, i32, i32
  }
}

module attributes {stable_mosaic.version = 11 : i64} {
  func.func @_tail_kernel(%arg0: i32, %arg1: memref<8x128xbf16, #tpu.memory_space<vmem>>, %arg2: memref<8x68xbf16, #tpu.memory_space<vmem>>, %arg3: memref<128x256xbf16, #tpu.memory_space<vmem>>, %arg4: memref<1x256xf32, #tpu.memory_space<vmem>>, %arg5: memref<256x256xbf16, #tpu.memory_space<vmem>>, %arg6: memref<1x256xf32, #tpu.memory_space<vmem>>, %arg7: memref<256x128xbf16, #tpu.memory_space<vmem>>, %arg8: memref<68x128xbf16, #tpu.memory_space<vmem>>, %arg9: memref<1x128xf32, #tpu.memory_space<vmem>>, %arg10: memref<8x128xf32, #tpu.memory_space<vmem>>) attributes {dimension_semantics = [#tpu.dimension_semantics<arbitrary>], iteration_bounds = array<i64: 1>, scalar_prefetch = 0 : i64, scratch_operands = 0 : i64, tpu.core_type = #tpu.core_type<tc>, window_params = [{pipeline_mode = #tpu.pipeline_mode<synchronous>, transform_indices = @transform_0, window_bounds = array<i64: 8, 128>}, {pipeline_mode = #tpu.pipeline_mode<synchronous>, transform_indices = @transform_1, window_bounds = array<i64: 8, 68>}, {pipeline_mode = #tpu.pipeline_mode<synchronous>, transform_indices = @transform_2, window_bounds = array<i64: 128, 256>}, {pipeline_mode = #tpu.pipeline_mode<synchronous>, transform_indices = @transform_3, window_bounds = array<i64: 1, 256>}, {pipeline_mode = #tpu.pipeline_mode<synchronous>, transform_indices = @transform_4, window_bounds = array<i64: 256, 256>}, {pipeline_mode = #tpu.pipeline_mode<synchronous>, transform_indices = @transform_5, window_bounds = array<i64: 1, 256>}, {pipeline_mode = #tpu.pipeline_mode<synchronous>, transform_indices = @transform_6, window_bounds = array<i64: 256, 128>}, {pipeline_mode = #tpu.pipeline_mode<synchronous>, transform_indices = @transform_7, window_bounds = array<i64: 68, 128>}, {pipeline_mode = #tpu.pipeline_mode<synchronous>, transform_indices = @transform_8, window_bounds = array<i64: 1, 128>}, {pipeline_mode = #tpu.pipeline_mode<synchronous>, transform_indices = @transform_9, window_bounds = array<i64: 8, 128>}]} {
    %c0 = arith.constant 0 : index
    %c0_0 = arith.constant 0 : index
    %0 = vector.load %arg1[%c0, %c0_0] : memref<8x128xbf16, #tpu.memory_space<vmem>>, vector<8x128xbf16>
    %c0_1 = arith.constant 0 : index
    %c0_2 = arith.constant 0 : index
    %1 = vector.load %arg3[%c0_1, %c0_2] : memref<128x256xbf16, #tpu.memory_space<vmem>>, vector<128x256xbf16>
    %cst = arith.constant dense<0.000000e+00> : vector<8x256xf32>
    %2 = tpu.matmul %0, %1, %cst {dimension_numbers = #tpu.dot_dimension_numbers<[1], [0], [0], [1], [0, 0, 1, 1], [], []>} : vector<8x128xbf16>, vector<128x256xbf16>, vector<8x256xf32> -> vector<8x256xf32>
    %c0_3 = arith.constant 0 : index
    %c0_4 = arith.constant 0 : index
    %3 = vector.load %arg4[%c0_3, %c0_4] : memref<1x256xf32, #tpu.memory_space<vmem>>, vector<1x256xf32>
    %4 = vector.broadcast %3 : vector<1x256xf32> to vector<8x256xf32>
    %5 = arith.addf %2, %4 : vector<8x256xf32>
    %cst_5 = arith.constant 0.000000e+00 : f32
    %6 = vector.broadcast %cst_5 : f32 to vector<8x256xf32>
    %7 = arith.maximumf %5, %6 : vector<8x256xf32>
    %8 = arith.truncf %7 : vector<8x256xf32> to vector<8x256xbf16>
    %c0_6 = arith.constant 0 : index
    %c0_7 = arith.constant 0 : index
    %9 = vector.load %arg5[%c0_6, %c0_7] : memref<256x256xbf16, #tpu.memory_space<vmem>>, vector<256x256xbf16>
    %cst_8 = arith.constant dense<0.000000e+00> : vector<8x256xf32>
    %10 = tpu.matmul %8, %9, %cst_8 {dimension_numbers = #tpu.dot_dimension_numbers<[1], [0], [0], [1], [0, 0, 1, 1], [], []>} : vector<8x256xbf16>, vector<256x256xbf16>, vector<8x256xf32> -> vector<8x256xf32>
    %c0_9 = arith.constant 0 : index
    %c0_10 = arith.constant 0 : index
    %11 = vector.load %arg6[%c0_9, %c0_10] : memref<1x256xf32, #tpu.memory_space<vmem>>, vector<1x256xf32>
    %12 = vector.broadcast %11 : vector<1x256xf32> to vector<8x256xf32>
    %13 = arith.addf %10, %12 : vector<8x256xf32>
    %cst_11 = arith.constant 0.000000e+00 : f32
    %14 = vector.broadcast %cst_11 : f32 to vector<8x256xf32>
    %15 = arith.maximumf %13, %14 : vector<8x256xf32>
    %16 = arith.truncf %15 : vector<8x256xf32> to vector<8x256xbf16>
    %c0_12 = arith.constant 0 : index
    %c0_13 = arith.constant 0 : index
    %17 = vector.load %arg7[%c0_12, %c0_13] : memref<256x128xbf16, #tpu.memory_space<vmem>>, vector<256x128xbf16>
    %cst_14 = arith.constant dense<0.000000e+00> : vector<8x128xf32>
    %18 = tpu.matmul %16, %17, %cst_14 {dimension_numbers = #tpu.dot_dimension_numbers<[1], [0], [0], [1], [0, 0, 1, 1], [], []>} : vector<8x256xbf16>, vector<256x128xbf16>, vector<8x128xf32> -> vector<8x128xf32>
    %c0_15 = arith.constant 0 : index
    %c0_16 = arith.constant 0 : index
    %19 = vector.load %arg2[%c0_15, %c0_16] : memref<8x68xbf16, #tpu.memory_space<vmem>>, vector<8x68xbf16>
    %c0_17 = arith.constant 0 : index
    %c0_18 = arith.constant 0 : index
    %20 = vector.load %arg8[%c0_17, %c0_18] : memref<68x128xbf16, #tpu.memory_space<vmem>>, vector<68x128xbf16>
    %cst_19 = arith.constant dense<0.000000e+00> : vector<8x128xf32>
    %21 = tpu.matmul %19, %20, %cst_19 {dimension_numbers = #tpu.dot_dimension_numbers<[1], [0], [0], [1], [0, 0, 1, 1], [], []>} : vector<8x68xbf16>, vector<68x128xbf16>, vector<8x128xf32> -> vector<8x128xf32>
    %22 = arith.addf %18, %21 : vector<8x128xf32>
    %c0_20 = arith.constant 0 : index
    %c0_21 = arith.constant 0 : index
    %23 = vector.load %arg9[%c0_20, %c0_21] : memref<1x128xf32, #tpu.memory_space<vmem>>, vector<1x128xf32>
    %24 = vector.broadcast %23 : vector<1x128xf32> to vector<8x128xf32>
    %25 = arith.addf %22, %24 : vector<8x128xf32>
    %c0_22 = arith.constant 0 : index
    %c0_23 = arith.constant 0 : index
    %26 = vector.load %arg10[%c0_22, %c0_23] : memref<8x128xf32, #tpu.memory_space<vmem>>, vector<8x128xf32>
    tpu.vector_store %arg10[%c0_22, %c0_23], %25 {strides = array<i32>} : memref<8x128xf32, #tpu.memory_space<vmem>>, vector<8x128xf32>,
    return
  }
  func.func @transform_0(%arg0: i32) -> (i32, i32) {
    %c0_i32 = arith.constant 0 : i32
    %c0_i32_0 = arith.constant 0 : i32
    %c0_i32_1 = arith.constant 0 : i32
    return %c0_i32, %c0_i32_0 : i32, i32
  }
  func.func @transform_1(%arg0: i32) -> (i32, i32) {
    %c0_i32 = arith.constant 0 : i32
    %c0_i32_0 = arith.constant 0 : i32
    %c0_i32_1 = arith.constant 0 : i32
    return %c0_i32, %c0_i32_0 : i32, i32
  }
  func.func @transform_2(%arg0: i32) -> (i32, i32) {
    %c0_i32 = arith.constant 0 : i32
    %c0_i32_0 = arith.constant 0 : i32
    %c0_i32_1 = arith.constant 0 : i32
    return %c0_i32, %c0_i32_0 : i32, i32
  }
  func.func @transform_3(%arg0: i32) -> (i32, i32) {
    %c0_i32 = arith.constant 0 : i32
    %c0_i32_0 = arith.constant 0 : i32
    %c0_i32_1 = arith.constant 0 : i32
    return %c0_i32, %c0_i32_0 : i32, i32
  }
  func.func @transform_4(%arg0: i32) -> (i32, i32) {
    %c0_i32 = arith.constant 0 : i32
    %c0_i32_0 = arith.constant 0 : i32
    %c0_i32_1 = arith.constant 0 : i32
    return %c0_i32, %c0_i32_0 : i32, i32
  }
  func.func @transform_5(%arg0: i32) -> (i32, i32) {
    %c0_i32 = arith.constant 0 : i32
    %c0_i32_0 = arith.constant 0 : i32
    %c0_i32_1 = arith.constant 0 : i32
    return %c0_i32, %c0_i32_0 : i32, i32
  }
  func.func @transform_6(%arg0: i32) -> (i32, i32) {
    %c0_i32 = arith.constant 0 : i32
    %c0_i32_0 = arith.constant 0 : i32
    %c0_i32_1 = arith.constant 0 : i32
    return %c0_i32, %c0_i32_0 : i32, i32
  }
  func.func @transform_7(%arg0: i32) -> (i32, i32) {
    %c0_i32 = arith.constant 0 : i32
    %c0_i32_0 = arith.constant 0 : i32
    %c0_i32_1 = arith.constant 0 : i32
    return %c0_i32, %c0_i32_0 : i32, i32
  }
  func.func @transform_8(%arg0: i32) -> (i32, i32) {
    %c0_i32 = arith.constant 0 : i32
    %c0_i32_0 = arith.constant 0 : i32
    %c0_i32_1 = arith.constant 0 : i32
    return %c0_i32, %c0_i32_0 : i32, i32
  }
  func.func @transform_9(%arg0: i32) -> (i32, i32) {
    %c0_i32 = arith.constant 0 : i32
    %c0_i32_0 = arith.constant 0 : i32
    %c0_i32_1 = arith.constant 0 : i32
    return %c0_i32, %c0_i32_0 : i32, i32
  }
}

</mosaic_0001>

<bundles_post_ra>
// kernel: forward.9
= control target key start
LH: loop header
LB: loop body
LE: loop exit
PB: predicated region body
PF: predicated region fallthrough
CT: control target
= control target key end

     0   :  { %s2672_s12 = smov 0   ;;  %s2674_s13 = smov 0   ;;  %s3084_s0 = inlined_call_operand.vmem [shape: bf16[450,363], index: 0, kind: input, shape index: {}]   ;;  %s3085_s1 = inlined_call_operand.vmem [shape: bf16[363,128], index: 1, kind: input, shape index: {}]   ;;  %s3086_s2 = inlined_call_operand.vmem [shape: f32[1,128], index: 2, kind: input, shape index: {}]   ;;  %s3087_s3 = inlined_call_operand.vmem [shape: bf16[450,128], index: 3, kind: output, shape index: {}]  }
   0x1   :  { %s2676_s14 = smov 0   ;;  %s2678_s15 = smov 0  }
   0x2   :  { %s2680_s16 = smov 0  }
   0x3 LB: > { %s1881_s17 = sadd.s32 4294967295, %s2617_s16   ;;  %s25_s18 = sadd.s32 1, %s2613_s15  ;;  %s2617_s16 = sphi %s2680_s16, %s13_s16   ;;  %s2613_s15 = sphi %s2678_s15, %s3095_s15   ;;  %s2609_s14 = sphi %s2676_s14, %s3094_s14   ;;  %s2605_s13 = sphi %s2674_s13, %s3093_s13   ;;  %s2601_s12 = sphi %s2672_s12, %s3092_s12  }
   0x4   : > { %p27_p0 = scmp.ge.s32.totalorder %s25_s18, 2  ;;  %s107_s19 = sadd.s32 1, %s2605_s13 }
   0x5   : > { %p117_p1 = scmp.ne.s32.totalorder %s2605_s13, %s2601_s12  ;;  %p118_p2 = scmp.eq.s32.totalorder %s1881_s17, 1 }
   0x6   : > { %s3097_s18 = smov (%p27_p0, %s25_s18), 0  ;;  %p1886_p4 = scmp.ge.s32.totalorder %s2617_s16, 1 }
   0x7   : > { %p2704_p3 = por %p118_p2, %p117_p1  ;;  %s104_s21 = ssub.s32 %s2613_s15, %s3097_s18 }
   0x8   : > { %p179_p5 = scmp.lt.s32.totalorder %s2617_s16, 3  ;;  %p105_p6 = scmp.eq.s32.totalorder %s104_s21, 0 }
   0xa   : > { %p180_p7 = pnand %p1886_p4, %p179_p5 }
   0xb   : > { %s2713_s22 = scalar_select %p105_p6, %s2605_s13, %s107_s19  }
   0xc   : > { %183 = sbr.rel (%p180_p7) target bundleno = 429 (0x1ad), region = 32  ;;  %v2460_v0 = vld [vmem:[%s3085_s1 + $0x40] sm:$0xff] (!%p180_p7)   ;;  %s2719_s25 = sshll.u32 (!%p180_p7), %s2609_s14, 5  ;;  %v2462_v2 = vld [vmem:[%s3085_s1 + $0x48] sm:$0xff] (!%p180_p7)   ;;  %v2464_v4 = vld [vmem:[%s3085_s1 + $0x50] sm:$0xff] (!%p180_p7)   ;;  %vm855_vm0 = vcmask (!%p180_p7), 1044480  }
   0xd   : > { %v2461_v1 = vld [vmem:[%s3085_s1] sm:$0xff] (!%p180_p7)   ;;  %2157 = vmatprep.subr.bf16.mxu0 (!%p180_p7), %v2460_v0  ;;  %2338 = vmatprep.subr.bf16.mxu1 (!%p180_p7), %v2460_v0  ;;  %p224_p8 = scmp.lt.s32.totalorder (!%p180_p7), %s2719_s25, 56  ;;  %v2463_v3 = vld [vmem:[%s3085_s1 + $0x8] sm:$0xff] (!%p180_p7)   ;;  %v2465_v5 = vld [vmem:[%s3085_s1 + $0x10] sm:$0xff] (!%p180_p7)   ;;  %vm856_vm1 = vcmask (!%p180_p7), 1045504   ;;  %v2651_v32 = vmov (!%p180_p7), 65535  }
   0xe   : > { %2158 = vmatpush3.bf16.msra.mxu0 (!%p180_p7), %v2461_v1  ;;  %2346 = vmatpush3.bf16.msra.mxu1 (!%p180_p7), %v2461_v1  ;;  %v2466_v6 = vld [vmem:[%s3085_s1 + $0x58] sm:$0xff] (!%p180_p7)   ;;  %v2468_v8 = vld [vmem:[%s3085_s1 + $0x60] sm:$0xff] (!%p180_p7)   ;;  %v2470_v10 = vld [vmem:[%s3085_s1 + $0x68] sm:$0xff] (!%p180_p7)   ;;  %v857_v33 = vsel (!%p180_p7), %vm855_vm0, 4294967295, %v2651_v32  ;;  %vm806_vm2 = vcmask (!%p180_p7), 875520   ;;  %s214_s21 = sand.u32 (!%p180_p7), 1, %s2601_s12  }
   0xf   : > { %2159 = vmatprep.subr.bf16.mxu0 (!%p180_p7), %v2462_v2  ;;  %2339 = vmatprep.subr.bf16.mxu1 (!%p180_p7), %v2462_v2  ;;  %v2467_v7 = vld [vmem:[%s3085_s1 + $0x18] sm:$0xff] (!%p180_p7)   ;;  %v2469_v9 = vld [vmem:[%s3085_s1 + $0x20] sm:$0xff] (!%p180_p7)   ;;  %v2471_v13 = vld [vmem:[%s3085_s1 + $0x28] sm:$0xff] (!%p180_p7)   ;;  %v858_v39 = vsel (!%p180_p7), %vm856_vm1, %v857_v33, 0  ;;  %s1887_s23 = sshll.u32 (!%p180_p7), %s214_s21, 7 }
  0x10   : > { %v2472_v14 = vld [vmem:[%s3085_s1 + $0x70] sm:$0xff] (!%p180_p7)   ;;  %v2474_v16 = vld [vmem:[%s3085_s1 + $0x78] sm:$0xff] (!%p180_p7)   ;;  %v2482_v18 = vld [vmem:[%s3085_s1 + $0x80] sm:$0xff] (!%p180_p7)   ;;  %s2884_s12 = scalar_lea.vmem (!%p180_p7), [#allocation3], %s1887_s23  }
  0x11   : > { %v2473_v15 = vld [vmem:[%s3085_s1 + $0x30] sm:$0xff] (!%p180_p7)   ;;  %v2475_v17 = vld [vmem:[%s3085_s1 + $0x38] sm:$0xff] (!%p180_p7)   ;;  %v2483_v21 = vld [vmem:[%s3085_s1 + $0x88] sm:$0xff] (!%p180_p7)  }
  0x12   : > { %2160 = vmatpush3.bf16.msra.mxu0 (!%p180_p7), %v2463_v3  ;;  %2347 = vmatpush3.bf16.msra.mxu1 (!%p180_p7), %v2463_v3  ;;  %v2490_v25 = vld [vmem:[%s3085_s1 + $0x90] sm:$0xff] (!%p180_p7)   ;;  %v2495_v29 = vld [vmem:[%s3085_s1 + $0x98] sm:$0xff] (!%p180_p7)   ;;  %v2498_v31 = vld [vmem:[%s3085_s1 + $0xa0] sm:$0xff] (!%p180_p7)  }
  0x13   : > { %s225_s7 = scalar_select %p224_p8, %s2719_s25, 56  ;;  %2161 = vmatprep.subr.bf16.mxu0 %v2464_v4  ;;  %2340 = vmatprep.subr.bf16.mxu1 %v2464_v4  ;;  %v2505_v37 = vld [vmem:[%s3085_s1 + $0xa8] sm:$0xff]   ;;  %v2506_v38 = vld [vmem:[%s3085_s1 + $0xb0] sm:$0x3f]  }
  0x14   : > { %v860_v40 = vand.u32 %v2506_v38, %v858_v39  ;;  %s1522_s24 = ssub.s32 (%p2704_p3), 57, %s2719_s25  ;;  %s2059_s26 = sshll.u32 (%p2704_p3), %s2609_s14, 7 }
  0x15   : > { %s2354_s17 = smul.u32 12, %s225_s7  ;;  %p1523_p9 = scmp.lt.s32.totalorder (%p2704_p3), %s1522_s24, 32 }
  0x16   : > { %2162 = vmatpush3.bf16.msra.mxu0 %v2465_v5  ;;  %2348 = vmatpush3.bf16.msra.mxu1 %v2465_v5  ;;  %s2951_s30 = scalar_lea.vmem (%p2704_p3), %s3087_s3, %s2059_s26  }
  0x17   : > { %2163 = vmatprep.subr.bf16.mxu0 %v2466_v6  ;;  %2341 = vmatprep.subr.bf16.mxu1 %v2466_v6  ;;  %s2750_s28 = scalar_lea.vmem %s3084_s0, %s2354_s17 }
  0x18   : > { %v2478_v11 = vld [vmem:[%s2750_s28 + $0x4] ss:$12 sps:$4 sm:$0xff]   ;;  %v2476_v19 = vld [vmem:[%s2750_s28] ss:$12 sps:$4 sm:$0xff]   ;;  %v2484_v22 = vld [vmem:[%s2750_s28 + $0x1c] ss:$12 sps:$4 sm:$0xff]  }
  0x19   : > { %v2481_v12 = vld [vmem:[%s2750_s28 + $0x124] ss:$12 sps:$4 sm:$0xff]   ;;  %894 = vmatprep.mubr.bf16.mxu0 %v2478_v11  ;;  %v2479_v20 = vld [vmem:[%s2750_s28 + $0x120] ss:$12 sps:$4 sm:$0xff]   ;;  %v2486_v23 = vld [vmem:[%s2750_s28 + $0x13c] ss:$12 sps:$4 sm:$0xff]  }
  0x1a   : > { %2164 = vmatpush3.bf16.msra.mxu0 %v2467_v7  ;;  %2349 = vmatpush3.bf16.msra.mxu1 %v2467_v7  ;;  %v2488_v24 = vld [vmem:[%s2750_s28 + $0x18] ss:$12 sps:$4 sm:$0xff]   ;;  %v2491_v27 = vld [vmem:[%s2750_s28 + $0x34] ss:$12 sps:$4 sm:$0xff]   ;;  %v2496_v30 = vld [vmem:[%s2750_s28 + $0x30] ss:$12 sps:$4 sm:$0xff]  }
  0x1b   : > { %2165 = vmatprep.subr.bf16.mxu0 %v2468_v8  ;;  %2342 = vmatprep.subr.bf16.mxu1 %v2468_v8  ;;  %v2489_v26 = vld [vmem:[%s2750_s28 + $0x138] ss:$12 sps:$4 sm:$0xff]   ;;  %v2493_v28 = vld [vmem:[%s2750_s28 + $0x154] ss:$12 sps:$4 sm:$0xff]   ;;  %v2497_v34 = vld [vmem:[%s2750_s28 + $0x150] ss:$12 sps:$4 sm:$0xff]  }
  0x1c   : > { %990 = vmatprep.mubr.bf16.mxu1 %v2481_v12  ;;  %v2499_v35 = vld [vmem:[%s2750_s28 + $0x4c] ss:$12 sps:$4 sm:$0xff]   ;;  %v2503_v41 = vld [vmem:[%s2750_s28 + $0x48] ss:$12 sps:$4 sm:$0xff]   ;;  %v2507_v43 = vld [vmem:[%s2750_s28 + $0x64] ss:$12 sps:$4 sm:$0xff]  }
  0x1d   : > { %v2501_v36 = vld [vmem:[%s2750_s28 + $0x16c] ss:$12 sps:$4 sm:$0xff]   ;;  %v2504_v42 = vld [vmem:[%s2750_s28 + $0x168] ss:$12 sps:$4 sm:$0xff]   ;;  %v2516_v50 = vld [vmem:[%s2750_s28 + $0x50] ss:$12 sps:$4 sm:$0xff]  }
  0x1e   : > { %2166 = vmatpush3.bf16.msra.mxu0 %v2469_v9  ;;  %2350 = vmatpush3.bf16.msra.mxu1 %v2469_v9  ;;  %v2509_v44 = vld [vmem:[%s2750_s28 + $0x8] ss:$12 sps:$4 sm:$0xff]   ;;  %v2510_v45 = vld [vmem:[%s2750_s28 + $0x60] ss:$12 sps:$4 sm:$0xff]   ;;  %v2514_v48 = vld [vmem:[%s2750_s28 + $0x38] ss:$12 sps:$4 sm:$0xff]  }
  0x1f   : > { %2167 = vmatprep.subr.bf16.mxu0 %v2470_v10  ;;  %2343 = vmatprep.subr.bf16.mxu1 %v2470_v10  ;;  %v2511_v46 = vld [vmem:[%s2750_s28 + $0x20] ss:$12 sps:$4 sm:$0xff]   ;;  %v2512_v47 = vld [vmem:[%s2750_s28 + $0x7c] ss:$12 sps:$4 sm:$0xff]   ;;  %v2515_v49 = vld [vmem:[%s2750_s28 + $0x78] ss:$12 sps:$4 sm:$0xff]  }
  0x20   : > { %v2517_v51 = vld [vmem:[%s2750_s28 + $0x94] ss:$12 sps:$4 sm:$0xff]   ;;  %v2520_v53 = vld [vmem:[%s2750_s28 + $0x90] ss:$12 sps:$4 sm:$0xff]   ;;  %v2522_v55 = vld [vmem:[%s2750_s28 + $0xac] ss:$12 sps:$4 sm:$0xff]  }
  0x21   : > { %v2519_v52 = vld [vmem:[%s2750_s28 + $0x68] ss:$12 sps:$4 sm:$0xff]   ;;  %v2521_v54 = vld [vmem:[%s2750_s28 + $0x80] ss:$12 sps:$4 sm:$0xff]   ;;  %v2524_v56 = vld [vmem:[%s2750_s28 + $0x98] ss:$12 sps:$4 sm:$0xff]  }
  0x22   : > { %2168 = vmatpush3.bf16.msra.mxu0 %v2471_v13  ;;  %2351 = vmatpush3.bf16.msra.mxu1 %v2471_v13  ;;  %v2525_v57 = vld [vmem:[%s2750_s28 + $0xa8] ss:$12 sps:$4 sm:$0xff]   ;;  %v2526_v58 = vld [vmem:[%s2750_s28 + $0xb0] ss:$12 sps:$4 sm:$0xff]   ;;  %v2530_v61 = vld [vmem:[%s2750_s28 + $0xc0] ss:$12 sps:$4 sm:$0xff]  }
  0x23   : > { %2169 = vmatprep.subr.bf16.mxu0 %v2472_v14  ;;  %2344 = vmatprep.subr.bf16.mxu1 %v2472_v14  ;;  %v2527_v59 = vld [vmem:[%s2750_s28 + $0xc4] ss:$12 sps:$4 sm:$0xff]   ;;  %v2529_v60 = vld [vmem:[%s2750_s28 + $0xc8] ss:$12 sps:$4 sm:$0xff]   ;;  %v2531_v62 = vld [vmem:[%s2750_s28 + $0xe0] ss:$12 sps:$4 sm:$0xff]  }
  0x24   : > { %v2532_v63 = vld [vmem:[%s2750_s28 + $0xdc] ss:$12 sps:$4 sm:$0xff]   ;;  %v2534_v0 = vld [vmem:[%s2750_s28 + $0xf8] ss:$12 sps:$4 sm:$0xff]   ;;  %v2537_v3 = vld [vmem:[%s2750_s28 + $0xf4] ss:$12 sps:$4 sm:$0xff]  }
  0x25   : > { %v2535_v1 = vld [vmem:[%s2750_s28 + $0xd8] ss:$12 sps:$4 sm:$0xff]   ;;  %v2536_v2 = vld [vmem:[%s2750_s28 + $0x110] ss:$12 sps:$4 sm:$0xff]   ;;  %v2539_v4 = vld [vmem:[%s2750_s28 + $0x128] ss:$12 sps:$4 sm:$0xff]  }
  0x26   : > { %2170 = vmatpush3.bf16.msra.mxu0 %v2473_v15  ;;  %2352 = vmatpush3.bf16.msra.mxu1 %v2473_v15  ;;  %v2540_v5 = vld [vmem:[%s2750_s28 + $0xf0] ss:$12 sps:$4 sm:$0xff]   ;;  %v2541_v6 = vld [vmem:[%s2750_s28 + $0x140] ss:$12 sps:$4 sm:$0xff]   ;;  %v2544_v8 = vld [vmem:[%s2750_s28 + $0x158] ss:$12 sps:$4 sm:$0xff]  }
  0x27   : > { %2171 = vmatprep.subr.bf16.mxu0 %v2474_v16  ;;  %2345 = vmatprep.subr.bf16.mxu1 %v2474_v16  ;;  %v2542_v7 = vld [vmem:[%s2750_s28 + $0x10c] ss:$12 sps:$4 sm:$0xff]   ;;  %v2545_v9 = vld [vmem:[%s2750_s28 + $0x108] ss:$12 sps:$4 sm:$0xff]   ;;  %v2546_v10 = vld [vmem:[%s2750_s28 + $0x170] ss:$12 sps:$4 sm:$0xff]  }
  0x2a   : > { %2172 = vmatpush3.bf16.msra.mxu0 %v2475_v17  ;;  %2353 = vmatpush3.bf16.msra.mxu1 %v2475_v17 }
  0x2b   : > { %2292 = vmatprep.subr.bf16.mxu1 %v2482_v18 }
  0x2d   : > { %895 = vmatmul.mubr.bf16.vlgmr.msra.gmra.mrb[0].mxu0 %v2476_v19  ;;  %991 = vmatmul.mubr.bf16.vlgmr.msra.gmra.mrb[0].mxu1 %v2479_v20 }
  0x2e   : > { %2293 = vmatpush3.bf16.msra.mxu1 %v2482_v18  ;;  %902 = vmatprep.mubr.bf16.mxu0 %v2484_v22 }
  0x2f   : > { %2294 = vmatprep.subr.bf16.mxu1 %v2483_v21  ;;  %998 = vmatprep.mubr.bf16.mxu1 %v2486_v23 }
  0x32   : > { %2295 = vmatpush3.bf16.msra.mxu1 %v2483_v21 }
  0x33   : > { %2296 = vmatprep.subr.bf16.mxu1 %v2490_v25 }
  0x35   : > { %903 = vmatmul.mubr.bf16.gmra.mrb[4].mxu0 %v2488_v24  ;;  %999 = vmatmul.mubr.bf16.gmra.mrb[4].mxu1 %v2489_v26 }
  0x36   : > { %2297 = vmatpush3.bf16.msra.mxu1 %v2490_v25  ;;  %910 = vmatprep.mubr.bf16.mxu0 %v2491_v27 }
  0x37   : > { %1006 = vmatprep.mubr.bf16.mxu1 %v2493_v28  ;;  %2298 = vmatprep.subr.bf16.mxu1 %v2495_v29 }
  0x3a   : > { %2299 = vmatpush3.bf16.msra.mxu1 %v2495_v29 }
  0x3b   : > { %2300 = vmatprep.subr.bf16.mxu1 %v2498_v31 }
  0x3d   : > { %911 = vmatmul.mubr.bf16.gmra.mrb[8].mxu0 %v2496_v30  ;;  %1007 = vmatmul.mubr.bf16.gmra.mrb[8].mxu1 %v2497_v34 }
  0x3e   : > { %2301 = vmatpush3.bf16.msra.mxu1 %v2498_v31  ;;  %918 = vmatprep.mubr.bf16.mxu0 %v2499_v35 }
  0x3f   : > { %1014 = vmatprep.mubr.bf16.mxu1 %v2501_v36  ;;  %2302 = vmatprep.subr.bf16.mxu1 %v2505_v37 }
  0x42   : > { %2303 = vmatpush3.bf16.msra.mxu1 %v2505_v37 }
  0x43   : > { %2304 = vmatprep.subr.bf16.mxu1 %v860_v40 }
  0x45   : > { %919 = vmatmul.mubr.bf16.gmra.mrb[12].mxu0 %v2503_v41  ;;  %1015 = vmatmul.mubr.bf16.gmra.mrb[12].mxu1 %v2504_v42 }
  0x46   : > { %2305 = vmatpush3.bf16.msra.mxu1 %v860_v40  ;;  %926 = vmatprep.mubr.bf16.mxu0 %v2507_v43 }
  0x47   : > { %2306 = vmatprep.mubr.msk.bf16.mxu1 %vm806_vm2, %v2509_v44 }
  0x4d   : > { %927 = vmatmul.mubr.bf16.gmra.mrb[16].mxu0 %v2510_v45  ;;  %2307 = vmatmul.mubr.msk.bf16.vlgmr.msra.gmra.mrb[16].mxu1 %vm806_vm2, %v2511_v46 }
  0x4e   : > { %934 = vmatprep.mubr.bf16.mxu0 %v2512_v47  ;;  %2310 = vmatprep.mubr.msk.bf16.mxu1 %vm806_vm2, %v2514_v48 }
  0x55   : > { %935 = vmatmul.mubr.bf16.gmra.mrb[20].mxu0 %v2515_v49  ;;  %2311 = vmatmul.mubr.msk.bf16.gmra.mrb[20].mxu1 %vm806_vm2, %v2516_v50 }
  0x56   : > { %942 = vmatprep.mubr.bf16.mxu0 %v2517_v51  ;;  %2314 = vmatprep.mubr.msk.bf16.mxu1 %vm806_vm2, %v2519_v52 }
  0x5d   : > { %943 = vmatmul.mubr.bf16.gmra.mrb[24].mxu0 %v2520_v53  ;;  %2315 = vmatmul.mubr.msk.bf16.gmra.mrb[24].mxu1 %vm806_vm2, %v2521_v54 }
  0x5e   : > { %950 = vmatprep.mubr.bf16.mxu0 %v2522_v55  ;;  %2318 = vmatprep.mubr.msk.bf16.mxu1 %vm806_vm2, %v2524_v56 }
  0x65   : > { %951 = vmatmul.mubr.bf16.gmra.mrb[28].mxu0 %v2525_v57  ;;  %2319 = vmatmul.mubr.msk.bf16.gmra.mrb[28].mxu1 %vm806_vm2, %v2526_v58 }
  0x66   : > { %958 = vmatprep.mubr.bf16.mxu0 %v2527_v59  ;;  %2322 = vmatprep.mubr.msk.bf16.mxu1 %vm806_vm2, %v2529_v60 }
  0x6d   : > { %959 = vmatmul.mubr.bf16.gmra.mrb[32].mxu0 %v2530_v61  ;;  %2323 = vmatmul.mubr.msk.bf16.gmra.mrb[32].mxu1 %vm806_vm2, %v2531_v62  ;;  %v2877_v61 = vld [vmem:[%s3086_s2] ss:$0 sm:$0xff] }
  0x6e   : > { %966 = vmatprep.mubr.bf16.mxu0 %v2532_v63  ;;  %2326 = vmatprep.mubr.msk.bf16.mxu1 %vm806_vm2, %v2534_v0 }
  0x75   : > { %967 = vmatmul.mubr.bf16.gmra.mrb[36].mxu0 %v2535_v1  ;;  %2327 = vmatmul.mubr.msk.bf16.gmra.mrb[36].mxu1 %vm806_vm2, %v2536_v2 }
  0x76   : > { %974 = vmatprep.mubr.bf16.mxu0 %v2537_v3  ;;  %2330 = vmatprep.mubr.msk.bf16.mxu1 %vm806_vm2, %v2539_v4 }
  0x7d   : > { %975 = vmatmul.mubr.bf16.gmra.mrb[40].mxu0 %v2540_v5  ;;  %2331 = vmatmul.mubr.msk.bf16.gmra.mrb[40].mxu1 %vm806_vm2, %v2541_v6 }
  0x7e   : > { %982 = vmatprep.mubr.bf16.mxu0 %v2542_v7  ;;  %2334 = vmatprep.mubr.msk.bf16.mxu1 %vm806_vm2, %v2544_v8 }
  0x85   : > { %983 = vmatmul.mubr.bf16.gmra.mrb[44].mxu0 %v2545_v9  ;;  %2335 = vmatmul.mubr.msk.bf16.gmra.mrb[44].mxu1 %vm806_vm2, %v2546_v10 }
 0x100   : > { %v2173_v11 = vpop.f32.mrb[0].mxu0  ;;  %v2245_v12 = vpop.f32.mrb[0].mxu1 }
 0x101   : > { %v2174_v13 = vpop.f32.mrb[1].mxu0  ;;  %v2246_v14 = vpop.f32.mrb[1].mxu1 }
 0x102   : > { %v2175_v15 = vadd.f32 %v2174_v13, %v2173_v11  ;;  %v2858_v16 = vadd.f32 %v2246_v14, %v2245_v12  ;;  %v2176_v17 = vpop.f32.mrb[2].mxu0  ;;  %v2248_v18 = vpop.f32.mrb[2].mxu1 }
 0x103   : > { %v2177_v19 = vpop.f32.mrb[3].mxu0  ;;  %v2249_v20 = vpop.f32.mrb[3].mxu1 }
 0x104   : > { %v2178_v21 = vadd.f32 %v2177_v19, %v2176_v17  ;;  %v2860_v22 = vadd.f32 %v2249_v20, %v2248_v18 }
 0x108   : > { %v2179_v23 = vpop.f32.mrb[4].mxu0  ;;  %v2251_v24 = vpop.f32.mrb[4].mxu1 }
 0x109   : > { %v2180_v25 = vpop.f32.mrb[5].mxu0  ;;  %v2252_v26 = vpop.f32.mrb[5].mxu1 }
 0x10a   : > { %v2181_v27 = vadd.f32 %v2180_v25, %v2179_v23  ;;  %v2862_v28 = vadd.f32 %v2252_v26, %v2251_v24  ;;  %v2182_v29 = vpop.f32.mrb[6].mxu0  ;;  %v2254_v30 = vpop.f32.mrb[6].mxu1 }
 0x10b   : > { %v2183_v31 = vpop.f32.mrb[7].mxu0  ;;  %v2255_v32 = vpop.f32.mrb[7].mxu1 }
 0x10c   : > { %v2184_v33 = vadd.f32 %v2183_v31, %v2182_v29  ;;  %v2864_v34 = vadd.f32 %v2255_v32, %v2254_v30 }
 0x110   : > { %v2185_v35 = vpop.f32.mrb[8].mxu0  ;;  %v2257_v36 = vpop.f32.mrb[8].mxu1 }
 0x111   : > { %v2186_v37 = vpop.f32.mrb[9].mxu0  ;;  %v2258_v38 = vpop.f32.mrb[9].mxu1 }
 0x112   : > { %v2187_v39 = vadd.f32 %v2186_v37, %v2185_v35  ;;  %v2866_v40 = vadd.f32 %v2258_v38, %v2257_v36  ;;  %v2188_v41 = vpop.f32.mrb[10].mxu0  ;;  %v2260_v42 = vpop.f32.mrb[10].mxu1 }
 0x113   : > { %v2189_v43 = vpop.f32.mrb[11].mxu0  ;;  %v2261_v44 = vpop.f32.mrb[11].mxu1 }
 0x114   : > { %v2190_v45 = vadd.f32 %v2189_v43, %v2188_v41  ;;  %v2868_v46 = vadd.f32 %v2261_v44, %v2260_v42 }
 0x118   : > { %v2191_v47 = vpop.f32.mrb[12].mxu0  ;;  %v2263_v48 = vpop.f32.mrb[12].mxu1 }
 0x119   : > { %v2192_v49 = vpop.f32.mrb[13].mxu0  ;;  %v2264_v50 = vpop.f32.mrb[13].mxu1 }
 0x11a   : > { %v2193_v51 = vadd.f32 %v2192_v49, %v2191_v47  ;;  %v2870_v52 = vadd.f32 %v2264_v50, %v2263_v48  ;;  %v2194_v53 = vpop.f32.mrb[14].mxu0  ;;  %v2266_v54 = vpop.f32.mrb[14].mxu1 }
 0x11b   : > { %v2195_v55 = vpop.f32.mrb[15].mxu0  ;;  %v2267_v56 = vpop.f32.mrb[15].mxu1 }
 0x11c   : > { %v2196_v57 = vadd.f32 %v2195_v55, %v2194_v53  ;;  %v2872_v58 = vadd.f32 %v2267_v56, %v2266_v54 }
 0x120   : > { %v2197_v59 = vpop.f32.mrb[16].mxu0  ;;  %v2308_v60 = vpop.f32.mrb[16].mxu1 }
 0x121   : > { %v1066_v62 = vadd.f32 %v2308_v60, %v2181_v27  ;;  %v2198_v63 = vpop.f32.mrb[17].mxu0  ;;  %v1057_v0 = vpop.f32.mrb[17].mxu1 }
 0x122   : > { %v2199_v1 = vadd.f32 %v2198_v63, %v2197_v59  ;;  %v1058_v2 = vadd.f32 %v2175_v15, %v1057_v0  ;;  %v2200_v3 = vpop.f32.mrb[18].mxu0  ;;  %v2309_v4 = vpop.f32.mrb[18].mxu1 }
 0x123   : > { %v1292_v5 = vadd.f32 %v2877_v61, %v1066_v62  ;;  %v1069_v6 = vadd.f32 %v2309_v4, %v2184_v33  ;;  %v2201_v7 = vpop.f32.mrb[19].mxu0  ;;  %v1060_v8 = vpop.f32.mrb[19].mxu1 }
 0x124   : > { %v1290_v9 = vadd.f32 %v2877_v61, %v1058_v2  ;;  %v2202_v10 = vadd.f32 %v2201_v7, %v2200_v3  ;;  %v1061_v11 = vadd.f32 %v2178_v21, %v1060_v8 }
 0x125   : > { %v1293_v12 = vadd.f32 %v2877_v61, %v1069_v6  ;;  %v1324_v14 = vmax.f32 %v1292_v5, 0.0 }
 0x126   : > { %v1291_v13 = vadd.f32 %v2877_v61, %v1061_v11  ;;  %v1322_v15 = vmax.f32 %v1290_v9, 0.0 }
 0x127   : > { %v1325_v17 = vmax.f32 %v1293_v12, 0.0 }
 0x128   : > { %v1323_v18 = vmax.f32 %v1291_v13, 0.0  ;;  %v2203_v19 = vpop.f32.mrb[20].mxu0  ;;  %v2312_v20 = vpop.f32.mrb[20].mxu1 }
 0x129   : > { %v2070_v23 = vpack.c.bf16 %v1325_v17, %v1324_v14  ;;  %v1082_v24 = vadd.f32 %v2312_v20, %v2193_v51  ;;  %v2204_v25 = vpop.f32.mrb[21].mxu0  ;;  %v1073_v26 = vpop.f32.mrb[21].mxu1 }
 0x12a   : > { %v2065_v27 = vpack.c.bf16 %v1323_v18, %v1322_v15  ;;  %v2205_v29 = vadd.f32 %v2204_v25, %v2203_v19  ;;  %v1074_v30 = vadd.f32 %v2187_v39, %v1073_v26  ;;  %v2206_v31 = vpop.f32.mrb[22].mxu0  ;;  %v2313_v21 = vpop.f32.mrb[22].mxu1 }
 0x12b   : > { %2142 = vst [vmem:[%s2884_s12 + $0x8] sm:$0xff] %v2070_v23   ;;  %v1296_v32 = vadd.f32 %v2877_v61, %v1082_v24  ;;  %v1085_v33 = vadd.f32 %v2313_v21, %v2196_v57  ;;  %v2207_v35 = vpop.f32.mrb[23].mxu0  ;;  %v1076_v36 = vpop.f32.mrb[23].mxu1 }
 0x12c   : > { %2066 = vst [vmem:[%s2884_s12] sm:$0xff] %v2065_v27   ;;  %v1294_v37 = vadd.f32 %v2877_v61, %v1074_v30  ;;  %v2208_v38 = vadd.f32 %v2207_v35, %v2206_v31  ;;  %v1077_v41 = vadd.f32 %v2190_v45, %v1076_v36 }
 0x12d   : > { %v1297_v42 = vadd.f32 %v2877_v61, %v1085_v33  ;;  %v1328_v43 = vmax.f32 %v1296_v32, 0.0 }
 0x12e   : > { %v1295_v39 = vadd.f32 %v2877_v61, %v1077_v41  ;;  %v1326_v47 = vmax.f32 %v1294_v37, 0.0 }
 0x12f   : > { %v1329_v44 = vmax.f32 %v1297_v42, 0.0 }
 0x130   : > { %v1327_v48 = vmax.f32 %v1295_v39, 0.0  ;;  %v2209_v49 = vpop.f32.mrb[24].mxu0  ;;  %v2316_v50 = vpop.f32.mrb[24].mxu1 }
 0x131   : > { %v2080_v51 = vpack.c.bf16 %v1329_v44, %v1328_v43  ;;  %v1098_v53 = vadd.f32 %v2316_v50, %v2205_v29  ;;  %v2210_v54 = vpop.f32.mrb[25].mxu0  ;;  %v1089_v55 = vpop.f32.mrb[25].mxu1 }
 0x132   : > { %v2075_v56 = vpack.c.bf16 %v1327_v48, %v1326_v47  ;;  %v2211_v57 = vadd.f32 %v2210_v54, %v2209_v49  ;;  %v1090_v59 = vadd.f32 %v2199_v1, %v1089_v55  ;;  %v2212_v45 = vpop.f32.mrb[26].mxu0  ;;  %v2317_v60 = vpop.f32.mrb[26].mxu1 }
 0x133   : > { %2144 = vst [vmem:[%s2884_s12 + $0x18] sm:$0xff] %v2080_v51   ;;  %v1300_v62 = vadd.f32 %v2877_v61, %v1098_v53  ;;  %v1101_v63 = vadd.f32 %v2317_v60, %v2208_v38  ;;  %v2213_v0 = vpop.f32.mrb[27].mxu0  ;;  %v1092_v2 = vpop.f32.mrb[27].mxu1 }
 0x134   : > { %2143 = vst [vmem:[%s2884_s12 + $0x10] sm:$0xff] %v2075_v56   ;;  %v1298_v3 = vadd.f32 %v2877_v61, %v1090_v59  ;;  %v2214_v4 = vadd.f32 %v2213_v0, %v2212_v45  ;;  %v1093_v5 = vadd.f32 %v2202_v10, %v1092_v2 }
 0x135   : > { %v1301_v6 = vadd.f32 %v2877_v61, %v1101_v63  ;;  %v1332_v8 = vmax.f32 %v1300_v62, 0.0 }
 0x136   : > { %v1299_v7 = vadd.f32 %v2877_v61, %v1093_v5  ;;  %v1330_v9 = vmax.f32 %v1298_v3, 0.0 }
 0x137   : > { %v1333_v1 = vmax.f32 %v1301_v6, 0.0 }
 0x138   : > { %v1331_v11 = vmax.f32 %v1299_v7, 0.0  ;;  %v2215_v12 = vpop.f32.mrb[28].mxu0  ;;  %v2320_v13 = vpop.f32.mrb[28].mxu1 }
 0x139   : > { %v2090_v14 = vpack.c.bf16 %v1333_v1, %v1332_v8  ;;  %v2216_v17 = vpop.f32.mrb[29].mxu0  ;;  %v1105_v15 = vpop.f32.mrb[29].mxu1 }
 0x13a   : > { %v2085_v18 = vpack.c.bf16 %v1331_v11, %v1330_v9  ;;  %v2217_v19 = vadd.f32 %v2216_v17, %v2215_v12  ;;  %v1106_v20 = vadd.f32 %v2211_v57, %v1105_v15  ;;  %v2218_v23 = vpop.f32.mrb[30].mxu0  ;;  %v2321_v10 = vpop.f32.mrb[30].mxu1 }
 0x13b   : > { %2146 = vst [vmem:[%s2884_s12 + $0x28] sm:$0xff] %v2090_v14   ;;  %v2219_v24 = vpop.f32.mrb[31].mxu0  ;;  %v1108_v25 = vpop.f32.mrb[31].mxu1 }
 0x13c   : > { %2145 = vst [vmem:[%s2884_s12 + $0x20] sm:$0xff] %v2085_v18   ;;  %v1114_v26 = vadd.f32 %v2320_v13, %v2217_v19  ;;  %v1302_v27 = vadd.f32 %v2877_v61, %v1106_v20  ;;  %v2220_v29 = vadd.f32 %v2219_v24, %v2218_v23  ;;  %v1109_v30 = vadd.f32 %v2214_v4, %v1108_v25 }
 0x13e   : > { %v1304_v31 = vadd.f32 %v2877_v61, %v1114_v26  ;;  %v1117_v21 = vadd.f32 %v2321_v10, %v2220_v29  ;;  %v1303_v32 = vadd.f32 %v2877_v61, %v1109_v30  ;;  %v1334_v33 = vmax.f32 %v1302_v27, 0.0 }
 0x140   : > { %v1305_v35 = vadd.f32 %v2877_v61, %v1117_v21  ;;  %v1335_v36 = vmax.f32 %v1303_v32, 0.0  ;;  %v2221_v37 = vpop.f32.mrb[32].mxu0  ;;  %v2324_v38 = vpop.f32.mrb[32].mxu1  ;;  %v1336_v39 = vmax.f32 %v1304_v31, 0.0 }
 0x141   : > { %v2222_v41 = vpop.f32.mrb[33].mxu0  ;;  %v1121_v42 = vpop.f32.mrb[33].mxu1 }
 0x142   : > { %v1337_v43 = vmax.f32 %v1305_v35, 0.0  ;;  %v2095_v44 = vpack.c.bf16 %v1335_v36, %v1334_v33  ;;  %v2223_v47 = vadd.f32 %v2222_v41, %v2221_v37  ;;  %v2224_v48 = vpop.f32.mrb[34].mxu0  ;;  %v2325_v49 = vpop.f32.mrb[34].mxu1 }
 0x143   : > { %v2225_v50 = vpop.f32.mrb[35].mxu0  ;;  %v1124_v51 = vpop.f32.mrb[35].mxu1 }
 0x144   : > { %v2100_v53 = vpack.c.bf16 %v1337_v43, %v1336_v39  ;;  %2147 = vst [vmem:[%s2884_s12 + $0x30] sm:$0xff] %v2095_v44   ;;  %v1122_v54 = vadd.f32 %v2223_v47, %v1121_v42  ;;  %v2226_v55 = vadd.f32 %v2225_v50, %v2224_v48 }
 0x146   : > { %2148 = vst [vmem:[%s2884_s12 + $0x38] sm:$0xff] %v2100_v53   ;;  %v1306_v56 = vadd.f32 %v2877_v61, %v1122_v54  ;;  %v1125_v57 = vadd.f32 %v2226_v55, %v1124_v51 }
 0x148   : > { %v1307_v59 = vadd.f32 %v2877_v61, %v1125_v57  ;;  %v2227_v45 = vpop.f32.mrb[36].mxu0  ;;  %v2908_v60 = vpop.f32.mrb[36].mxu1  ;;  %v1338_v0 = vmax.f32 %v1306_v56, 0.0 }
 0x149   : > { %v2228_v62 = vpop.f32.mrb[37].mxu0  ;;  %v1137_v63 = vpop.f32.mrb[37].mxu1 }
 0x14a   : > { %v1339_v2 = vmax.f32 %v1307_v59, 0.0  ;;  %v2229_v3 = vadd.f32 %v2228_v62, %v2227_v45  ;;  %v2230_v4 = vpop.f32.mrb[38].mxu0  ;;  %v2910_v5 = vpop.f32.mrb[38].mxu1 }
 0x14b   : > { %v2231_v6 = vpop.f32.mrb[39].mxu0  ;;  %v1140_v7 = vpop.f32.mrb[39].mxu1 }
 0x14c   : > { %v2105_v8 = vpack.c.bf16 %v1339_v2, %v1338_v0  ;;  %v1130_v1 = vadd.f32 %v2324_v38, %v2229_v3  ;;  %v2232_v9 = vadd.f32 %v2231_v6, %v2230_v4 }
 0x14e   : > { %2149 = vst [vmem:[%s2884_s12 + $0x40] sm:$0xff] %v2105_v8   ;;  %v1308_v11 = vadd.f32 %v2877_v61, %v1130_v1  ;;  %v1133_v12 = vadd.f32 %v2325_v49, %v2232_v9 }
 0x150   : > { %v1309_v13 = vadd.f32 %v2877_v61, %v1133_v12  ;;  %v2233_v14 = vpop.f32.mrb[40].mxu0  ;;  %v2332_v17 = vpop.f32.mrb[40].mxu1  ;;  %v1340_v20 = vmax.f32 %v1308_v11, 0.0 }
 0x151   : > { %v1162_v15 = vadd.f32 %v2332_v17, %v2862_v28  ;;  %v2234_v18 = vpop.f32.mrb[41].mxu0  ;;  %v1153_v19 = vpop.f32.mrb[41].mxu1 }
 0x152   : > { %v1341_v23 = vmax.f32 %v1309_v13, 0.0  ;;  %v2235_v10 = vadd.f32 %v2234_v18, %v2233_v14  ;;  %v1154_v24 = vadd.f32 %v2858_v16, %v1153_v19  ;;  %v2236_v25 = vpop.f32.mrb[42].mxu0  ;;  %v2333_v26 = vpop.f32.mrb[42].mxu1 }
 0x153   : > { %v1316_v27 = vadd.f32 %v2877_v61, %v1162_v15  ;;  %v1165_v29 = vadd.f32 %v2333_v26, %v2864_v34  ;;  %v2237_v30 = vpop.f32.mrb[43].mxu0  ;;  %v1156_v31 = vpop.f32.mrb[43].mxu1 }
 0x154   : > { %v2110_v21 = vpack.c.bf16 %v1341_v23, %v1340_v20  ;;  %v1138_v32 = vadd.f32 %v2235_v10, %v1137_v63  ;;  %v2238_v33 = vadd.f32 %v2237_v30, %v2236_v25  ;;  %v1314_v28 = vadd.f32 %v2877_v61, %v1154_v24 }
 0x155   : > { %v1317_v35 = vadd.f32 %v2877_v61, %v1165_v29  ;;  %v1157_v36 = vadd.f32 %v2860_v22, %v1156_v31  ;;  %v1348_v38 = vmax.f32 %v1316_v27, 0.0 }
 0x156   : > { %2150 = vst [vmem:[%s2884_s12 + $0x48] sm:$0xff] %v2110_v21   ;;  %v1310_v16 = vadd.f32 %v2877_v61, %v1138_v32  ;;  %v1141_v37 = vadd.f32 %v2238_v33, %v1140_v7  ;;  %v1346_v44 = vmax.f32 %v1314_v28, 0.0 }
 0x157   : > { %v1349_v41 = vmax.f32 %v1317_v35, 0.0  ;;  %v1315_v42 = vadd.f32 %v2877_v61, %v1157_v36 }
 0x158   : > { %v1311_v34 = vadd.f32 %v2877_v61, %v1141_v37  ;;  %v2239_v39 = vpop.f32.mrb[44].mxu0  ;;  %v2336_v43 = vpop.f32.mrb[44].mxu1  ;;  %v1342_v51 = vmax.f32 %v1310_v16, 0.0 }
 0x159   : > { %v2130_v47 = vpack.c.bf16 %v1349_v41, %v1348_v38  ;;  %v1347_v48 = vmax.f32 %v1315_v42, 0.0  ;;  %v1178_v49 = vadd.f32 %v2336_v43, %v2870_v52  ;;  %v2240_v50 = vpop.f32.mrb[45].mxu0  ;;  %v1169_v22 = vpop.f32.mrb[45].mxu1 }
 0x15a   : > { %v1343_v53 = vmax.f32 %v1311_v34, 0.0  ;;  %v2241_v54 = vadd.f32 %v2240_v50, %v2239_v39  ;;  %v1170_v55 = vadd.f32 %v2866_v40, %v1169_v22  ;;  %v2242_v56 = vpop.f32.mrb[46].mxu0  ;;  %v2337_v57 = vpop.f32.mrb[46].mxu1 }
 0x15b   : > { %2154 = vst [vmem:[%s2884_s12 + $0x68] sm:$0xff] %v2130_v47   ;;  %v2125_v59 = vpack.c.bf16 %v1347_v48, %v1346_v44  ;;  %v1320_v45 = vadd.f32 %v2877_v61, %v1178_v49  ;;  %v1181_v62 = vadd.f32 %v2337_v57, %v2872_v58  ;;  %v2243_v63 = vpop.f32.mrb[47].mxu0  ;;  %v1172_v0 = vpop.f32.mrb[47].mxu1 }
 0x15c   : > { %v2115_v52 = vpack.c.bf16 %v1343_v53, %v1342_v51  ;;  %v1146_v2 = vadd.f32 %v2908_v60, %v2241_v54  ;;  %v2244_v3 = vadd.f32 %v2243_v63, %v2242_v56  ;;  %v1318_v4 = vadd.f32 %v2877_v61, %v1170_v55 }
 0x15d   : > { %2153 = vst [vmem:[%s2884_s12 + $0x60] sm:$0xff] %v2125_v59   ;;  %v1321_v40 = vadd.f32 %v2877_v61, %v1181_v62  ;;  %v1173_v6 = vadd.f32 %v2868_v46, %v1172_v0  ;;  %v1352_v8 = vmax.f32 %v1320_v45, 0.0 }
 0x15e   : > { %2151 = vst [vmem:[%s2884_s12 + $0x50] sm:$0xff] %v2115_v52   ;;  %v1312_v7 = vadd.f32 %v2877_v61, %v1146_v2  ;;  %v1149_v58 = vadd.f32 %v2910_v5, %v2244_v3  ;;  %v1350_v11 = vmax.f32 %v1318_v4, 0.0 }
 0x15f   : > { %v1353_v1 = vmax.f32 %v1321_v40, 0.0  ;;  %v1319_v60 = vadd.f32 %v2877_v61, %v1173_v6 }
 0x160   : > { %v1313_v9 = vadd.f32 %v2877_v61, %v1149_v58  ;;  %v1344_v14 = vmax.f32 %v1312_v7, 0.0  ;;  %1520 = sbr.rel (!%p2704_p3) target bundleno = 429 (0x1ad), region = 44 }
 0x161   : > { %v2140_v12 = vpack.c.bf16 %v1353_v1, %v1352_v8  ;;  %v1351_v13 = vmax.f32 %v1319_v60, 0.0 }
 0x162   : > { %v1345_v17 = vmax.f32 %v1313_v9, 0.0 }
 0x163   : > { %2156 = vst [vmem:[%s2884_s12 + $0x78] sm:$0xff] %v2140_v12   ;;  %v2135_v46 = vpack.c.bf16 %v1351_v13, %v1350_v11 }
 0x164   : > { %v2120_v15 = vpack.c.bf16 %v1345_v17, %v1344_v14 }
 0x165   : > { %2155 = vst [vmem:[%s2884_s12 + $0x70] sm:$0xff] %v2135_v46  }
 0x166   : > { %2152 = vst [vmem:[%s2884_s12 + $0x58] sm:$0xff] %v2120_v15  }
 0x167   : > { %s3099_s24 = smov (!%p1523_p9, %s1522_s24), 32 }
 0x168   : > { %s2012_s4 = sshll.u32 %s3099_s24, 6 }
 0x169   : > { %p2015_p10 = scmp.eq.s32.totalorder %s2012_s4, 0 }
 0x16a   : > { %s2957_s5 = sshrl.u32 (!%p2015_p10), %s3099_s24, 5 }
 0x16b   : > { %1531 = sbr.rel (%p2015_p10) target bundleno = 429 (0x1ad), region = 48  ;;  %p2016_p11 = scmp.le.s32.totalorder (!%p2015_p10), %s2957_s5, 0 }
 0x172   : > { %1820 = sbr.rel (%p2016_p11) target bundleno = 408 (0x198), region = 123  ;;  %s3089_s14 = smov (!%p2016_p11), %s2951_s30 }
 0x173   : > { %s3090_s20 = smov (!%p2016_p11), %s2884_s12  ;;  %s2966_s25 = smov (!%p2016_p11), 0  }
 0x174   : > { %s2968_s6 = smov (!%p2016_p11), 0  }
 0x179 LB: >> { %v1547_v61 = vld [vmem:[%s2625_s20] sm:$0xf]  ;;  %v1549_v5 = vld [vmem:[%s2625_s20 + $0x4] sm:$0xf]  ;;  %v1551_v18 = vld [vmem:[%s2625_s20 + $0x8] sm:$0xf]  ;;  %s2633_s6 = sphi %s2968_s6, %s1541_s6   ;;  %s2629_s25 = sphi %s2966_s25, %s3091_s25   ;;  %s2625_s20 = sphi %s3090_s20, %s1616_s20   ;;  %s2621_s14 = sphi %s3089_s14, %s1617_s14  }
 0x17a   : >> { %1548 = vst [vmem:[%s2621_s14] sm:$0xf] %v1547_v61  ;;  %1550 = vst [vmem:[%s2621_s14 + $0x4] sm:$0xf] %v1549_v5  ;;  %v1553_v19 = vld [vmem:[%s2625_s20 + $0xc] sm:$0xf]  ;;  %s1611_s7 = sadd.s32 1, %s2629_s25 }
 0x17b   : >> { %1552 = vst [vmem:[%s2621_s14 + $0x8] sm:$0xf] %v1551_v18  ;;  %v1555_v20 = vld [vmem:[%s2625_s20 + $0x10] sm:$0xf]  ;;  %v1557_v23 = vld [vmem:[%s2625_s20 + $0x14] sm:$0xf]  ;;  %p1612_p12 = scmp.ge.s32.totalorder %s1611_s7, %s2957_s5 }
 0x17c   : >> { %1554 = vst [vmem:[%s2621_s14 + $0xc] sm:$0xf] %v1553_v19  ;;  %1556 = vst [vmem:[%s2621_s14 + $0x10] sm:$0xf] %v1555_v20  ;;  %v1559_v10 = vld [vmem:[%s2625_s20 + $0x18] sm:$0xf] }
 0x17d   : >> { %1558 = vst [vmem:[%s2621_s14 + $0x14] sm:$0xf] %v1557_v23  ;;  %v1561_v24 = vld [vmem:[%s2625_s20 + $0x1c] sm:$0xf]  ;;  %v1563_v25 = vld [vmem:[%s2625_s20 + $0x20] sm:$0xf] }
 0x17e   : >> { %1560 = vst [vmem:[%s2621_s14 + $0x18] sm:$0xf] %v1559_v10  ;;  %1562 = vst [vmem:[%s2621_s14 + $0x1c] sm:$0xf] %v1561_v24  ;;  %v1565_v26 = vld [vmem:[%s2625_s20 + $0x24] sm:$0xf] }
 0x17f   : >> { %1564 = vst [vmem:[%s2621_s14 + $0x20] sm:$0xf] %v1563_v25  ;;  %v1567_v27 = vld [vmem:[%s2625_s20 + $0x28] sm:$0xf]  ;;  %v1569_v29 = vld [vmem:[%s2625_s20 + $0x2c] sm:$0xf] }
 0x180   : >> { %1566 = vst [vmem:[%s2621_s14 + $0x24] sm:$0xf] %v1565_v26  ;;  %1568 = vst [vmem:[%s2621_s14 + $0x28] sm:$0xf] %v1567_v27  ;;  %v1571_v30 = vld [vmem:[%s2625_s20 + $0x30] sm:$0xf] }
 0x181   : >> { %1570 = vst [vmem:[%s2621_s14 + $0x2c] sm:$0xf] %v1569_v29  ;;  %v1573_v31 = vld [vmem:[%s2625_s20 + $0x34] sm:$0xf]  ;;  %v1575_v21 = vld [vmem:[%s2625_s20 + $0x38] sm:$0xf] }
 0x182   : >> { %1572 = vst [vmem:[%s2621_s14 + $0x30] sm:$0xf] %v1571_v30  ;;  %1574 = vst [vmem:[%s2621_s14 + $0x34] sm:$0xf] %v1573_v31  ;;  %v1577_v32 = vld [vmem:[%s2625_s20 + $0x3c] sm:$0xf] }
 0x183   : >> { %1576 = vst [vmem:[%s2621_s14 + $0x38] sm:$0xf] %v1575_v21  ;;  %v1579_v33 = vld [vmem:[%s2625_s20 + $0x40] sm:$0xf]  ;;  %v1581_v28 = vld [vmem:[%s2625_s20 + $0x44] sm:$0xf] }
 0x184   : >> { %1578 = vst [vmem:[%s2621_s14 + $0x3c] sm:$0xf] %v1577_v32  ;;  %1580 = vst [vmem:[%s2621_s14 + $0x40] sm:$0xf] %v1579_v33  ;;  %v1583_v35 = vld [vmem:[%s2625_s20 + $0x48] sm:$0xf] }
 0x185   : >> { %1582 = vst [vmem:[%s2621_s14 + $0x44] sm:$0xf] %v1581_v28  ;;  %v1585_v36 = vld [vmem:[%s2625_s20 + $0x4c] sm:$0xf]  ;;  %v1587_v16 = vld [vmem:[%s2625_s20 + $0x50] sm:$0xf] }
 0x186   : >> { %1584 = vst [vmem:[%s2621_s14 + $0x48] sm:$0xf] %v1583_v35  ;;  %1586 = vst [vmem:[%s2621_s14 + $0x4c] sm:$0xf] %v1585_v36  ;;  %v1589_v37 = vld [vmem:[%s2625_s20 + $0x54] sm:$0xf] }
 0x187   : >> { %1588 = vst [vmem:[%s2621_s14 + $0x50] sm:$0xf] %v1587_v16  ;;  %v1591_v38 = vld [vmem:[%s2625_s20 + $0x58] sm:$0xf]  ;;  %v1593_v41 = vld [vmem:[%s2625_s20 + $0x5c] sm:$0xf] }
 0x188   : >> { %1590 = vst [vmem:[%s2621_s14 + $0x54] sm:$0xf] %v1589_v37  ;;  %1592 = vst [vmem:[%s2621_s14 + $0x58] sm:$0xf] %v1591_v38  ;;  %v1595_v42 = vld [vmem:[%s2625_s20 + $0x60] sm:$0xf] }
 0x189   : >> { %1594 = vst [vmem:[%s2621_s14 + $0x5c] sm:$0xf] %v1593_v41  ;;  %v1597_v34 = vld [vmem:[%s2625_s20 + $0x64] sm:$0xf]  ;;  %v1599_v39 = vld [vmem:[%s2625_s20 + $0x68] sm:$0xf] }
 0x18a   : >> { %1596 = vst [vmem:[%s2621_s14 + $0x60] sm:$0xf] %v1595_v42  ;;  %1598 = vst [vmem:[%s2621_s14 + $0x64] sm:$0xf] %v1597_v34  ;;  %v1601_v43 = vld [vmem:[%s2625_s20 + $0x6c] sm:$0xf] }
 0x18b   : >> { %1600 = vst [vmem:[%s2621_s14 + $0x68] sm:$0xf] %v1599_v39  ;;  %v1603_v44 = vld [vmem:[%s2625_s20 + $0x70] sm:$0xf]  ;;  %v1605_v47 = vld [vmem:[%s2625_s20 + $0x74] sm:$0xf] }
 0x18c   : >> { %1602 = vst [vmem:[%s2621_s14 + $0x6c] sm:$0xf] %v1601_v43  ;;  %1604 = vst [vmem:[%s2621_s14 + $0x70] sm:$0xf] %v1603_v44  ;;  %v1607_v48 = vld [vmem:[%s2625_s20 + $0x78] sm:$0xf] }
 0x18d   : >> { %1606 = vst [vmem:[%s2621_s14 + $0x74] sm:$0xf] %v1605_v47  ;;  %v1609_v49 = vld [vmem:[%s2625_s20 + $0x7c] sm:$0xf]  ;;  %1608 = vst [vmem:[%s2621_s14 + $0x78] sm:$0xf] %v1607_v48 }
 0x18e   : >> { %1610 = vst [vmem:[%s2621_s14 + $0x7c] sm:$0xf] %v1609_v49  ;;  %s3101_s7 = smov (%p1612_p12, %s1611_s7), 0  ;;  %s1541_s6 = sadd.s32 1, %s2633_s6  }
 0x18f   : >> { %s2017_s8 = sshll.u32 %s3101_s7, 7  ;;  %p1540_p13 = scmp.ge.s32.totalorder %s1541_s6, %s2957_s5 }
 0x190   : >> { %s1616_s20 = scalar_lea.vmem %s2884_s12, %s2017_s8 [#allocation3]   ;;  %s1617_s14 = scalar_lea.vmem %s2951_s30, %s2017_s8  }
 0x191   : >> { %s3091_s25 = smov %s3101_s7  ;;  %1543 = sbr.rel (!%p1540_p13) target bundleno = 377 (0x179), region = 129 }
 0x198 PF: > { %s3061_s9 = sand.u32 31, %s3099_s24   ;;  %s2060_s10 = sshll.u32 %s2957_s5, 7 }
 0x199   : > { %s1622_s11 = scalar_lea.vmem %s2884_s12, %s2060_s10 [#allocation3]   ;;  %s1624_s17 = scalar_lea.vmem %s2951_s30, %s2060_s10  }
 0x19a   : > { %p2022_p0 = scmp.le.s32.totalorder %s3061_s9, 0 }
 0x19b   : > { %s2635_s28 = smov (!%p2022_p0), %s1624_s17   ;;  %s2639_s19 = smov (!%p2022_p0), %s1622_s11  }
 0x19c   : > { %1834 = sbr.rel (%p2022_p0) target bundleno = 429 (0x1ad), region = 134  ;;  %s2643_s21 = smov (!%p2022_p0), 0  }
 0x19d   : > { %s2647_s23 = smov (!%p2022_p0), 0  }
 0x1a3 LB: >> { %v1634_v50 = vld [vmem:[%s2641_s19] sm:$0xf]  ;;  %s1636_s24 = sadd.s32 1, %s2645_s21  ;;  %s1628_s23 = sadd.s32 1, %s2649_s23   ;;  %s2649_s23 = sphi %s2647_s23, %s1628_s23   ;;  %s2645_s21 = sphi %s2643_s21, %s2644_s21   ;;  %s2641_s19 = sphi %s2639_s19, %s1641_s19   ;;  %s2637_s28 = sphi %s2635_s28, %s1642_s28  }
 0x1a4   : >> { %1635 = vst [vmem:[%s2637_s28] sm:$0xf] %v1634_v50  ;;  %p1637_p1 = scmp.ge.s32.totalorder %s1636_s24, %s3061_s9  ;;  %p1627_p2 = scmp.ge.s32.totalorder %s1628_s23, %s3061_s9 }
 0x1a6   : >> { %s3103_s24 = smov (%p1637_p1, %s1636_s24), 0  ;;  %1630 = sbr.rel (!%p1627_p2) target bundleno = 419 (0x1a3), region = 140 }
 0x1a7   : >> { %s2023_s12 = sshll.u32 %s3103_s24, 2  ;;  %s2644_s21 = smov %s3103_s24  }
 0x1a8   : >> { %s1641_s19 = scalar_lea.vmem %s1622_s11, %s2023_s12 [#allocation3]   ;;  %s1642_s28 = scalar_lea.vmem %s1624_s17, %s2023_s12  }
 0x1ad PF: > { %s13_s16 = sadd.s32 1, %s2617_s16   ;;  %s3092_s12 = smov %s2605_s13 }
 0x1ae   : > { %p10_p3 = scmp.ge.s32.totalorder %s13_s16, 4   ;;  %s3093_s13 = smov %s2713_s22 }
 0x1af   : > { %s3094_s14 = smov %s2613_s15  ;;  %s3095_s15 = smov %s3097_s18 }
 0x1b0   :  { %12 = sbr.rel (!%p10_p3) target bundleno = 3 (0x3), region = 151 }

// kernel: forward.10
= control target key start
LH: loop header
LB: loop body
LE: loop exit
PB: predicated region body
PF: predicated region fallthrough
CT: control target
= control target key end

     0   :  { %s556_s9 = smov 0   ;;  %s695_s0 = inlined_call_operand.vmem [shape: bf16[2,15,8,128], index: 0, kind: input, shape index: {}]   ;;  %s696_s1 = inlined_call_operand.vmem [shape: bf16[2,15,7,128], index: 1, kind: input, shape index: {}]   ;;  %s697_s2 = inlined_call_operand.vmem [shape: bf16[2,7,7,128], index: 2, kind: output, shape index: {}]  }
   0x1 LB: > { %s501_s10 = sadd.s32 4294967295, %s539_s9   ;;  %p505_p0 = scmp.ge.s32.totalorder %s539_s9, 1  ;;  %s539_s9 = sphi %s556_s9, %s12_s9  }
   0x2   : > { %p122_p1 = scmp.lt.s32.totalorder %s539_s9, 3 }
   0x4   : > { %p123_p2 = pnand %p505_p0, %p122_p1 }
   0x5   : > { %p149_p3 = scmp.lt.s32.totalorder (!%p123_p2), %s501_s10, 1  ;;  %vm375_vm0 = vcmask (!%p123_p2), 1043456   ;;  %vm376_vm1 = vsmask.f32 (!%p123_p2), 3328 }
   0x6   : > { %126 = sbr.rel (%p123_p2) target bundleno = 66 (0x42), region = 28  ;;  %vm594_vm2 = vmand (!%p123_p2), %vm375_vm0, %vm376_vm1 }
   0xd   : > { %s701_s10 = smov (!%p149_p3, %s501_s10), 1 }
   0xe   : > { %s523_s11 = smul.u32 60, %s701_s10 }
   0xf   : > { %s524_s18 = smul.u32 28, %s701_s10 }
  0x10   : > { %s570_s14 = scalar_lea.vmem %s695_s0, %s523_s11  ;;  %s575_s17 = scalar_lea.vmem %s696_s1, %s523_s11 }
  0x11   : > { %v165_v0 = vld [vmem:[%s570_s14] sm:$0xf]  ;;  %v166_v1 = vld [vmem:[%s570_s14 + $0x4] sm:$0xf]  ;;  %v167_v2 = vld [vmem:[%s570_s14 + $0x8] sm:$0xf]  ;;  %s602_s21 = scalar_lea.vmem %s697_s2, %s524_s18 }
  0x12   : > { %v180_v3 = vld [vmem:[%s575_s17] sm:$0xf]  ;;  %v181_v4 = vld [vmem:[%s575_s17 + $0x4] sm:$0xf]  ;;  %v182_v5 = vld [vmem:[%s575_s17 + $0x8] sm:$0xf] }
  0x13   : > { %v211_v6 = vshrl.u32 %v165_v0, 16  ;;  %v214_v7 = vshll.u32 %v165_v0, 16  ;;  %v220_v8 = vshrl.u32 %v166_v1, 16  ;;  %v223_v9 = vshll.u32 %v166_v1, 16  ;;  %v168_v11 = vld [vmem:[%s570_s14 + $0xc] sm:$0xf] }
  0x14   : > { %v229_v10 = vshrl.u32 %v167_v2, 16  ;;  %v195_v12 = vmax.bf16 %v180_v3, %v165_v0  ;;  %v232_v14 = vshll.u32 %v167_v2, 16  ;;  %v169_v15 = vld [vmem:[%s570_s14 + $0x10] sm:$0xf]  ;;  %v183_v20 = vld [vmem:[%s575_s17 + $0xc] sm:$0xf]  ;;  %v196_v21 = vmax.bf16 %v181_v4, %v166_v1 }
  0x15   : > { %v213_v13 = vrot.slane %v211_v6, 4  ;;  %v216_v16 = vrot.slane %v214_v7, 5  ;;  %v222_v17 = vrot.slane %v220_v8, 4  ;;  %v225_v18 = vrot.slane %v223_v9, 5  ;;  %v184_v27 = vld [vmem:[%s575_s17 + $0x10] sm:$0xf] }
  0x16   : > { %v231_v19 = vrot.slane %v229_v10, 4  ;;  %v197_v22 = vmax.bf16 %v182_v5, %v167_v2  ;;  %v234_v23 = vrot.slane %v232_v14, 5  ;;  %v238_v24 = vshrl.u32 %v168_v11, 16  ;;  %v170_v30 = vld [vmem:[%s570_s14 + $0x14] sm:$0xf] }
  0x17   : > { %v217_v25 = vor.u32 %v216_v16, %v213_v13  ;;  %v226_v26 = vor.u32 %v225_v18, %v222_v17  ;;  %v241_v28 = vshll.u32 %v168_v11, 16  ;;  %v247_v29 = vshrl.u32 %v169_v15, 16  ;;  %v590_v39 = vld [vmem:[%s570_s14 + $0x18] sm:$0xf]  ;;  %v185_v48 = vld [vmem:[%s575_s17 + $0x14] sm:$0xf] }
  0x18   : > { %v235_v31 = vor.u32 %v234_v23, %v231_v19  ;;  %v198_v32 = vmax.bf16 %v183_v20, %v168_v11  ;;  %v240_v33 = vrot.slane %v238_v24, 4  ;;  %v250_v34 = vshll.u32 %v169_v15, 16  ;;  %v186_v52 = vld [vmem:[%s575_s17 + $0x18] sm:$0xf]  ;;  %v607_v55 = vld [vmem:[%s570_s14 + $0x1c] sm:$0xf] }
  0x19   : > { %v218_v35 = vrot.slane %v217_v25, 4  ;;  %v227_v36 = vrot.slane %v226_v26, 4  ;;  %v243_v37 = vrot.slane %v241_v28, 5  ;;  %v249_v38 = vrot.slane %v247_v29, 4  ;;  %v383_v0 = vld [vmem:[%s602_s21] sm:$0xf] }
  0x1a   : > { %v236_v40 = vrot.slane %v235_v31, 4  ;;  %v199_v42 = vmax.bf16 %v184_v27, %v169_v15  ;;  %v252_v43 = vrot.slane %v250_v34, 5  ;;  %v256_v44 = vshrl.u32 %v170_v30, 16  ;;  %v618_v5 = vld [vmem:[%s570_s14 + $0x20] sm:$0xf] }
  0x1b   : > { %v360_v45 = vmax.bf16 %v218_v35, %v195_v12  ;;  %v361_v46 = vmax.bf16 %v227_v36, %v196_v21  ;;  %v244_v47 = vor.u32 %v243_v37, %v240_v33  ;;  %v259_v49 = vshll.u32 %v170_v30, 16  ;;  %v187_v9 = vld [vmem:[%s575_s17 + $0x1c] sm:$0xf]  ;;  %v188_v10 = vld [vmem:[%s575_s17 + $0x20] sm:$0xf] }
  0x1c   : > { %v362_v50 = vmax.bf16 %v236_v40, %v197_v22  ;;  %v253_v51 = vor.u32 %v252_v43, %v249_v38  ;;  %v258_v53 = vrot.slane %v256_v44, 4  ;;  %v265_v54 = vshrl.u32 %v590_v39, 16  ;;  %v509_v20 = vld [vmem:[%s602_s21 + $0x4] sm:$0xf]  ;;  %v190_v43 = vld [vmem:[%s575_s17 + $0x28] sm:$0xf] }
  0x1d   : > { %v378_v56 = vsel %vm594_vm2, %v360_v45, 4286644096  ;;  %v379_v57 = vsel %vm594_vm2, %v361_v46, 4286644096  ;;  %v245_v58 = vrot.slane %v244_v47, 4  ;;  %v261_v59 = vrot.slane %v259_v49, 5 }
  0x1e   : > { %v380_v60 = vsel %vm594_vm2, %v362_v50, 4286644096  ;;  %v381_v61 = vmax.bf16 %v379_v57, %v378_v56  ;;  %v254_v62 = vrot.slane %v253_v51, 4  ;;  %v200_v63 = vmax.bf16 %v185_v48, %v170_v30  ;;  %v174_v25 = vld [vmem:[%s570_s14 + $0x24] sm:$0xf] }
  0x1f   : > { %v363_v1 = vmax.bf16 %v245_v58, %v198_v32  ;;  %v262_v2 = vor.u32 %v261_v59, %v258_v53  ;;  %v267_v3 = vrot.slane %v265_v54, 4  ;;  %v268_v4 = vshll.u32 %v590_v39, 16  ;;  %v175_v30 = vld [vmem:[%s570_s14 + $0x28] sm:$0xf]  ;;  %v189_v35 = vld [vmem:[%s575_s17 + $0x24] sm:$0xf] }
  0x20   : > { %v382_v6 = vmax.bf16 %v381_v61, %v380_v60  ;;  %v364_v7 = vmax.bf16 %v254_v62, %v199_v42  ;;  %v201_v8 = vmax.bf16 %v186_v52, %v590_v39  ;;  %v274_v11 = vshrl.u32 %v607_v55, 16  ;;  %v176_v50 = vld [vmem:[%s570_s14 + $0x2c] sm:$0xf]  ;;  %v511_v52 = vld [vmem:[%s602_s21 + $0x8] sm:$0xf] }
  0x21   : > { %v386_v12 = vsel %vm594_vm2, %v363_v1, 4286644096  ;;  %v263_v13 = vrot.slane %v262_v2, 4  ;;  %v270_v14 = vrot.slane %v268_v4, 5  ;;  %v277_v15 = vshll.u32 %v607_v55, 16 }
  0x22   : > { %v384_v16 = vsel %vm594_vm2, %v382_v6, %v383_v0  ;;  %v387_v17 = vsel %vm594_vm2, %v364_v7, 4286644096  ;;  %v388_v18 = vmax.bf16 %v386_v12, %v380_v60  ;;  %v276_v19 = vrot.slane %v274_v11, 4  ;;  %v177_v60 = vld [vmem:[%s570_s14 + $0x30] sm:$0xf] }
  0x23   : > { %385 = vst [vmem:[%s602_s21] sm:$0xf] %v384_v16  ;;  %v271_v21 = vor.u32 %v270_v14, %v267_v3  ;;  %v365_v22 = vmax.bf16 %v263_v13, %v200_v63  ;;  %v279_v23 = vrot.slane %v277_v15, 5  ;;  %v283_v24 = vshrl.u32 %v618_v5, 16  ;;  %v191_v63 = vld [vmem:[%s575_s17 + $0x2c] sm:$0xf] }
  0x24   : > { %v389_v26 = vmax.bf16 %v388_v18, %v387_v17  ;;  %v202_v27 = vmax.bf16 %v187_v9, %v607_v55  ;;  %v203_v28 = vmax.bf16 %v188_v10, %v618_v5  ;;  %v286_v29 = vshll.u32 %v618_v5, 16  ;;  %v192_v6 = vld [vmem:[%s575_s17 + $0x30] sm:$0xf]  ;;  %v178_v11 = vld [vmem:[%s570_s14 + $0x34] sm:$0xf] }
  0x25   : > { %v272_v31 = vrot.slane %v271_v21, 4  ;;  %v394_v32 = vsel %vm594_vm2, %v365_v22, 4286644096  ;;  %v280_v33 = vor.u32 %v279_v23, %v276_v19  ;;  %v285_v34 = vrot.slane %v283_v24, 4  ;;  %v513_v13 = vld [vmem:[%s602_s21 + $0xc] sm:$0xf] }
  0x26   : > { %v392_v36 = vsel %vm594_vm2, %v389_v26, %v509_v20  ;;  %v396_v37 = vmax.bf16 %v394_v32, %v387_v17  ;;  %v288_v38 = vrot.slane %v286_v29, 5  ;;  %v292_v39 = vshrl.u32 %v174_v25, 16  ;;  %v179_v24 = vld [vmem:[%s570_s14 + $0x38] sm:$0xf]  ;;  %v193_v29 = vld [vmem:[%s575_s17 + $0x34] sm:$0xf] }
  0x27   : > { %510 = vst [vmem:[%s602_s21 + $0x4] sm:$0xf] %v392_v36  ;;  %v366_v40 = vmax.bf16 %v272_v31, %v201_v8  ;;  %v281_v42 = vrot.slane %v280_v33, 4  ;;  %v295_v44 = vshll.u32 %v174_v25, 16  ;;  %v301_v45 = vshrl.u32 %v175_v30, 16 }
  0x28   : > { %v289_v46 = vor.u32 %v288_v38, %v285_v34  ;;  %v204_v47 = vmax.bf16 %v189_v35, %v174_v25  ;;  %v294_v48 = vrot.slane %v292_v39, 4  ;;  %v304_v49 = vshll.u32 %v175_v30, 16  ;;  %v515_v35 = vld [vmem:[%s602_s21 + $0x10] sm:$0xf] }
  0x29   : > { %v395_v51 = vsel %vm594_vm2, %v366_v40, 4286644096  ;;  %v367_v53 = vmax.bf16 %v281_v42, %v202_v27  ;;  %v297_v54 = vrot.slane %v295_v44, 5  ;;  %v303_v55 = vrot.slane %v301_v45, 4 }
  0x2a   : > { %v397_v56 = vmax.bf16 %v396_v37, %v395_v51  ;;  %v290_v57 = vrot.slane %v289_v46, 4  ;;  %v205_v58 = vmax.bf16 %v190_v43, %v175_v30  ;;  %v306_v59 = vrot.slane %v304_v49, 5  ;;  %v194_v43 = vld [vmem:[%s575_s17 + $0x38] sm:$0xf] }
  0x2b   : > { %v402_v61 = vsel %vm594_vm2, %v367_v53, 4286644096  ;;  %v298_v62 = vor.u32 %v297_v54, %v294_v48  ;;  %v310_v0 = vshrl.u32 %v176_v50, 16  ;;  %v313_v1 = vshll.u32 %v176_v50, 16 }
  0x2c   : > { %v400_v2 = vsel %vm594_vm2, %v397_v56, %v511_v52  ;;  %v368_v3 = vmax.bf16 %v290_v57, %v203_v28  ;;  %v404_v4 = vmax.bf16 %v402_v61, %v395_v51  ;;  %v307_v5 = vor.u32 %v306_v59, %v303_v55  ;;  %v517_v56 = vld [vmem:[%s602_s21 + $0x14] sm:$0xf] }
  0x2d   : > { %512 = vst [vmem:[%s602_s21 + $0x8] sm:$0xf] %v400_v2  ;;  %v299_v7 = vrot.slane %v298_v62, 4  ;;  %v312_v8 = vrot.slane %v310_v0, 4  ;;  %v315_v9 = vrot.slane %v313_v1, 5  ;;  %v319_v10 = vshrl.u32 %v177_v60, 16 }
  0x2e   : > { %v403_v12 = vsel %vm594_vm2, %v368_v3, 4286644096  ;;  %v308_v14 = vrot.slane %v307_v5, 4  ;;  %v206_v15 = vmax.bf16 %v191_v63, %v176_v50  ;;  %v322_v16 = vshll.u32 %v177_v60, 16  ;;  %v519_v1 = vld [vmem:[%s602_s21 + $0x18] sm:$0xf] }
  0x2f   : > { %v405_v17 = vmax.bf16 %v404_v4, %v403_v12  ;;  %v369_v18 = vmax.bf16 %v299_v7, %v204_v47  ;;  %v316_v19 = vor.u32 %v315_v9, %v312_v8  ;;  %v321_v20 = vrot.slane %v319_v10, 4 }
  0x30   : > { %v370_v21 = vmax.bf16 %v308_v14, %v205_v58  ;;  %v207_v22 = vmax.bf16 %v192_v6, %v177_v60  ;;  %v324_v23 = vrot.slane %v322_v16, 5  ;;  %v328_v25 = vshrl.u32 %v178_v11, 16 }
  0x31   : > { %v408_v26 = vsel %vm594_vm2, %v405_v17, %v513_v13  ;;  %v410_v27 = vsel %vm594_vm2, %v369_v18, 4286644096  ;;  %v317_v28 = vrot.slane %v316_v19, 4  ;;  %v331_v30 = vshll.u32 %v178_v11, 16 }
  0x32   : > { %514 = vst [vmem:[%s602_s21 + $0xc] sm:$0xf] %v408_v26  ;;  %v411_v31 = vsel %vm594_vm2, %v370_v21, 4286644096  ;;  %v412_v32 = vmax.bf16 %v410_v27, %v403_v12  ;;  %v325_v33 = vor.u32 %v324_v23, %v321_v20  ;;  %v330_v34 = vrot.slane %v328_v25, 4 }
  0x33   : > { %v371_v36 = vmax.bf16 %v317_v28, %v206_v15  ;;  %v333_v37 = vrot.slane %v331_v30, 5  ;;  %v337_v38 = vshrl.u32 %v179_v24, 16  ;;  %v340_v39 = vshll.u32 %v179_v24, 16 }
  0x34   : > { %v413_v40 = vmax.bf16 %v412_v32, %v411_v31  ;;  %v326_v42 = vrot.slane %v325_v33, 4  ;;  %v208_v44 = vmax.bf16 %v193_v29, %v178_v11  ;;  %v209_v52 = vmax.bf16 %v194_v43, %v179_v24 }
  0x35   : > { %v418_v45 = vsel %vm594_vm2, %v371_v36, 4286644096  ;;  %v334_v46 = vor.u32 %v333_v37, %v330_v34  ;;  %v339_v47 = vrot.slane %v337_v38, 4  ;;  %v342_v48 = vrot.slane %v340_v39, 5 }
  0x36   : > { %v416_v49 = vsel %vm594_vm2, %v413_v40, %v515_v35  ;;  %v372_v50 = vmax.bf16 %v326_v42, %v207_v22  ;;  %v420_v51 = vmax.bf16 %v418_v45, %v411_v31 }
  0x37   : > { %516 = vst [vmem:[%s602_s21 + $0x10] sm:$0xf] %v416_v49  ;;  %v335_v53 = vrot.slane %v334_v46, 4  ;;  %v343_v54 = vor.u32 %v342_v48, %v339_v47 }
  0x38   : > { %v419_v55 = vsel %vm594_vm2, %v372_v50, 4286644096 }
  0x39   : > { %v421_v57 = vmax.bf16 %v420_v51, %v419_v55  ;;  %v344_v58 = vrot.slane %v343_v54, 4  ;;  %v373_v59 = vmax.bf16 %v335_v53, %v208_v44 }
  0x3b   : > { %v424_v60 = vsel %vm594_vm2, %v421_v57, %v517_v56  ;;  %v374_v61 = vmax.bf16 %v344_v58, %v209_v52  ;;  %v426_v62 = vsel %vm594_vm2, %v373_v59, 4286644096 }
  0x3c   : > { %518 = vst [vmem:[%s602_s21 + $0x14] sm:$0xf] %v424_v60  ;;  %v428_v63 = vmax.bf16 %v426_v62, %v419_v55 }
  0x3d   : > { %v427_v0 = vsel %vm594_vm2, %v374_v61, 4286644096 }
  0x3e   : > { %v429_v2 = vmax.bf16 %v428_v63, %v427_v0 }
  0x40   : > { %v432_v3 = vsel %vm594_vm2, %v429_v2, %v519_v1 }
  0x41   : > { %520 = vst [vmem:[%s602_s21 + $0x18] sm:$0xf] %v432_v3 }
  0x42 PF: > { %s12_s9 = sadd.s32 1, %s539_s9  }
  0x43   : > { %p9_p4 = scmp.ge.s32.totalorder %s12_s9, 4  }
  0x45   :  { %11 = sbr.rel (!%p9_p4) target bundleno = 1 (0x1), region = 67 }

// kernel: forward.11
= control target key start
LH: loop header
LB: loop body
LE: loop exit
PB: predicated region body
PF: predicated region fallthrough
CT: control target
= control target key end

     0   :  { %s1937_s12 = smov 0   ;;  %s1939_s13 = smov 0   ;;  %s2230_s0 = inlined_call_operand.vmem [shape: bf16[98,3200], index: 0, kind: input, shape index: {}]   ;;  %s2231_s1 = inlined_call_operand.vmem [shape: bf16[3200,128], index: 1, kind: input, shape index: {}]   ;;  %s2232_s2 = inlined_call_operand.vmem [shape: f32[1,128], index: 2, kind: input, shape index: {}]   ;;  %s2233_s3 = inlined_call_operand.vmem [shape: bf16[98,128], index: 3, kind: output, shape index: {}]  }
   0x1   :  { %s1941_s14 = smov 0   ;;  %s1943_s15 = smov 0  }
   0x2   :  { %s1945_s16 = smov 0  }
   0x3 LB: > { %s22_s17 = sadd.s32 1, %s1908_s15  ;;  %p41_p1 = scmp.ne.s32.totalorder %s1900_s13, %s1896_s12  ;;  %s1912_s16 = sphi %s1945_s16, %s13_s16   ;;  %s1908_s15 = sphi %s1943_s15, %s2237_s15   ;;  %s1904_s14 = sphi %s1941_s14, %s2236_s14   ;;  %s1900_s13 = sphi %s1939_s13, %s2235_s13   ;;  %s1896_s12 = sphi %s1937_s12, %s2234_s12  }
   0x4   : > { %p23_p0 = scmp.ge.s32.totalorder %s22_s17, 5  ;;  %p42_p2 = scmp.eq.s32.totalorder %s1912_s16, 0 }
   0x5   : > { %s34_s19 = sadd.s32 1, %s1900_s13  ;;  %p1377_p5 = scmp.ge.s32.totalorder %s1912_s16, 5 }
   0x6   : > { %s2239_s17 = smov (%p23_p0, %s22_s17), 0  ;;  %p43_p3 = por %p42_p2, %p41_p1 }
   0x7   : > { %s30_s18 = ssub.s32 %s1908_s15, %s2239_s17  ;;  %143 = sbr.rel (%p1377_p5) target bundleno = 40 (0x28), region = 20 }
   0x8   : > { %p32_p4 = scmp.eq.s32.totalorder %s30_s18, 0 }
   0xa   : > { %s1972_s20 = scalar_select %p32_p4, %s1900_s13, %s34_s19  }
   0xe   : > { %146 = sbr.rel (!%p43_p3) target bundleno = 40 (0x28), region = 24  ;;  %s148_s21 = sand.u32 (%p43_p3), 1, %s1900_s13  }
   0xf   : > { %s1502_s22 = smul.u32 (%p43_p3), 20, %s1908_s15 }
  0x10   : > { %s1742_s23 = smul.u32 (%p43_p3), 260, %s148_s21 }
  0x11   : > { %s1980_s26 = scalar_lea.vmem (%p43_p3), %s2230_s0, %s1502_s22 }
  0x12   : > { %v171_v0 = vld [vmem:[%s1980_s26] sm:$0xff] (%p43_p3)  ;;  %v173_v1 = vld [vmem:[%s1980_s26 + $0x8] sm:$0xff] (%p43_p3)  ;;  %s1985_s27 = scalar_lea.vmem (%p43_p3), [#allocation3], %s1742_s23  ;;  %v181_v5 = vld [vmem:[%s1980_s26 + $0xd0] sm:$0xff] (%p43_p3) }
  0x13   : > { %v175_v2 = vld [vmem:[%s1980_s26 + $0x64] sm:$0xff] (%p43_p3)  ;;  %172 = vst [vmem:[%s1985_s27] sm:$0xff] (%p43_p3), %v171_v0  ;;  %174 = vst [vmem:[%s1985_s27 + $0x8] sm:$0xff] (%p43_p3), %v173_v1  ;;  %v177_v3 = vld [vmem:[%s1980_s26 + $0x6c] sm:$0xff] (%p43_p3) }
  0x14   : > { %176 = vst [vmem:[%s1985_s27 + $0x14] sm:$0xff] (%p43_p3), %v175_v2  ;;  %v179_v4 = vld [vmem:[%s1980_s26 + $0xc8] sm:$0xff] (%p43_p3)  ;;  %178 = vst [vmem:[%s1985_s27 + $0x1c] sm:$0xff] (%p43_p3), %v177_v3  ;;  %v185_v7 = vld [vmem:[%s1980_s26 + $0x134] sm:$0xff] (%p43_p3) }
  0x15   : > { %180 = vst [vmem:[%s1985_s27 + $0x28] sm:$0xff] %v179_v4  ;;  %182 = vst [vmem:[%s1985_s27 + $0x30] sm:$0xff] %v181_v5  ;;  %v183_v6 = vld [vmem:[%s1980_s26 + $0x12c] sm:$0xff]  ;;  %v189_v9 = vld [vmem:[%s1980_s26 + $0x198] sm:$0xff] }
  0x16   : > { %v187_v8 = vld [vmem:[%s1980_s26 + $0x190] sm:$0xff]  ;;  %184 = vst [vmem:[%s1985_s27 + $0x3c] sm:$0xff] %v183_v6  ;;  %186 = vst [vmem:[%s1985_s27 + $0x44] sm:$0xff] %v185_v7  ;;  %v193_v11 = vld [vmem:[%s1980_s26 + $0x1fc] sm:$0xff] }
  0x17   : > { %188 = vst [vmem:[%s1985_s27 + $0x50] sm:$0xff] %v187_v8  ;;  %v191_v10 = vld [vmem:[%s1980_s26 + $0x1f4] sm:$0xff]  ;;  %190 = vst [vmem:[%s1985_s27 + $0x58] sm:$0xff] %v189_v9  ;;  %v197_v13 = vld [vmem:[%s1980_s26 + $0x260] sm:$0xff] }
  0x18   : > { %192 = vst [vmem:[%s1985_s27 + $0x64] sm:$0xff] %v191_v10  ;;  %194 = vst [vmem:[%s1985_s27 + $0x6c] sm:$0xff] %v193_v11  ;;  %v195_v12 = vld [vmem:[%s1980_s26 + $0x258] sm:$0xff]  ;;  %v201_v15 = vld [vmem:[%s1980_s26 + $0x2c4] sm:$0xff] }
  0x19   : > { %v199_v14 = vld [vmem:[%s1980_s26 + $0x2bc] sm:$0xff]  ;;  %196 = vst [vmem:[%s1985_s27 + $0x78] sm:$0xff] %v195_v12  ;;  %198 = vst [vmem:[%s1985_s27 + $0x80] sm:$0xff] %v197_v13  ;;  %v205_v17 = vld [vmem:[%s1980_s26 + $0x328] sm:$0xff] }
  0x1a   : > { %200 = vst [vmem:[%s1985_s27 + $0x8c] sm:$0xff] %v199_v14  ;;  %v203_v16 = vld [vmem:[%s1980_s26 + $0x320] sm:$0xff]  ;;  %202 = vst [vmem:[%s1985_s27 + $0x94] sm:$0xff] %v201_v15  ;;  %v209_v19 = vld [vmem:[%s1980_s26 + $0x38c] sm:$0xff] }
  0x1b   : > { %204 = vst [vmem:[%s1985_s27 + $0xa0] sm:$0xff] %v203_v16  ;;  %206 = vst [vmem:[%s1985_s27 + $0xa8] sm:$0xff] %v205_v17  ;;  %v207_v18 = vld [vmem:[%s1980_s26 + $0x384] sm:$0xff]  ;;  %v213_v21 = vld [vmem:[%s1980_s26 + $0x3f0] sm:$0xff] }
  0x1c   : > { %v211_v20 = vld [vmem:[%s1980_s26 + $0x3e8] sm:$0xff]  ;;  %208 = vst [vmem:[%s1985_s27 + $0xb4] sm:$0xff] %v207_v18  ;;  %210 = vst [vmem:[%s1985_s27 + $0xbc] sm:$0xff] %v209_v19  ;;  %v217_v23 = vld [vmem:[%s1980_s26 + $0x454] sm:$0xff] }
  0x1d   : > { %212 = vst [vmem:[%s1985_s27 + $0xc8] sm:$0xff] %v211_v20  ;;  %v215_v22 = vld [vmem:[%s1980_s26 + $0x44c] sm:$0xff]  ;;  %214 = vst [vmem:[%s1985_s27 + $0xd0] sm:$0xff] %v213_v21  ;;  %v221_v25 = vld [vmem:[%s1980_s26 + $0x4b8] sm:$0xff] }
  0x1e   : > { %216 = vst [vmem:[%s1985_s27 + $0xdc] sm:$0xff] %v215_v22  ;;  %218 = vst [vmem:[%s1985_s27 + $0xe4] sm:$0xff] %v217_v23  ;;  %v219_v24 = vld [vmem:[%s1980_s26 + $0x4b0] sm:$0xff]  ;;  %v1383_v28 = vld [vmem:[%s1980_s26 + $0xd8] sm:$0xf] }
  0x1f   : > { %v1379_v26 = vld [vmem:[%s1980_s26 + $0x10] sm:$0xf]  ;;  %220 = vst [vmem:[%s1985_s27 + $0xf0] sm:$0xff] %v219_v24  ;;  %222 = vst [vmem:[%s1985_s27 + $0xf8] sm:$0xff] %v221_v25  ;;  %v1381_v27 = vld [vmem:[%s1980_s26 + $0x74] sm:$0xf] }
  0x20   : > { %1380 = vst [vmem:[%s1985_s27 + $0x10] sm:$0xf] %v1379_v26  ;;  %v1385_v29 = vld [vmem:[%s1980_s26 + $0x13c] sm:$0xf]  ;;  %1382 = vst [vmem:[%s1985_s27 + $0x24] sm:$0xf] %v1381_v27 }
  0x21   : > { %1384 = vst [vmem:[%s1985_s27 + $0x38] sm:$0xf] %v1383_v28  ;;  %1386 = vst [vmem:[%s1985_s27 + $0x4c] sm:$0xf] %v1385_v29  ;;  %v1387_v30 = vld [vmem:[%s1980_s26 + $0x1a0] sm:$0xf] }
  0x22   : > { %v1389_v31 = vld [vmem:[%s1980_s26 + $0x204] sm:$0xf]  ;;  %v1391_v32 = vld [vmem:[%s1980_s26 + $0x268] sm:$0xf]  ;;  %1388 = vst [vmem:[%s1985_s27 + $0x60] sm:$0xf] %v1387_v30 }
  0x23   : > { %1390 = vst [vmem:[%s1985_s27 + $0x74] sm:$0xf] %v1389_v31  ;;  %1392 = vst [vmem:[%s1985_s27 + $0x88] sm:$0xf] %v1391_v32  ;;  %v1393_v33 = vld [vmem:[%s1980_s26 + $0x2cc] sm:$0xf] }
  0x24   : > { %v1395_v34 = vld [vmem:[%s1980_s26 + $0x330] sm:$0xf]  ;;  %v1397_v35 = vld [vmem:[%s1980_s26 + $0x394] sm:$0xf]  ;;  %1394 = vst [vmem:[%s1985_s27 + $0x9c] sm:$0xf] %v1393_v33 }
  0x25   : > { %1396 = vst [vmem:[%s1985_s27 + $0xb0] sm:$0xf] %v1395_v34  ;;  %1398 = vst [vmem:[%s1985_s27 + $0xc4] sm:$0xf] %v1397_v35  ;;  %v1399_v36 = vld [vmem:[%s1980_s26 + $0x3f8] sm:$0xf] }
  0x26   : > { %v1401_v37 = vld [vmem:[%s1980_s26 + $0x45c] sm:$0xf]  ;;  %v1403_v38 = vld [vmem:[%s1980_s26 + $0x4c0] sm:$0xf]  ;;  %1400 = vst [vmem:[%s1985_s27 + $0xd8] sm:$0xf] %v1399_v36 }
  0x27   : > { %1402 = vst [vmem:[%s1985_s27 + $0xec] sm:$0xf] %v1401_v37  ;;  %1404 = vst [vmem:[%s1985_s27 + $0x100] sm:$0xf] %v1403_v38 }
  0x28 PF: > { %p1405_p6 = scmp.ge.s32.totalorder %s1912_s16, 1  ;;  %p269_p7 = scmp.lt.s32.totalorder %s1912_s16, 6 }
  0x2a   : > { %p270_p8 = pnand %p1405_p6, %p269_p7 }
  0x2b   : > { %s276_s28 = sand.u32 (!%p270_p8), 1, %s1896_s12   ;;  %s306_s29 = smul.u32 (!%p270_p8), 80, %s1904_s14 }
  0x2c   : > { %273 = sbr.rel (%p270_p8) target bundleno = 409 (0x199), region = 54  ;;  %p1407_p10 = scmp.ne.s32.totalorder (!%p270_p8), %s1904_s14, 0 }
  0x2d   : > { %s1743_s30 = smul.u32 (!%p270_p8), 260, %s276_s28  ;;  %p307_p9 = scmp.lt.s32.totalorder (!%p270_p8), %s306_s29, 399 }
  0x2f   : > { %s2071_s8 = scalar_lea.vmem (!%p270_p8), [#allocation3], %s1743_s30 }
  0x33   : > { %s2241_s29 = smov (!%p307_p9, %s306_s29), 399  ;;  %322 = sbr.rel (%p1407_p10) target bundleno = 60 (0x3c), region = 62 }
  0x34   : > { %s1406_s4 = sshll.u32 %s2241_s29, 2  ;;  %v1914_v39 = vmov (!%p1407_p10), 0.0  }
  0x35   : > { %s2069_s7 = scalar_lea.vmem %s2231_s1, %s1406_s4  ;;  %323 = vst [vmem:[#allocation2] sm:$0xff] (!%p1407_p10), %v1914_v39  ;;  %324 = vst [vmem:[#allocation2 + $0x8] sm:$0xff] (!%p1407_p10), %v1914_v39 }
  0x36   : > { %325 = vst [vmem:[#allocation2 + $0x10] sm:$0xff] (!%p1407_p10), %v1914_v39  ;;  %326 = vst [vmem:[#allocation2 + $0x18] sm:$0xff] (!%p1407_p10), %v1914_v39 }
  0x37   : > { %327 = vst [vmem:[#allocation2 + $0x20] sm:$0xff] (!%p1407_p10), %v1914_v39  ;;  %328 = vst [vmem:[#allocation2 + $0x28] sm:$0xff] (!%p1407_p10), %v1914_v39 }
  0x38   : > { %329 = vst [vmem:[#allocation2 + $0x30] sm:$0xff] (!%p1407_p10), %v1914_v39  ;;  %330 = vst [vmem:[#allocation2 + $0x38] sm:$0xff] (!%p1407_p10), %v1914_v39 }
  0x39   : > { %331 = vst [vmem:[#allocation2 + $0x40] sm:$0xff] (!%p1407_p10), %v1914_v39  ;;  %332 = vst [vmem:[#allocation2 + $0x48] sm:$0xff] (!%p1407_p10), %v1914_v39 }
  0x3a   : > { %333 = vst [vmem:[#allocation2 + $0x50] sm:$0xff] %v1914_v39  ;;  %334 = vst [vmem:[#allocation2 + $0x58] sm:$0xff] %v1914_v39 }
  0x3b   : > { %335 = vst [vmem:[#allocation2 + $0x60] sm:$0xff] %v1914_v39 }
  0x3c PF: > { %v1787_v40 = vld [vmem:[%s2069_s7 + $0x40] sm:$0xff]   ;;  %v1789_v42 = vld [vmem:[%s2069_s7 + $0x48] sm:$0xff]   ;;  %v1791_v44 = vld [vmem:[%s2069_s7 + $0x50] sm:$0xff]   ;;  %v1915_v0 = vmov 0.0   ;;  %vm1916_vm0 = vmmov 0   ;;  %p1483_p11 = scmp.ne.s32.totalorder %s1904_s14, 4 }
  0x3d   : > { %v1788_v41 = vld [vmem:[%s2069_s7] sm:$0xff]   ;;  %1726 = vmatprep.subr.bf16.mxu1 %v1787_v40  ;;  %1551 = vmatprep.subr.bf16.mxu0 %v1787_v40  ;;  %v1790_v43 = vld [vmem:[%s2069_s7 + $0x8] sm:$0xff]   ;;  %v1792_v45 = vld [vmem:[%s2069_s7 + $0x10] sm:$0xff]  }
  0x3e   : > { %1734 = vmatpush3.bf16.msra.mxu1 %v1788_v41  ;;  %1552 = vmatpush3.bf16.msra.mxu0 %v1788_v41  ;;  %v1793_v46 = vld [vmem:[%s2069_s7 + $0x58] sm:$0xff]   ;;  %v1795_v48 = vld [vmem:[%s2069_s7 + $0x60] sm:$0xff]   ;;  %v1797_v50 = vld [vmem:[%s2069_s7 + $0x68] sm:$0xff]  }
  0x3f   : > { %1727 = vmatprep.subr.bf16.mxu1 %v1789_v42  ;;  %1553 = vmatprep.subr.bf16.mxu0 %v1789_v42  ;;  %v1794_v47 = vld [vmem:[%s2069_s7 + $0x18] sm:$0xff]   ;;  %v1796_v49 = vld [vmem:[%s2069_s7 + $0x20] sm:$0xff]   ;;  %v1798_v52 = vld [vmem:[%s2069_s7 + $0x28] sm:$0xff]  }
  0x40   : > { %v1805_v51 = vld [vmem:[%s2071_s8 + $0xa4] ss:$20 sps:$4 sm:$0xff]   ;;  %v1801_v56 = vld [vmem:[%s2069_s7 + $0x78] sm:$0xff]   ;;  %v1819_v7 = vld [vmem:[%s2071_s8 + $0x28] ss:$20 sps:$4 sm:$0xff]  }
  0x41   : > { %v1809_v53 = vld [vmem:[%s2071_s8 + $0x4] ss:$20 sps:$4 sm:$0xff]   ;;  %946 = vmatprep.mubr.bf16.mxu1 %v1805_v51  ;;  %v1802_v57 = vld [vmem:[%s2069_s7 + $0x38] sm:$0xff]   ;;  %v1824_v8 = vld [vmem:[%s2071_s8 + $0xc8] ss:$20 sps:$4 sm:$0xff]  }
  0x42   : > { %1735 = vmatpush3.bf16.msra.mxu1 %v1790_v43  ;;  %1554 = vmatpush3.bf16.msra.mxu0 %v1790_v43  ;;  %v1799_v54 = vld [vmem:[%s2069_s7 + $0x70] sm:$0xff]   ;;  %v1806_v58 = vld [vmem:[%s2069_s7 + $0xc0] sm:$0xff]   ;;  %v1812_v63 = vld [vmem:[%s2069_s7 + $0xc8] sm:$0xff]  }
  0x43   : > { %1728 = vmatprep.subr.bf16.mxu1 %v1791_v44  ;;  %1555 = vmatprep.subr.bf16.mxu0 %v1791_v44  ;;  %v1800_v55 = vld [vmem:[%s2069_s7 + $0x30] sm:$0xff]   ;;  %v1803_v59 = vld [vmem:[%s2071_s8 + $0xa0] ss:$20 sps:$4 sm:$0xff]   ;;  %v1839_v22 = vld [vmem:[%s2071_s8 + $0x7c] ss:$20 sps:$4 sm:$0xff]  }
  0x44   : > { %914 = vmatprep.mubr.bf16.mxu0 %v1809_v53  ;;  %v1807_v60 = vld [vmem:[%s2071_s8] ss:$20 sps:$4 sm:$0xff]   ;;  %v1815_v5 = vld [vmem:[%s2069_s7 + $0xd0] sm:$0xff]   ;;  %v1855_v38 = vld [vmem:[%s2071_s8 + $0x5c] ss:$20 sps:$4 sm:$0xff]  }
  0x45   : > { %v1810_v61 = vld [vmem:[%s2069_s7 + $0x80] sm:$0xff]   ;;  %v1816_v1 = vld [vmem:[%s2071_s8 + $0x2c] ss:$20 sps:$4 sm:$0xff]   ;;  %v1831_v18 = vld [vmem:[%s2071_s8 + $0x50] ss:$20 sps:$4 sm:$0xff]  }
  0x46   : > { %1736 = vmatpush3.bf16.msra.mxu1 %v1792_v45  ;;  %1556 = vmatpush3.bf16.msra.mxu0 %v1792_v45  ;;  %v1811_v62 = vld [vmem:[%s2069_s7 + $0x100] sm:$0xff]   ;;  %v1821_v2 = vld [vmem:[%s2071_s8 + $0xcc] ss:$20 sps:$4 sm:$0xff]   ;;  %v1850_v34 = vld [vmem:[%s2071_s8 + $0x10] ss:$20 sps:$4 sm:$0xff]  }
  0x47   : > { %1729 = vmatprep.subr.bf16.mxu1 %v1793_v46  ;;  %1557 = vmatprep.subr.bf16.mxu0 %v1793_v46  ;;  %v1813_v3 = vld [vmem:[%s2069_s7 + $0x88] sm:$0xff]   ;;  %v1818_v6 = vld [vmem:[%s2069_s7 + $0x90] sm:$0xff]   ;;  %v385_v9 = vld [vmem:[%s2071_s8 + $0xf0] sm:$0xff] }
  0x48   : > { %v1814_v4 = vld [vmem:[%s2069_s7 + $0x108] sm:$0xff]   ;;  %v1820_v10 = vld [vmem:[%s2069_s7 + $0x110] sm:$0xff]   ;;  %v1823_v11 = vld [vmem:[%s2069_s7 + $0xd8] sm:$0xff]   ;;  %v1439_v13 = vcombine.high %v385_v9, %v385_v9  ;;  %v1438_v19 = vcombine.low %v385_v9, %v385_v9 }
  0x49   : > { %v1828_v12 = vld [vmem:[%s2071_s8 + $0x54] ss:$20 sps:$4 sm:$0xff]   ;;  %v1834_v21 = vld [vmem:[%s2069_s7 + $0xe8] sm:$0xff]   ;;  %v1842_v28 = vld [vmem:[%s2071_s8 + $0x78] ss:$20 sps:$4 sm:$0xff]  }
  0x4a   : > { %1737 = vmatpush3.bf16.msra.mxu1 %v1794_v47  ;;  %1558 = vmatpush3.bf16.msra.mxu0 %v1794_v47  ;;  %v1825_v14 = vld [vmem:[%s2069_s7 + $0x98] sm:$0xff]   ;;  %v1827_v16 = vld [vmem:[%s2069_s7 + $0xe0] sm:$0xff]   ;;  %v1836_v24 = vld [vmem:[%s2069_s7 + $0xa8] sm:$0xff]  }
  0x4b   : > { %1730 = vmatprep.subr.bf16.mxu1 %v1795_v48  ;;  %1559 = vmatprep.subr.bf16.mxu0 %v1795_v48  ;;  %v1826_v15 = vld [vmem:[%s2069_s7 + $0x118] sm:$0xff]   ;;  %v1830_v17 = vld [vmem:[%s2069_s7 + $0xa0] sm:$0xff]   ;;  %v1837_v25 = vld [vmem:[%s2069_s7 + $0x128] sm:$0xff]  }
  0x4c   : > { %v1832_v20 = vld [vmem:[%s2069_s7 + $0x120] sm:$0xff]   ;;  %v1848_v23 = vld [vmem:[%s2071_s8 + $0xc] ss:$20 sps:$4 sm:$0xff]   ;;  %v1853_v36 = vld [vmem:[%s2071_s8 + $0x30] ss:$20 sps:$4 sm:$0xff]  }
  0x4d   : > { %v1838_v26 = vld [vmem:[%s2069_s7 + $0xf0] sm:$0xff]   ;;  %v1844_v30 = vld [vmem:[%s2069_s7 + $0xf8] sm:$0xff]   ;;  %v386_v48 = vld [vmem:[%s2071_s8 + $0xf8] sm:$0xff] }
  0x4e   : > { %1738 = vmatpush3.bf16.msra.mxu1 %v1796_v49  ;;  %1560 = vmatpush3.bf16.msra.mxu0 %v1796_v49  ;;  %v1841_v27 = vld [vmem:[%s2069_s7 + $0xb0] sm:$0xff]   ;;  %v1845_v31 = vld [vmem:[%s2069_s7 + $0xb8] sm:$0xff]   ;;  %v1441_v51 = vcombine.high %v386_v48, %v386_v48  ;;  %v1873_v53 = vld [vmem:[%s2071_s8 + $0x100] ss:$0 sps:$4 sm:$0xff]  }
  0x4f   : > { %1731 = vmatprep.subr.bf16.mxu1 %v1797_v50  ;;  %1561 = vmatprep.subr.bf16.mxu0 %v1797_v50  ;;  %v1843_v29 = vld [vmem:[%s2069_s7 + $0x130] sm:$0xff]   ;;  %v1849_v32 = vld [vmem:[%s2069_s7 + $0x138] sm:$0xff]  }
  0x50   : > { %v1846_v33 = vld [vmem:[%s2071_s8 + $0x8] ss:$20 sps:$4 sm:$0xff]   ;;  %v1854_v37 = vld [vmem:[%s2071_s8 + $0x38] ss:$20 sps:$4 sm:$0xff]   ;;  %v1858_v40 = vld [vmem:[%s2071_s8 + $0x60] ss:$20 sps:$4 sm:$0xff]  }
  0x51   : > { %v1851_v35 = vld [vmem:[%s2071_s8 + $0x34] ss:$20 sps:$4 sm:$0xff]   ;;  %v1857_v39 = vld [vmem:[%s2071_s8 + $0x58] ss:$20 sps:$4 sm:$0xff]   ;;  %v1866_v46 = vld [vmem:[%s2071_s8 + $0xb0] ss:$20 sps:$4 sm:$0xff]  }
  0x52   : > { %1739 = vmatpush3.bf16.msra.mxu1 %v1798_v52  ;;  %1562 = vmatpush3.bf16.msra.mxu0 %v1798_v52  ;;  %v1859_v41 = vld [vmem:[%s2071_s8 + $0x84] ss:$20 sps:$4 sm:$0xff]   ;;  %v1861_v42 = vld [vmem:[%s2071_s8 + $0x80] ss:$20 sps:$4 sm:$0xff]   ;;  %v1862_v43 = vld [vmem:[%s2071_s8 + $0x88] ss:$20 sps:$4 sm:$0xff]   ;;  %v1440_v52 = vcombine.low %v386_v48, %v386_v48 }
  0x53   : > { %1732 = vmatprep.subr.bf16.mxu1 %v1799_v54  ;;  %1563 = vmatprep.subr.bf16.mxu0 %v1799_v54  ;;  %v1863_v44 = vld [vmem:[%s2071_s8 + $0xac] ss:$20 sps:$4 sm:$0xff]   ;;  %v1865_v45 = vld [vmem:[%s2071_s8 + $0xa8] ss:$20 sps:$4 sm:$0xff]   ;;  %v1869_v49 = vld [vmem:[%s2071_s8 + $0xd0] ss:$20 sps:$4 sm:$0xff]  }
  0x54   : > { %v1867_v47 = vld [vmem:[%s2071_s8 + $0xd4] ss:$20 sps:$4 sm:$0xff]   ;;  %v1870_v50 = vld [vmem:[%s2071_s8 + $0xd8] ss:$20 sps:$4 sm:$0xff]  }
  0x56   : > { %1740 = vmatpush3.bf16.msra.mxu1 %v1800_v55  ;;  %1564 = vmatpush3.bf16.msra.mxu0 %v1800_v55 }
  0x57   : > { %1733 = vmatprep.subr.bf16.mxu1 %v1801_v56  ;;  %1565 = vmatprep.subr.bf16.mxu0 %v1801_v56 }
  0x5a   : > { %1741 = vmatpush3.bf16.msra.mxu1 %v1802_v57  ;;  %1566 = vmatpush3.bf16.msra.mxu0 %v1802_v57 }
  0x5b   : > { %1609 = vmatprep.subr.bf16.mxu1 %v1806_v58  ;;  %1682 = vmatprep.subr.bf16.mxu0 %v1915_v0 }
  0x5d   : > { %947 = vmatmul.mubr.bf16.vlgmr.msra.gmra.mrb[0].mxu1 %v1803_v59  ;;  %915 = vmatmul.mubr.bf16.vlgmr.msra.gmra.mrb[0].mxu0 %v1807_v60 }
  0x5e   : > { %1610 = vmatpush3.bf16.msra.mxu1 %v1810_v61  ;;  %1683 = vmatpush3.bf16.msra.mxu0 %v1811_v62 }
  0x5f   : > { %1611 = vmatprep.subr.bf16.mxu1 %v1812_v63  ;;  %1684 = vmatprep.subr.bf16.mxu0 %v1915_v0 }
  0x60   : > { %922 = vmatprep.mubr.bf16.mxu0 %v1816_v1  ;;  %954 = vmatprep.mubr.bf16.mxu1 %v1821_v2 }
  0x62   : > { %1612 = vmatpush3.bf16.msra.mxu1 %v1813_v3  ;;  %1685 = vmatpush3.bf16.msra.mxu0 %v1814_v4 }
  0x63   : > { %1613 = vmatprep.subr.bf16.mxu1 %v1815_v5  ;;  %1686 = vmatprep.subr.bf16.mxu0 %v1915_v0 }
  0x65   : > { %923 = vmatmul.mubr.bf16.gmra.mrb[4].mxu0 %v1819_v7  ;;  %955 = vmatmul.mubr.bf16.gmra.mrb[4].mxu1 %v1824_v8 }
  0x66   : > { %1614 = vmatpush3.bf16.msra.mxu1 %v1818_v6  ;;  %1687 = vmatpush3.bf16.msra.mxu0 %v1820_v10 }
  0x67   : > { %1615 = vmatprep.subr.bf16.mxu1 %v1823_v11  ;;  %1688 = vmatprep.subr.bf16.mxu0 %v1915_v0 }
  0x68   : > { %930 = vmatprep.mubr.bf16.mxu0 %v1828_v12  ;;  %962 = vmatprep.mubr.bf16.mxu1 %v1439_v13 }
  0x6a   : > { %1616 = vmatpush3.bf16.msra.mxu1 %v1825_v14  ;;  %1689 = vmatpush3.bf16.msra.mxu0 %v1826_v15 }
  0x6b   : > { %1617 = vmatprep.subr.bf16.mxu1 %v1827_v16  ;;  %1690 = vmatprep.subr.bf16.mxu0 %v1915_v0 }
  0x6d   : > { %931 = vmatmul.mubr.bf16.gmra.mrb[8].mxu0 %v1831_v18  ;;  %963 = vmatmul.mubr.bf16.gmra.mrb[8].mxu1 %v1438_v19 }
  0x6e   : > { %1618 = vmatpush3.bf16.msra.mxu1 %v1830_v17  ;;  %1691 = vmatpush3.bf16.msra.mxu0 %v1832_v20 }
  0x6f   : > { %1619 = vmatprep.subr.bf16.mxu1 %v1834_v21  ;;  %1692 = vmatprep.subr.bf16.mxu0 %v1915_v0 }
  0x70   : > { %938 = vmatprep.mubr.bf16.mxu0 %v1839_v22  ;;  %1002 = vmatprep.mubr.bf16.mxu1 %v1848_v23 }
  0x72   : > { %1620 = vmatpush3.bf16.msra.mxu1 %v1836_v24  ;;  %1693 = vmatpush3.bf16.msra.mxu0 %v1837_v25 }
  0x73   : > { %1621 = vmatprep.subr.bf16.mxu1 %v1838_v26  ;;  %1694 = vmatprep.subr.bf16.mxu0 %v1915_v0 }
  0x75   : > { %939 = vmatmul.mubr.bf16.gmra.mrb[12].mxu0 %v1842_v28 }
  0x76   : > { %1622 = vmatpush3.bf16.msra.mxu1 %v1841_v27  ;;  %1695 = vmatpush3.bf16.msra.mxu0 %v1843_v29 }
  0x77   : > { %1623 = vmatprep.subr.bf16.mxu1 %v1844_v30  ;;  %1696 = vmatprep.subr.bf16.mxu0 %v1915_v0 }
  0x78   : > { %1698 = vmatprep.mubr.msk.bf16.mxu0 %vm1916_vm0, %v1915_v0 }
  0x7a   : > { %1624 = vmatpush3.bf16.msra.mxu1 %v1845_v31  ;;  %1697 = vmatpush3.bf16.msra.mxu0 %v1849_v32 }
  0x7d   : > { %1003 = vmatmul.mubr.bf16.vlgmr.msra.gmra.mrb[12].mxu1 %v1846_v33  ;;  %1699 = vmatmul.mubr.bf16.vlgmr.msra.gmra.mrb[16].mxu0 %v1850_v34 }
  0x7e   : > { %1010 = vmatprep.mubr.bf16.mxu1 %v1851_v35  ;;  %1702 = vmatprep.mubr.msk.bf16.mxu0 %vm1916_vm0, %v1915_v0 }
  0x85   : > { %1011 = vmatmul.mubr.bf16.gmra.mrb[16].mxu1 %v1853_v36  ;;  %1703 = vmatmul.mubr.bf16.gmra.mrb[20].mxu0 %v1854_v37 }
  0x86   : > { %1018 = vmatprep.mubr.bf16.mxu1 %v1855_v38  ;;  %1706 = vmatprep.mubr.msk.bf16.mxu0 %vm1916_vm0, %v1915_v0 }
  0x8d   : > { %1019 = vmatmul.mubr.bf16.gmra.mrb[20].mxu1 %v1857_v39  ;;  %1707 = vmatmul.mubr.bf16.gmra.mrb[24].mxu0 %v1858_v40 }
  0x8e   : > { %1026 = vmatprep.mubr.bf16.mxu1 %v1859_v41  ;;  %1710 = vmatprep.mubr.msk.bf16.mxu0 %vm1916_vm0, %v1915_v0 }
  0x95   : > { %1027 = vmatmul.mubr.bf16.gmra.mrb[24].mxu1 %v1861_v42  ;;  %1711 = vmatmul.mubr.bf16.gmra.mrb[28].mxu0 %v1862_v43  ;;  %v336_v42 = vld [vmem:[#allocation2] sm:$0xff] }
  0x96   : > { %1034 = vmatprep.mubr.bf16.mxu1 %v1863_v44  ;;  %1714 = vmatprep.mubr.msk.bf16.mxu0 %vm1916_vm0, %v1915_v0 }
  0x9d   : > { %1035 = vmatmul.mubr.bf16.gmra.mrb[28].mxu1 %v1865_v45  ;;  %1715 = vmatmul.mubr.bf16.gmra.mrb[32].mxu0 %v1866_v46  ;;  %v337_v45 = vld [vmem:[#allocation2 + $0x8] sm:$0xff] }
  0x9e   : > { %1042 = vmatprep.mubr.bf16.mxu1 %v1867_v47  ;;  %1718 = vmatprep.mubr.msk.bf16.mxu0 %vm1916_vm0, %v1915_v0 }
  0xa5   : > { %1043 = vmatmul.mubr.bf16.gmra.mrb[32].mxu1 %v1869_v49  ;;  %1719 = vmatmul.mubr.bf16.gmra.mrb[36].mxu0 %v1870_v50 }
  0xa6   : > { %1050 = vmatprep.mubr.bf16.mxu1 %v1441_v51  ;;  %1722 = vmatprep.mubr.msk.bf16.mxu0 %vm1916_vm0, %v1915_v0 }
  0xad   : > { %1051 = vmatmul.mubr.bf16.gmra.mrb[36].mxu1 %v1440_v52  ;;  %1723 = vmatmul.mubr.bf16.gmra.mrb[40].mxu0 %v1873_v53 }
 0x130   : > { %v1591_v54 = vpop.f32.mrb[0].mxu1  ;;  %v1567_v55 = vpop.f32.mrb[0].mxu0 }
 0x131   : > { %v1592_v56 = vpop.f32.mrb[1].mxu1  ;;  %v1568_v57 = vpop.f32.mrb[1].mxu0 }
 0x132   : > { %v2169_v58 = vadd.f32 %v1592_v56, %v1591_v54  ;;  %v1594_v59 = vpop.f32.mrb[2].mxu1  ;;  %v1569_v60 = vadd.f32 %v1568_v57, %v1567_v55  ;;  %v1570_v61 = vpop.f32.mrb[2].mxu0 }
 0x133   : > { %v1595_v62 = vpop.f32.mrb[3].mxu1  ;;  %v1571_v63 = vpop.f32.mrb[3].mxu0 }
 0x134   : > { %v2171_v1 = vadd.f32 %v1595_v62, %v1594_v59  ;;  %v1572_v2 = vadd.f32 %v1571_v63, %v1570_v61  ;;  %v338_v61 = vld [vmem:[#allocation2 + $0x10] sm:$0xff] }
 0x138   : > { %v1573_v3 = vpop.f32.mrb[4].mxu0  ;;  %v1597_v0 = vpop.f32.mrb[4].mxu1 }
 0x139   : > { %v1574_v4 = vpop.f32.mrb[5].mxu0  ;;  %v1598_v5 = vpop.f32.mrb[5].mxu1 }
 0x13a   : > { %v1575_v6 = vadd.f32 %v1574_v4, %v1573_v3  ;;  %v1576_v7 = vpop.f32.mrb[6].mxu0  ;;  %v2173_v8 = vadd.f32 %v1598_v5, %v1597_v0  ;;  %v1600_v9 = vpop.f32.mrb[6].mxu1 }
 0x13b   : > { %v1577_v10 = vpop.f32.mrb[7].mxu0  ;;  %v1601_v11 = vpop.f32.mrb[7].mxu1 }
 0x13c   : > { %v1578_v12 = vadd.f32 %v1577_v10, %v1576_v7  ;;  %v2175_v13 = vadd.f32 %v1601_v11, %v1600_v9 }
 0x140   : > { %v1579_v14 = vpop.f32.mrb[8].mxu0  ;;  %v1603_v15 = vpop.f32.mrb[8].mxu1 }
 0x141   : > { %v1580_v16 = vpop.f32.mrb[9].mxu0  ;;  %v1604_v17 = vpop.f32.mrb[9].mxu1 }
 0x142   : > { %v1581_v18 = vadd.f32 %v1580_v16, %v1579_v14  ;;  %v1582_v19 = vpop.f32.mrb[10].mxu0  ;;  %v2177_v20 = vadd.f32 %v1604_v17, %v1603_v15  ;;  %v1606_v21 = vpop.f32.mrb[10].mxu1 }
 0x143   : > { %v1583_v22 = vpop.f32.mrb[11].mxu0  ;;  %v1607_v23 = vpop.f32.mrb[11].mxu1  ;;  %v340_v21 = vld [vmem:[#allocation2 + $0x20] sm:$0xff] }
 0x144   : > { %v1584_v24 = vadd.f32 %v1583_v22, %v1582_v19  ;;  %v341_v23 = vld [vmem:[#allocation2 + $0x28] sm:$0xff] }
 0x148   : > { %v1585_v25 = vpop.f32.mrb[12].mxu0 }
 0x149   : > { %v1586_v26 = vpop.f32.mrb[13].mxu0 }
 0x14a   : > { %v2179_v27 = vadd.f32 %v1586_v26, %v1585_v25  ;;  %v1588_v28 = vpop.f32.mrb[14].mxu0 }
 0x14b   : > { %v1589_v29 = vpop.f32.mrb[15].mxu0 }
 0x14c   : > { %v2181_v30 = vadd.f32 %v1589_v29, %v1588_v28 }
 0x150   : > { %v1625_v31 = vpop.f32.mrb[12].mxu1  ;;  %v1092_v32 = vpop.f32.mrb[16].mxu0 }
 0x151   : > { %v1626_v33 = vpop.f32.mrb[13].mxu1  ;;  %v1700_v34 = vpop.f32.mrb[17].mxu0 }
 0x152   : > { %v1627_v35 = vadd.f32 %v1626_v33, %v1625_v31  ;;  %v1628_v36 = vpop.f32.mrb[14].mxu1  ;;  %v1095_v37 = vpop.f32.mrb[18].mxu0 }
 0x153   : > { %v1629_v38 = vpop.f32.mrb[15].mxu1  ;;  %v1701_v39 = vpop.f32.mrb[19].mxu0 }
 0x154   : > { %v1005_v40 = vadd.f32 %v1627_v35, %v1569_v60  ;;  %v1630_v41 = vadd.f32 %v1629_v38, %v1628_v36 }
 0x156   : > { %v1093_v43 = vadd.f32 %v1092_v32, %v1005_v40  ;;  %v1008_v44 = vadd.f32 %v1630_v41, %v1572_v2  ;;  %v339_v2 = vld [vmem:[#allocation2 + $0x18] sm:$0xff]  ;;  %v342_v40 = vld [vmem:[#allocation2 + $0x30] sm:$0xff] }
 0x158   : > { %v1146_v46 = vadd.f32 %v1093_v43, %v336_v42  ;;  %v1096_v47 = vadd.f32 %v1095_v37, %v1008_v44  ;;  %v1631_v48 = vpop.f32.mrb[16].mxu1  ;;  %v1100_v49 = vpop.f32.mrb[20].mxu0  ;;  %v343_v42 = vld [vmem:[#allocation2 + $0x38] sm:$0xff] }
 0x159   : > { %v1632_v50 = vpop.f32.mrb[17].mxu1  ;;  %v1704_v51 = vpop.f32.mrb[21].mxu0 }
 0x15a   : > { %1159 = vst [vmem:[#allocation2] sm:$0xff] %v1146_v46  ;;  %v1147_v52 = vadd.f32 %v1096_v47, %v337_v45  ;;  %v1633_v53 = vadd.f32 %v1632_v50, %v1631_v48  ;;  %v1634_v54 = vpop.f32.mrb[18].mxu1  ;;  %v1103_v55 = vpop.f32.mrb[22].mxu0 }
 0x15b   : > { %v1635_v56 = vpop.f32.mrb[19].mxu1  ;;  %v1705_v57 = vpop.f32.mrb[23].mxu0 }
 0x15c   : > { %1160 = vst [vmem:[#allocation2 + $0x8] sm:$0xff] %v1147_v52  ;;  %v1013_v59 = vadd.f32 %v1633_v53, %v1575_v6  ;;  %v1636_v60 = vadd.f32 %v1635_v56, %v1634_v54  ;;  %v344_v56 = vld [vmem:[#allocation2 + $0x40] sm:$0xff] }
 0x15e   : > { %v1101_v62 = vadd.f32 %v1100_v49, %v1013_v59  ;;  %v1016_v63 = vadd.f32 %v1636_v60, %v1578_v12  ;;  %v345_v59 = vld [vmem:[#allocation2 + $0x48] sm:$0xff] }
 0x160   : > { %v1148_v3 = vadd.f32 %v1101_v62, %v338_v61  ;;  %v1104_v0 = vadd.f32 %v1103_v55, %v1016_v63  ;;  %v1637_v4 = vpop.f32.mrb[20].mxu1  ;;  %v1108_v5 = vpop.f32.mrb[24].mxu0 }
 0x161   : > { %v1638_v7 = vpop.f32.mrb[21].mxu1  ;;  %v1708_v9 = vpop.f32.mrb[25].mxu0 }
 0x162   : > { %1161 = vst [vmem:[#allocation2 + $0x10] sm:$0xff] %v1148_v3  ;;  %v1149_v10 = vadd.f32 %v1104_v0, %v339_v2  ;;  %v1639_v11 = vadd.f32 %v1638_v7, %v1637_v4  ;;  %v1640_v14 = vpop.f32.mrb[22].mxu1  ;;  %v1111_v15 = vpop.f32.mrb[26].mxu0 }
 0x163   : > { %v1641_v16 = vpop.f32.mrb[23].mxu1  ;;  %v1709_v17 = vpop.f32.mrb[27].mxu0 }
 0x164   : > { %1162 = vst [vmem:[#allocation2 + $0x18] sm:$0xff] %v1149_v10  ;;  %v1021_v6 = vadd.f32 %v1639_v11, %v1581_v18  ;;  %v1642_v19 = vadd.f32 %v1641_v16, %v1640_v14  ;;  %v346_v14 = vld [vmem:[#allocation2 + $0x50] sm:$0xff]  ;;  %v347_v16 = vld [vmem:[#allocation2 + $0x58] sm:$0xff] }
 0x166   : > { %v1109_v22 = vadd.f32 %v1108_v5, %v1021_v6  ;;  %v1024_v12 = vadd.f32 %v1642_v19, %v1584_v24 }
 0x168   : > { %v1150_v25 = vadd.f32 %v1109_v22, %v340_v21  ;;  %v1112_v26 = vadd.f32 %v1111_v15, %v1024_v12  ;;  %v1643_v28 = vpop.f32.mrb[24].mxu1  ;;  %v1116_v29 = vpop.f32.mrb[28].mxu0 }
 0x169   : > { %v1644_v31 = vpop.f32.mrb[25].mxu1  ;;  %v1712_v32 = vpop.f32.mrb[29].mxu0 }
 0x16a   : > { %1163 = vst [vmem:[#allocation2 + $0x20] sm:$0xff] %v1150_v25  ;;  %v1151_v33 = vadd.f32 %v1112_v26, %v341_v23  ;;  %v1645_v34 = vadd.f32 %v1644_v31, %v1643_v28  ;;  %v1646_v35 = vpop.f32.mrb[26].mxu1  ;;  %v1119_v36 = vpop.f32.mrb[30].mxu0  ;;  %v348_v32 = vld [vmem:[#allocation2 + $0x60] sm:$0xff] }
 0x16b   : > { %v1647_v37 = vpop.f32.mrb[27].mxu1  ;;  %v1713_v38 = vpop.f32.mrb[31].mxu0 }
 0x16c   : > { %1164 = vst [vmem:[#allocation2 + $0x28] sm:$0xff] %v1151_v33  ;;  %v1029_v18 = vadd.f32 %v1645_v34, %v2179_v27  ;;  %v1648_v39 = vadd.f32 %v1647_v37, %v1646_v35  ;;  %v1176_v34 = vld [vmem:[#allocation2] sm:$0xff] (!%p1483_p11)  ;;  %v1177_v35 = vld [vmem:[#allocation2 + $0x8] sm:$0xff] (!%p1483_p11) }
 0x16e   : > { %v1117_v24 = vadd.f32 %v1116_v29, %v1029_v18  ;;  %v1032_v41 = vadd.f32 %v1648_v39, %v2181_v30  ;;  %v1178_v18 = vld [vmem:[#allocation2 + $0x10] sm:$0xff] (!%p1483_p11)  ;;  %v1179_v39 = vld [vmem:[#allocation2 + $0x18] sm:$0xff] (!%p1483_p11) }
 0x170   : > { %v1152_v43 = vadd.f32 %v1117_v24, %v342_v40  ;;  %v1120_v44 = vadd.f32 %v1119_v36, %v1032_v41  ;;  %v1649_v45 = vpop.f32.mrb[28].mxu1  ;;  %v1124_v46 = vpop.f32.mrb[32].mxu0  ;;  %v1484_v36 = vld [vmem:[%s2232_s2] ss:$0 sm:$0xff] (!%p1483_p11) }
 0x171   : > { %v1650_v47 = vpop.f32.mrb[29].mxu1  ;;  %v1716_v48 = vpop.f32.mrb[33].mxu0  ;;  %v1196_v37 = vadd.f32 (!%p1483_p11), %v1484_v36, %v1176_v34  ;;  %v1197_v38 = vadd.f32 (!%p1483_p11), %v1484_v36, %v1177_v35  ;;  %v1180_v40 = vld [vmem:[#allocation2 + $0x20] sm:$0xff] (!%p1483_p11)  ;;  %v1198_v24 = vadd.f32 (!%p1483_p11), %v1484_v36, %v1178_v18 }
 0x172   : > { %1165 = vst [vmem:[#allocation2 + $0x30] sm:$0xff] %v1152_v43  ;;  %v1153_v49 = vadd.f32 %v1120_v44, %v343_v42  ;;  %v1651_v50 = vadd.f32 %v1650_v47, %v1649_v45  ;;  %v1652_v51 = vpop.f32.mrb[30].mxu1  ;;  %v1127_v52 = vpop.f32.mrb[34].mxu0  ;;  %v1200_v42 = vadd.f32 (!%p1483_p11), %v1484_v36, %v1180_v40 }
 0x173   : > { %v1653_v53 = vpop.f32.mrb[31].mxu1  ;;  %v1717_v54 = vpop.f32.mrb[35].mxu0  ;;  %v1181_v41 = vld [vmem:[#allocation2 + $0x28] sm:$0xff] (!%p1483_p11)  ;;  %v1209_v45 = vmax.f32 (!%p1483_p11), %v1196_v37, 0.0 }
 0x174   : > { %1166 = vst [vmem:[#allocation2 + $0x38] sm:$0xff] %v1153_v49  ;;  %v1037_v27 = vadd.f32 %v1651_v50, %v2169_v58  ;;  %v1654_v55 = vadd.f32 %v1653_v53, %v1652_v51  ;;  %v1201_v47 = vadd.f32 (!%p1483_p11), %v1484_v36, %v1181_v41  ;;  %v1213_v54 = vmax.f32 (!%p1483_p11), %v1200_v42, 0.0 }
 0x176   : > { %v1125_v30 = vadd.f32 %v1124_v46, %v1037_v27  ;;  %v1040_v57 = vadd.f32 %v1654_v55, %v2171_v1  ;;  %v1210_v46 = vmax.f32 (!%p1483_p11), %v1197_v38, 0.0 }
 0x178   : > { %v1154_v60 = vadd.f32 %v1125_v30, %v344_v56  ;;  %v1128_v61 = vadd.f32 %v1127_v52, %v1040_v57  ;;  %v1655_v62 = vpop.f32.mrb[32].mxu1  ;;  %v1132_v63 = vpop.f32.mrb[36].mxu0  ;;  %v1211_v52 = vmax.f32 (!%p1483_p11), %v1198_v24, 0.0  ;;  %v1519_v30 = vpack.c.bf16 (!%p1483_p11), %v1210_v46, %v1209_v45 }
 0x179   : > { %v1656_v2 = vpop.f32.mrb[33].mxu1  ;;  %v1720_v3 = vpop.f32.mrb[37].mxu0  ;;  %v1182_v43 = vld [vmem:[#allocation2 + $0x30] sm:$0xff] (!%p1483_p11)  ;;  %v1214_v57 = vmax.f32 (!%p1483_p11), %v1201_v47, 0.0 }
 0x17a   : > { %1167 = vst [vmem:[#allocation2 + $0x40] sm:$0xff] %v1154_v60  ;;  %v1155_v0 = vadd.f32 %v1128_v61, %v345_v59  ;;  %v1657_v4 = vadd.f32 %v1656_v2, %v1655_v62  ;;  %v1658_v5 = vpop.f32.mrb[34].mxu1  ;;  %v1135_v7 = vpop.f32.mrb[38].mxu0  ;;  %v1202_v48 = vadd.f32 (!%p1483_p11), %v1484_v36, %v1182_v43  ;;  %1520 = vst [vmem:[%s2233_s3] sm:$0xff] (!%p1483_p11), %v1519_v30  }
 0x17b   : > { %v1659_v9 = vpop.f32.mrb[35].mxu1  ;;  %v1721_v10 = vpop.f32.mrb[39].mxu0  ;;  %v1183_v44 = vld [vmem:[#allocation2 + $0x38] sm:$0xff] (!%p1483_p11)  ;;  %v1529_v3 = vpack.c.bf16 (!%p1483_p11), %v1214_v57, %v1213_v54 }
 0x17c   : > { %1168 = vst [vmem:[#allocation2 + $0x48] sm:$0xff] %v1155_v0  ;;  %v1045_v58 = vadd.f32 %v1657_v4, %v2173_v8  ;;  %v1660_v11 = vadd.f32 %v1659_v9, %v1658_v5  ;;  %v1203_v27 = vadd.f32 (!%p1483_p11), %v1484_v36, %v1183_v44  ;;  %v1215_v59 = vmax.f32 (!%p1483_p11), %v1202_v48, 0.0 }
 0x17d   : > { %1547 = vst [vmem:[%s2233_s3 + $0x10] sm:$0xff] (!%p1483_p11), %v1529_v3  }
 0x17e   : > { %v1133_v1 = vadd.f32 %v1132_v63, %v1045_v58  ;;  %v1048_v15 = vadd.f32 %v1660_v11, %v2175_v13  ;;  %v1216_v62 = vmax.f32 (!%p1483_p11), %v1203_v27, 0.0 }
 0x180   : > { %v1156_v17 = vadd.f32 %v1133_v1, %v346_v14  ;;  %v1136_v6 = vadd.f32 %v1135_v7, %v1048_v15  ;;  %v1661_v19 = vpop.f32.mrb[36].mxu1  ;;  %v1140_v21 = vpop.f32.mrb[40].mxu0  ;;  %v1534_v7 = vpack.c.bf16 (!%p1483_p11), %v1216_v62, %v1215_v59 }
 0x181   : > { %v1662_v22 = vpop.f32.mrb[37].mxu1  ;;  %v1724_v12 = vpop.f32.mrb[41].mxu0  ;;  %v1184_v49 = vld [vmem:[#allocation2 + $0x40] sm:$0xff] (!%p1483_p11) }
 0x182   : > { %1169 = vst [vmem:[#allocation2 + $0x50] sm:$0xff] %v1156_v17  ;;  %v1157_v23 = vadd.f32 %v1136_v6, %v347_v16  ;;  %v1663_v25 = vadd.f32 %v1662_v22, %v1661_v19  ;;  %v1664_v26 = vpop.f32.mrb[38].mxu1  ;;  %v1143_v28 = vpop.f32.mrb[42].mxu0  ;;  %v1204_v60 = vadd.f32 (!%p1483_p11), %v1484_v36, %v1184_v49  ;;  %1548 = vst [vmem:[%s2233_s3 + $0x18] sm:$0xff] (!%p1483_p11), %v1534_v7  }
 0x183   : > { %v1665_v29 = vpop.f32.mrb[39].mxu1  ;;  %v1725_v31 = vpop.f32.mrb[43].mxu0  ;;  %v1185_v50 = vld [vmem:[#allocation2 + $0x48] sm:$0xff] (!%p1483_p11) }
 0x184   : > { %1170 = vst [vmem:[#allocation2 + $0x58] sm:$0xff] %v1157_v23  ;;  %v1053_v8 = vadd.f32 %v1663_v25, %v2177_v20  ;;  %1175 = sbr.rel (%p1483_p11) target bundleno = 409 (0x199), region = 66  ;;  %v1199_v20 = vadd.f32 (!%p1483_p11), %v1484_v36, %v1179_v39  ;;  %v1205_v63 = vadd.f32 (!%p1483_p11), %v1484_v36, %v1185_v50  ;;  %v1217_v0 = vmax.f32 (!%p1483_p11), %v1204_v60, 0.0 }
 0x186   : > { %v1141_v33 = vadd.f32 %v1140_v21, %v1053_v8  ;;  %v1212_v53 = vmax.f32 (!%p1483_p11), %v1199_v20, 0.0  ;;  %v1218_v9 = vmax.f32 (!%p1483_p11), %v1205_v63, 0.0 }
 0x188   : > { %v1158_v13 = vadd.f32 %v1141_v33, %v348_v32  ;;  %v1524_v61 = vpack.c.bf16 (!%p1483_p11), %v1212_v53, %v1211_v52  ;;  %v1539_v14 = vpack.c.bf16 (!%p1483_p11), %v1218_v9, %v1217_v0 }
 0x189   : > { %v1186_v51 = vld [vmem:[#allocation2 + $0x50] sm:$0xff] (!%p1483_p11) }
 0x18a   : > { %1171 = vst [vmem:[#allocation2 + $0x60] sm:$0xff] %v1158_v13  ;;  %v1206_v2 = vadd.f32 (!%p1483_p11), %v1484_v36, %v1186_v51  ;;  %1546 = vst [vmem:[%s2233_s3 + $0x8] sm:$0xff] (!%p1483_p11), %v1524_v61  }
 0x18b   : > { %v1187_v55 = vld [vmem:[#allocation2 + $0x58] sm:$0xff]  ;;  %1549 = vst [vmem:[%s2233_s3 + $0x20] sm:$0xff] %v1539_v14  }
 0x18c   : > { %v1207_v4 = vadd.f32 %v1484_v36, %v1187_v55  ;;  %v1219_v10 = vmax.f32 %v1206_v2, 0.0 }
 0x18e   : > { %v1220_v58 = vmax.f32 %v1207_v4, 0.0 }
 0x190   : > { %v1544_v1 = vpack.c.bf16 %v1220_v58, %v1219_v10 }
 0x191   : > { %v1188_v56 = vld [vmem:[#allocation2 + $0x60] sm:$0xff] }
 0x192   : > { %v1208_v5 = vadd.f32 %v1484_v36, %v1188_v56  ;;  %1550 = vst [vmem:[%s2233_s3 + $0x28] sm:$0xff] %v1544_v1  }
 0x194   : > { %v1221_v11 = vmax.f32 %v1208_v5, 0.0 }
 0x196   : > { %v1515_v15 = vpack.c.bf16 %v1221_v11, %v1221_v11 }
 0x198   : > { %1287 = vst [vmem:[%s2233_s3 + $0x30] sm:$0xf] %v1515_v15 }
 0x199 PF: > { %s13_s16 = sadd.s32 1, %s1912_s16   ;;  %s2234_s12 = smov %s1900_s13 }
 0x19a   : > { %p10_p12 = scmp.ge.s32.totalorder %s13_s16, 7   ;;  %s2235_s13 = smov %s1972_s20 }
 0x19b   : > { %s2236_s14 = smov %s1908_s15  ;;  %s2237_s15 = smov %s2239_s17 }
 0x19c   :  { %12 = sbr.rel (!%p10_p12) target bundleno = 3 (0x3), region = 110 }

// kernel: forward.12
= control target key start
LH: loop header
LB: loop body
LE: loop exit
PB: predicated region body
PF: predicated region fallthrough
CT: control target
= control target key end

     0   :  { %s404_s9 = smov 0   ;;  %s480_s0 = inlined_call_operand.vmem [shape: bf16[2,7,4,128], index: 0, kind: input, shape index: {}]   ;;  %s481_s1 = inlined_call_operand.vmem [shape: bf16[2,7,3,128], index: 1, kind: input, shape index: {}]   ;;  %s482_s2 = inlined_call_operand.vmem [shape: bf16[2,3,3,128], index: 2, kind: output, shape index: {}]  }
   0x1 LB: > { %s357_s10 = sadd.s32 4294967295, %s387_s9   ;;  %p361_p0 = scmp.ge.s32.totalorder %s387_s9, 1  ;;  %s387_s9 = sphi %s404_s9, %s12_s9  }
   0x2   : > { %p122_p1 = scmp.lt.s32.totalorder %s387_s9, 3 }
   0x4   : > { %p123_p2 = pnand %p361_p0, %p122_p1 }
   0x5   : > { %p149_p3 = scmp.lt.s32.totalorder (!%p123_p2), %s357_s10, 1  ;;  %vm263_vm0 = vcmask (!%p123_p2), 1041408   ;;  %vm264_vm1 = vsmask.f32 (!%p123_p2), 1280 }
   0x6   : > { %126 = sbr.rel (%p123_p2) target bundleno = 46 (0x2e), region = 28  ;;  %vm440_vm2 = vmand (!%p123_p2), %vm263_vm0, %vm264_vm1 }
   0xd   : > { %s486_s10 = smov (!%p149_p3, %s357_s10), 1 }
   0xe   : > { %s371_s11 = smul.u32 14, %s486_s10 }
   0xf   : > { %s372_s18 = smul.u32 6, %s486_s10 }
  0x10   : > { %s418_s14 = scalar_lea.vmem %s480_s0, %s371_s11  ;;  %s423_s17 = scalar_lea.vmem %s481_s1, %s371_s11 }
  0x11   : > { %v165_v0 = vld [vmem:[%s418_s14] sm:$0x3]  ;;  %v166_v1 = vld [vmem:[%s418_s14 + $0x2] sm:$0x3]  ;;  %v167_v2 = vld [vmem:[%s418_s14 + $0x4] sm:$0x3]  ;;  %s448_s21 = scalar_lea.vmem %s482_s2, %s372_s18 }
  0x12   : > { %v172_v3 = vld [vmem:[%s423_s17] sm:$0x3]  ;;  %v173_v4 = vld [vmem:[%s423_s17 + $0x2] sm:$0x3]  ;;  %v174_v5 = vld [vmem:[%s423_s17 + $0x4] sm:$0x3] }
  0x13   : > { %v187_v6 = vshrl.u32 %v165_v0, 16  ;;  %v190_v7 = vshll.u32 %v165_v0, 16  ;;  %v196_v8 = vshrl.u32 %v166_v1, 16  ;;  %v199_v9 = vshll.u32 %v166_v1, 16  ;;  %v168_v11 = vld [vmem:[%s418_s14 + $0x6] sm:$0x3] }
  0x14   : > { %v205_v10 = vshrl.u32 %v167_v2, 16  ;;  %v179_v12 = vmax.bf16 %v172_v3, %v165_v0  ;;  %v208_v14 = vshll.u32 %v167_v2, 16  ;;  %v169_v15 = vld [vmem:[%s418_s14 + $0x8] sm:$0x3]  ;;  %v175_v20 = vld [vmem:[%s423_s17 + $0x6] sm:$0x3]  ;;  %v180_v21 = vmax.bf16 %v173_v4, %v166_v1 }
  0x15   : > { %v189_v13 = vrot.slane %v187_v6, 6  ;;  %v192_v16 = vrot.slane %v190_v7, 7  ;;  %v198_v17 = vrot.slane %v196_v8, 6  ;;  %v201_v18 = vrot.slane %v199_v9, 7  ;;  %v176_v27 = vld [vmem:[%s423_s17 + $0x8] sm:$0x3] }
  0x16   : > { %v207_v19 = vrot.slane %v205_v10, 6  ;;  %v181_v22 = vmax.bf16 %v174_v5, %v167_v2  ;;  %v210_v23 = vrot.slane %v208_v14, 7  ;;  %v214_v24 = vshrl.u32 %v168_v11, 16  ;;  %v170_v30 = vld [vmem:[%s418_s14 + $0xa] sm:$0x3] }
  0x17   : > { %v193_v25 = vor.u32 %v192_v16, %v189_v13  ;;  %v202_v26 = vor.u32 %v201_v18, %v198_v17  ;;  %v217_v28 = vshll.u32 %v168_v11, 16  ;;  %v223_v29 = vshrl.u32 %v169_v15, 16  ;;  %v171_v39 = vld [vmem:[%s418_s14 + $0xc] sm:$0x3]  ;;  %v177_v48 = vld [vmem:[%s423_s17 + $0xa] sm:$0x3] }
  0x18   : > { %v211_v31 = vor.u32 %v210_v23, %v207_v19  ;;  %v182_v32 = vmax.bf16 %v175_v20, %v168_v11  ;;  %v216_v33 = vrot.slane %v214_v24, 6  ;;  %v226_v34 = vshll.u32 %v169_v15, 16  ;;  %v271_v62 = vld [vmem:[%s448_s21] sm:$0x3]  ;;  %v178_v5 = vld [vmem:[%s423_s17 + $0xc] sm:$0x3] }
  0x19   : > { %v194_v35 = vrot.slane %v193_v25, 2  ;;  %v203_v36 = vrot.slane %v202_v26, 2  ;;  %v219_v37 = vrot.slane %v217_v28, 7  ;;  %v225_v38 = vrot.slane %v223_v29, 6  ;;  %v367_v23 = vld [vmem:[%s448_s21 + $0x4] sm:$0x3] }
  0x1a   : > { %v212_v40 = vrot.slane %v211_v31, 2  ;;  %v183_v42 = vmax.bf16 %v176_v27, %v169_v15  ;;  %v228_v43 = vrot.slane %v226_v34, 7  ;;  %v232_v44 = vshrl.u32 %v170_v30, 16 }
  0x1b   : > { %v256_v45 = vmax.bf16 %v194_v35, %v179_v12  ;;  %v257_v46 = vmax.bf16 %v203_v36, %v180_v21  ;;  %v220_v47 = vor.u32 %v219_v37, %v216_v33  ;;  %v235_v49 = vshll.u32 %v170_v30, 16  ;;  %v365_v12 = vld [vmem:[%s448_s21 + $0x2] sm:$0x3] }
  0x1c   : > { %v258_v50 = vmax.bf16 %v212_v40, %v181_v22  ;;  %v229_v51 = vor.u32 %v228_v43, %v225_v38  ;;  %v234_v52 = vrot.slane %v232_v44, 6  ;;  %v241_v53 = vshrl.u32 %v171_v39, 16 }
  0x1d   : > { %v266_v54 = vsel %vm440_vm2, %v256_v45, 4286644096  ;;  %v267_v55 = vsel %vm440_vm2, %v257_v46, 4286644096  ;;  %v221_v56 = vrot.slane %v220_v47, 2  ;;  %v237_v57 = vrot.slane %v235_v49, 7 }
  0x1e   : > { %v268_v58 = vsel %vm440_vm2, %v258_v50, 4286644096  ;;  %v269_v59 = vmax.bf16 %v267_v55, %v266_v54  ;;  %v230_v60 = vrot.slane %v229_v51, 2  ;;  %v184_v61 = vmax.bf16 %v177_v48, %v170_v30 }
  0x1f   : > { %v259_v63 = vmax.bf16 %v221_v56, %v182_v32  ;;  %v238_v0 = vor.u32 %v237_v57, %v234_v52  ;;  %v243_v1 = vrot.slane %v241_v53, 6  ;;  %v244_v2 = vshll.u32 %v171_v39, 16 }
  0x20   : > { %v270_v3 = vmax.bf16 %v269_v59, %v268_v58  ;;  %v260_v4 = vmax.bf16 %v230_v60, %v183_v42  ;;  %v185_v13 = vmax.bf16 %v178_v5, %v171_v39 }
  0x21   : > { %v274_v6 = vsel %vm440_vm2, %v259_v63, 4286644096  ;;  %v239_v7 = vrot.slane %v238_v0, 2  ;;  %v246_v8 = vrot.slane %v244_v2, 7 }
  0x22   : > { %v272_v9 = vsel %vm440_vm2, %v270_v3, %v271_v62  ;;  %v276_v10 = vmax.bf16 %v274_v6, %v268_v58  ;;  %v275_v11 = vsel %vm440_vm2, %v260_v4, 4286644096 }
  0x23   : > { %273 = vst [vmem:[%s448_s21] sm:$0x3] %v272_v9  ;;  %v247_v14 = vor.u32 %v246_v8, %v243_v1  ;;  %v261_v15 = vmax.bf16 %v239_v7, %v184_v61 }
  0x24   : > { %v277_v16 = vmax.bf16 %v276_v10, %v275_v11 }
  0x25   : > { %v248_v17 = vrot.slane %v247_v14, 2  ;;  %v282_v18 = vsel %vm440_vm2, %v261_v15, 4286644096 }
  0x26   : > { %v280_v19 = vsel %vm440_vm2, %v277_v16, %v365_v12  ;;  %v284_v20 = vmax.bf16 %v282_v18, %v275_v11 }
  0x27   : > { %366 = vst [vmem:[%s448_s21 + $0x2] sm:$0x3] %v280_v19  ;;  %v262_v21 = vmax.bf16 %v248_v17, %v185_v13 }
  0x29   : > { %v283_v22 = vsel %vm440_vm2, %v262_v21, 4286644096 }
  0x2a   : > { %v285_v24 = vmax.bf16 %v284_v20, %v283_v22 }
  0x2c   : > { %v288_v25 = vsel %vm440_vm2, %v285_v24, %v367_v23 }
  0x2d   : > { %368 = vst [vmem:[%s448_s21 + $0x4] sm:$0x3] %v288_v25 }
  0x2e PF: > { %s12_s9 = sadd.s32 1, %s387_s9  }
  0x2f   : > { %p9_p4 = scmp.ge.s32.totalorder %s12_s9, 4  }
  0x31   :  { %11 = sbr.rel (!%p9_p4) target bundleno = 1 (0x1), region = 63 }

// kernel: forward.13
= control target key start
LH: loop header
LB: loop body
LE: loop exit
PB: predicated region body
PF: predicated region fallthrough
CT: control target
= control target key end

     0   :  { %s1604_s1 = inlined_call_operand.vmem [shape: bf16[1152,128], index: 1, kind: input, shape index: {}]   ;;  %s1605_s0 = inlined_call_operand.vmem [shape: bf16[18,1152], index: 0, kind: input, shape index: {}]   ;;  %s1606_s2 = inlined_call_operand.vmem [shape: f32[1,128], index: 2, kind: input, shape index: {}]   ;;  %s1607_s3 = inlined_call_operand.vmem [shape: bf16[18,128], index: 3, kind: output, shape index: {}]  }
   0x1   :  { %v1223_v0 = vld [vmem:[%s1604_s1 + $0x40] sm:$0xff]   ;;  %v1227_v4 = vld [vmem:[%s1604_s1 + $0x48] sm:$0xff]   ;;  %v1231_v8 = vld [vmem:[%s1604_s1 + $0x50] sm:$0xff]  }
   0x2   :  { %v1224_v1 = vld [vmem:[%s1604_s1 + $0xc0] sm:$0xff]   ;;  %1081 = vmatprep.subr.bf16.mxu0 %v1223_v0  ;;  %v1228_v5 = vld [vmem:[%s1604_s1 + $0xc8] sm:$0xff]   ;;  %v1232_v9 = vld [vmem:[%s1604_s1 + $0xd0] sm:$0xff]  }
   0x3   :  { %v1225_v2 = vld [vmem:[%s1604_s1] sm:$0xff]   ;;  %1109 = vmatprep.subr.bf16.mxu1 %v1224_v1  ;;  %v1229_v6 = vld [vmem:[%s1604_s1 + $0x8] sm:$0xff]   ;;  %v1233_v10 = vld [vmem:[%s1604_s1 + $0x10] sm:$0xff]  }
   0x4   :  { %v1226_v3 = vld [vmem:[%s1604_s1 + $0x80] sm:$0xff]   ;;  %1082 = vmatpush3.bf16.msra.mxu0 %v1225_v2  ;;  %v1230_v7 = vld [vmem:[%s1604_s1 + $0x88] sm:$0xff]   ;;  %v1234_v11 = vld [vmem:[%s1604_s1 + $0x90] sm:$0xff]  }
   0x5   :  { %1110 = vmatpush3.bf16.msra.mxu1 %v1226_v3  ;;  %1083 = vmatprep.subr.bf16.mxu0 %v1227_v4  ;;  %v1235_v12 = vld [vmem:[%s1604_s1 + $0x58] sm:$0xff]   ;;  %v1239_v16 = vld [vmem:[%s1604_s1 + $0x60] sm:$0xff]   ;;  %v1243_v20 = vld [vmem:[%s1604_s1 + $0x68] sm:$0xff]  }
   0x6   :  { %1111 = vmatprep.subr.bf16.mxu1 %v1228_v5  ;;  %v1236_v13 = vld [vmem:[%s1604_s1 + $0xd8] sm:$0xff]   ;;  %v1240_v17 = vld [vmem:[%s1604_s1 + $0xe0] sm:$0xff]   ;;  %v1244_v21 = vld [vmem:[%s1604_s1 + $0xe8] sm:$0xff]  }
   0x7   :  { %v1237_v14 = vld [vmem:[%s1604_s1 + $0x18] sm:$0xff]   ;;  %v1241_v18 = vld [vmem:[%s1604_s1 + $0x20] sm:$0xff]   ;;  %v1245_v22 = vld [vmem:[%s1604_s1 + $0x28] sm:$0xff]  }
   0x8   :  { %1084 = vmatpush3.bf16.msra.mxu0 %v1229_v6  ;;  %v1238_v15 = vld [vmem:[%s1604_s1 + $0x98] sm:$0xff]   ;;  %v1242_v19 = vld [vmem:[%s1604_s1 + $0xa0] sm:$0xff]   ;;  %v1246_v23 = vld [vmem:[%s1604_s1 + $0xa8] sm:$0xff]  }
   0x9   :  { %1112 = vmatpush3.bf16.msra.mxu1 %v1230_v7  ;;  %1085 = vmatprep.subr.bf16.mxu0 %v1231_v8  ;;  %v1247_v24 = vld [vmem:[%s1604_s1 + $0x70] sm:$0xff]   ;;  %v1251_v28 = vld [vmem:[%s1604_s1 + $0x78] sm:$0xff]   ;;  %v1255_v32 = vld [vmem:[%s1605_s0] ss:$36 sps:$4 sm:$0xff]  }
   0xa   :  { %1113 = vmatprep.subr.bf16.mxu1 %v1232_v9  ;;  %v1248_v25 = vld [vmem:[%s1604_s1 + $0xf0] sm:$0xff]   ;;  %v1252_v29 = vld [vmem:[%s1604_s1 + $0xf8] sm:$0xff]   ;;  %v1257_v33 = vld [vmem:[%s1605_s0 + $0x4] ss:$36 sps:$4 sm:$0xff]  }
   0xb   :  { %v1249_v26 = vld [vmem:[%s1604_s1 + $0x30] sm:$0xff]   ;;  %v1253_v30 = vld [vmem:[%s1604_s1 + $0x38] sm:$0xff]   ;;  %v1258_v34 = vld [vmem:[%s1605_s0 + $0x8] ss:$36 sps:$4 sm:$0xff]   ;;  %726 = vmatprep.mubr.bf16.mxu0 %v1257_v33 }
   0xc   :  { %1086 = vmatpush3.bf16.msra.mxu0 %v1233_v10  ;;  %v1250_v27 = vld [vmem:[%s1604_s1 + $0xb0] sm:$0xff]   ;;  %v1254_v31 = vld [vmem:[%s1604_s1 + $0xb8] sm:$0xff]   ;;  %v1261_v36 = vld [vmem:[%s1604_s1 + $0x140] sm:$0xff]  }
   0xd   :  { %1114 = vmatpush3.bf16.msra.mxu1 %v1234_v11  ;;  %1087 = vmatprep.subr.bf16.mxu0 %v1235_v12  ;;  %v1260_v35 = vld [vmem:[%s1605_s0 + $0xc] ss:$36 sps:$4 sm:$0xff]   ;;  %v1262_v37 = vld [vmem:[%s1604_s1 + $0x100] sm:$0xff]   ;;  %v1273_v48 = vld [vmem:[%s1604_s1 + $0x158] sm:$0xff]  }
   0xe   :  { %1115 = vmatprep.subr.bf16.mxu1 %v1236_v13  ;;  %774 = vmatprep.mubr.bf16.mxu1 %v1260_v35  ;;  %v1263_v38 = vld [vmem:[%s1604_s1 + $0x1c0] sm:$0xff]   ;;  %v1265_v40 = vld [vmem:[%s1604_s1 + $0x148] sm:$0xff]   ;;  %v1269_v44 = vld [vmem:[%s1604_s1 + $0x150] sm:$0xff]  }
   0xf   :  { %v1264_v39 = vld [vmem:[%s1604_s1 + $0x180] sm:$0xff]   ;;  %v1266_v41 = vld [vmem:[%s1604_s1 + $0x108] sm:$0xff]   ;;  %v1270_v45 = vld [vmem:[%s1604_s1 + $0x110] sm:$0xff]  }
  0x10   :  { %1088 = vmatpush3.bf16.msra.mxu0 %v1237_v14  ;;  %v1267_v42 = vld [vmem:[%s1604_s1 + $0x1c8] sm:$0xff]   ;;  %v1271_v46 = vld [vmem:[%s1604_s1 + $0x1d0] sm:$0xff]   ;;  %v1274_v49 = vld [vmem:[%s1604_s1 + $0x118] sm:$0xff]  }
  0x11   :  { %1116 = vmatpush3.bf16.msra.mxu1 %v1238_v15  ;;  %1089 = vmatprep.subr.bf16.mxu0 %v1239_v16  ;;  %v1268_v43 = vld [vmem:[%s1604_s1 + $0x188] sm:$0xff]   ;;  %v1272_v47 = vld [vmem:[%s1604_s1 + $0x190] sm:$0xff]   ;;  %v1275_v50 = vld [vmem:[%s1604_s1 + $0x1d8] sm:$0xff]  }
  0x12   :  { %1117 = vmatprep.subr.bf16.mxu1 %v1240_v17  ;;  %v1276_v51 = vld [vmem:[%s1604_s1 + $0x198] sm:$0xff]   ;;  %v1277_v52 = vld [vmem:[%s1604_s1 + $0x160] sm:$0xff]   ;;  %v1281_v56 = vld [vmem:[%s1604_s1 + $0x168] sm:$0xff]  }
  0x13   :  { %v1278_v53 = vld [vmem:[%s1604_s1 + $0x120] sm:$0xff]   ;;  %v35_v57 = vld [vmem:[%s1605_s0 + $0x48] sm:$0xff]  ;;  %v36_v62 = vld [vmem:[%s1605_s0 + $0x50] sm:$0xff] }
  0x14   :  { %1090 = vmatpush3.bf16.msra.mxu0 %v1241_v18  ;;  %v1279_v54 = vld [vmem:[%s1604_s1 + $0x1e0] sm:$0xff]   ;;  %v989_v58 = vcombine.high %v35_v57, %v35_v57  ;;  %v1283_v59 = vld [vmem:[%s1604_s1 + $0x128] sm:$0xff]   ;;  %v988_v60 = vcombine.low %v35_v57, %v35_v57  ;;  %v991_v63 = vcombine.high %v36_v62, %v36_v62  ;;  %v990_v1 = vcombine.low %v36_v62, %v36_v62  ;;  %v1289_v2 = vld [vmem:[%s1604_s1 + $0x170] sm:$0xff]  }
  0x15   :  { %1118 = vmatpush3.bf16.msra.mxu1 %v1242_v19  ;;  %1091 = vmatprep.subr.bf16.mxu0 %v1243_v20  ;;  %v1280_v55 = vld [vmem:[%s1604_s1 + $0x1a0] sm:$0xff]   ;;  %v1285_v61 = vld [vmem:[%s1604_s1 + $0x1e8] sm:$0xff]   ;;  %v1290_v3 = vld [vmem:[%s1604_s1 + $0x130] sm:$0xff]  }
  0x16   :  { %1119 = vmatprep.subr.bf16.mxu1 %v1244_v21  ;;  %v1287_v0 = vld [vmem:[%s1604_s1 + $0x1a8] sm:$0xff]   ;;  %v1291_v4 = vld [vmem:[%s1604_s1 + $0x1f0] sm:$0xff]   ;;  %v1293_v6 = vld [vmem:[%s1604_s1 + $0x178] sm:$0xff]  }
  0x17   :  { %v1292_v5 = vld [vmem:[%s1604_s1 + $0x1b0] sm:$0xff]   ;;  %v1294_v7 = vld [vmem:[%s1604_s1 + $0x138] sm:$0xff]   ;;  %v1300_v12 = vld [vmem:[%s1604_s1 + $0x200] sm:$0xff]  }
  0x18   :  { %1092 = vmatpush3.bf16.msra.mxu0 %v1245_v22  ;;  %v1295_v8 = vld [vmem:[%s1604_s1 + $0x1f8] sm:$0xff]   ;;  %v1296_v9 = vld [vmem:[%s1605_s0 + $0x10] ss:$36 sps:$4 sm:$0xff]   ;;  %v1304_v15 = vld [vmem:[%s1604_s1 + $0x208] sm:$0xff]  }
  0x19   :  { %1120 = vmatpush3.bf16.msra.mxu1 %v1246_v23  ;;  %1093 = vmatprep.subr.bf16.mxu0 %v1247_v24  ;;  %v1298_v10 = vld [vmem:[%s1605_s0 + $0x14] ss:$36 sps:$4 sm:$0xff]   ;;  %v1303_v14 = vld [vmem:[%s1605_s0 + $0x1c] ss:$36 sps:$4 sm:$0xff]  }
  0x1a   :  { %1121 = vmatprep.subr.bf16.mxu1 %v1248_v25  ;;  %v1299_v11 = vld [vmem:[%s1604_s1 + $0x1b8] sm:$0xff]   ;;  %v1307_v18 = vld [vmem:[%s1604_s1 + $0x210] sm:$0xff]   ;;  %v38_v19 = vld [vmem:[%s1605_s0 + $0x60] sm:$0xff] }
  0x1b   :  { %v1301_v13 = vld [vmem:[%s1605_s0 + $0x18] ss:$36 sps:$4 sm:$0xff]   ;;  %v995_v21 = vcombine.high %v38_v19, %v38_v19  ;;  %v994_v22 = vcombine.low %v38_v19, %v38_v19  ;;  %v1315_v24 = vld [vmem:[%s1605_s0 + $0x20] ss:$36 sps:$4 sm:$0xff]  }
  0x1c   :  { %1094 = vmatpush3.bf16.msra.mxu0 %v1249_v26  ;;  %v37_v16 = vld [vmem:[%s1605_s0 + $0x58] sm:$0xff]  ;;  %v1311_v25 = vld [vmem:[%s1604_s1 + $0x220] sm:$0xff]   ;;  %v1312_v26 = vld [vmem:[%s1604_s1 + $0x228] sm:$0xff]  }
  0x1d   :  { %1122 = vmatpush3.bf16.msra.mxu1 %v1250_v27  ;;  %1095 = vmatprep.subr.bf16.mxu0 %v1251_v28  ;;  %v993_v17 = vcombine.high %v37_v16, %v37_v16  ;;  %v992_v20 = vcombine.low %v37_v16, %v37_v16  ;;  %v1310_v23 = vld [vmem:[%s1604_s1 + $0x218] sm:$0xff]   ;;  %v1313_v27 = vld [vmem:[%s1604_s1 + $0x230] sm:$0xff]  }
  0x1e   :  { %1123 = vmatprep.subr.bf16.mxu1 %v1252_v29  ;;  %v1314_v28 = vld [vmem:[%s1604_s1 + $0x238] sm:$0xff]   ;;  %v1316_v29 = vld [vmem:[%s1605_s0 + $0x68] ss:$0 sps:$4 sm:$0xff]  }
  0x20   :  { %1096 = vmatpush3.bf16.msra.mxu0 %v1253_v30 }
  0x21   :  { %1124 = vmatpush3.bf16.msra.mxu1 %v1254_v31  ;;  %1137 = vmatprep.subr.bf16.mxu0 %v1261_v36 }
  0x22   :  { %1165 = vmatprep.subr.bf16.mxu1 %v1263_v38 }
  0x23   :  { %727 = vmatmul.mubr.bf16.vlgmr.msra.gmra.mrb[0].mxu0 %v1255_v32 }
  0x24   :  { %775 = vmatmul.mubr.bf16.vlgmr.msra.gmra.mrb[0].mxu1 %v1258_v34  ;;  %1138 = vmatpush3.bf16.msra.mxu0 %v1262_v37 }
  0x25   :  { %1166 = vmatpush3.bf16.msra.mxu1 %v1264_v39  ;;  %1139 = vmatprep.subr.bf16.mxu0 %v1265_v40 }
  0x26   :  { %1167 = vmatprep.subr.bf16.mxu1 %v1267_v42  ;;  %734 = vmatprep.mubr.bf16.mxu0 %v989_v58 }
  0x27   :  { %782 = vmatprep.mubr.bf16.mxu1 %v991_v63 }
  0x28   :  { %1140 = vmatpush3.bf16.msra.mxu0 %v1266_v41 }
  0x29   :  { %1168 = vmatpush3.bf16.msra.mxu1 %v1268_v43  ;;  %1141 = vmatprep.subr.bf16.mxu0 %v1269_v44 }
  0x2a   :  { %1169 = vmatprep.subr.bf16.mxu1 %v1271_v46 }
  0x2b   :  { %735 = vmatmul.mubr.bf16.gmra.mrb[4].mxu0 %v988_v60 }
  0x2c   :  { %1142 = vmatpush3.bf16.msra.mxu0 %v1270_v45  ;;  %783 = vmatmul.mubr.bf16.gmra.mrb[4].mxu1 %v990_v1 }
  0x2d   :  { %1170 = vmatpush3.bf16.msra.mxu1 %v1272_v47  ;;  %1143 = vmatprep.subr.bf16.mxu0 %v1273_v48 }
  0x2e   :  { %1171 = vmatprep.subr.bf16.mxu1 %v1275_v50  ;;  %822 = vmatprep.mubr.bf16.mxu0 %v1298_v10 }
  0x2f   :  { %870 = vmatprep.mubr.bf16.mxu1 %v1303_v14 }
  0x30   :  { %1144 = vmatpush3.bf16.msra.mxu0 %v1274_v49 }
  0x31   :  { %1172 = vmatpush3.bf16.msra.mxu1 %v1276_v51  ;;  %1145 = vmatprep.subr.bf16.mxu0 %v1277_v52 }
  0x32   :  { %1173 = vmatprep.subr.bf16.mxu1 %v1279_v54 }
  0x34   :  { %1146 = vmatpush3.bf16.msra.mxu0 %v1278_v53 }
  0x35   :  { %1174 = vmatpush3.bf16.msra.mxu1 %v1280_v55  ;;  %1147 = vmatprep.subr.bf16.mxu0 %v1281_v56 }
  0x36   :  { %1175 = vmatprep.subr.bf16.mxu1 %v1285_v61 }
  0x38   :  { %1148 = vmatpush3.bf16.msra.mxu0 %v1283_v59 }
  0x39   :  { %1176 = vmatpush3.bf16.msra.mxu1 %v1287_v0  ;;  %1149 = vmatprep.subr.bf16.mxu0 %v1289_v2 }
  0x3a   :  { %1177 = vmatprep.subr.bf16.mxu1 %v1291_v4 }
  0x3c   :  { %1150 = vmatpush3.bf16.msra.mxu0 %v1290_v3 }
  0x3d   :  { %1178 = vmatpush3.bf16.msra.mxu1 %v1292_v5  ;;  %1151 = vmatprep.subr.bf16.mxu0 %v1293_v6 }
  0x3e   :  { %1179 = vmatprep.subr.bf16.mxu1 %v1295_v8 }
  0x40   :  { %1152 = vmatpush3.bf16.msra.mxu0 %v1294_v7 }
  0x41   :  { %1180 = vmatpush3.bf16.msra.mxu1 %v1299_v11  ;;  %1203 = vmatprep.subr.bf16.mxu0 %v1300_v12 }
  0x43   :  { %823 = vmatmul.mubr.bf16.vlgmr.msra.gmra.mrb[8].mxu0 %v1296_v9 }
  0x44   :  { %1204 = vmatpush3.bf16.msra.mxu0 %v1300_v12  ;;  %871 = vmatmul.mubr.bf16.vlgmr.msra.gmra.mrb[8].mxu1 %v1301_v13 }
  0x45   :  { %1205 = vmatprep.subr.bf16.mxu0 %v1304_v15  ;;  %830 = vmatprep.mubr.bf16.mxu0 %v993_v17 }
  0x46   :  { %878 = vmatprep.mubr.bf16.mxu1 %v995_v21 }
  0x48   :  { %1206 = vmatpush3.bf16.msra.mxu0 %v1304_v15 }
  0x49   :  { %1207 = vmatprep.subr.bf16.mxu0 %v1307_v18 }
  0x4b   :  { %831 = vmatmul.mubr.bf16.gmra.mrb[12].mxu0 %v992_v20  ;;  %v1069_v20 = vld [vmem:[%s1606_s2] ss:$0 sm:$0xff] }
  0x4c   :  { %1208 = vmatpush3.bf16.msra.mxu0 %v1307_v18  ;;  %879 = vmatmul.mubr.bf16.gmra.mrb[12].mxu1 %v994_v22 }
  0x4d   :  { %1209 = vmatprep.subr.bf16.mxu0 %v1310_v23  ;;  %1219 = vmatprep.mubr.bf16.mxu0 %v1315_v24 }
  0x50   :  { %1210 = vmatpush3.bf16.msra.mxu0 %v1310_v23 }
  0x51   :  { %1211 = vmatprep.subr.bf16.mxu0 %v1311_v25 }
  0x54   :  { %1212 = vmatpush3.bf16.msra.mxu0 %v1311_v25 }
  0x55   :  { %1213 = vmatprep.subr.bf16.mxu0 %v1312_v26 }
  0x58   :  { %1214 = vmatpush3.bf16.msra.mxu0 %v1312_v26 }
  0x59   :  { %1215 = vmatprep.subr.bf16.mxu0 %v1313_v27 }
  0x5c   :  { %1216 = vmatpush3.bf16.msra.mxu0 %v1313_v27 }
  0x5d   :  { %1217 = vmatprep.subr.bf16.mxu0 %v1314_v28 }
  0x60   :  { %1218 = vmatpush3.bf16.msra.mxu0 %v1314_v28 }
  0x63   :  { %1220 = vmatmul.mubr.bf16.vlgmr.msra.gmra.mrb[16].mxu0 %v1316_v29 }
  0xf6   :  { %v1097_v30 = vpop.f32.mrb[0].mxu0 }
  0xf7   :  { %v1125_v31 = vpop.f32.mrb[0].mxu1  ;;  %v1098_v32 = vpop.f32.mrb[1].mxu0 }
  0xf8   :  { %v1099_v33 = vadd.f32 %v1098_v32, %v1097_v30  ;;  %v1126_v34 = vpop.f32.mrb[1].mxu1  ;;  %v1100_v35 = vpop.f32.mrb[2].mxu0 }
  0xf9   :  { %v1127_v36 = vadd.f32 %v1126_v34, %v1125_v31  ;;  %v1128_v37 = vpop.f32.mrb[2].mxu1  ;;  %v1101_v38 = vpop.f32.mrb[3].mxu0 }
  0xfa   :  { %v1102_v39 = vadd.f32 %v1101_v38, %v1100_v35  ;;  %v1129_v40 = vpop.f32.mrb[3].mxu1 }
  0xfb   :  { %v777_v41 = vadd.f32 %v1127_v36, %v1099_v33  ;;  %v1130_v42 = vadd.f32 %v1129_v40, %v1128_v37 }
  0xfd   :  { %v780_v43 = vadd.f32 %v1130_v42, %v1102_v39 }
  0xfe   :  { %v1103_v44 = vpop.f32.mrb[4].mxu0 }
  0xff   :  { %v1104_v45 = vpop.f32.mrb[5].mxu0  ;;  %v1131_v48 = vpop.f32.mrb[4].mxu1 }
 0x100   :  { %v1105_v46 = vadd.f32 %v1104_v45, %v1103_v44  ;;  %v1106_v47 = vpop.f32.mrb[6].mxu0  ;;  %v1132_v50 = vpop.f32.mrb[5].mxu1 }
 0x101   :  { %v1107_v49 = vpop.f32.mrb[7].mxu0  ;;  %v1133_v51 = vadd.f32 %v1132_v50, %v1131_v48  ;;  %v1134_v52 = vpop.f32.mrb[6].mxu1 }
 0x102   :  { %v1135_v53 = vpop.f32.mrb[7].mxu1 }
 0x103   :  { %v785_v54 = vadd.f32 %v1133_v51, %v1105_v46 }
 0x116   :  { %v1153_v55 = vpop.f32.mrb[8].mxu0 }
 0x117   :  { %v1154_v56 = vpop.f32.mrb[9].mxu0  ;;  %v1181_v59 = vpop.f32.mrb[8].mxu1 }
 0x118   :  { %v1155_v57 = vadd.f32 %v1154_v56, %v1153_v55  ;;  %v1156_v58 = vpop.f32.mrb[10].mxu0  ;;  %v1182_v63 = vpop.f32.mrb[9].mxu1 }
 0x119   :  { %v1157_v60 = vpop.f32.mrb[11].mxu0  ;;  %v1183_v0 = vadd.f32 %v1182_v63, %v1181_v59  ;;  %v1184_v1 = vpop.f32.mrb[10].mxu1 }
 0x11a   :  { %v825_v61 = vadd.f32 %v1155_v57, %v777_v41  ;;  %v1158_v62 = vadd.f32 %v1157_v60, %v1156_v58  ;;  %v1185_v3 = vpop.f32.mrb[11].mxu1 }
 0x11b   :  { %v1186_v4 = vadd.f32 %v1185_v3, %v1184_v1 }
 0x11c   :  { %v828_v2 = vadd.f32 %v1158_v62, %v780_v43  ;;  %v873_v5 = vadd.f32 %v1183_v0, %v825_v61 }
 0x11e   :  { %v1159_v6 = vpop.f32.mrb[12].mxu0  ;;  %v876_v8 = vadd.f32 %v1186_v4, %v828_v2 }
 0x11f   :  { %v1160_v7 = vpop.f32.mrb[13].mxu0  ;;  %v1187_v11 = vpop.f32.mrb[12].mxu1 }
 0x120   :  { %v1161_v9 = vadd.f32 %v1160_v7, %v1159_v6  ;;  %v1162_v10 = vpop.f32.mrb[14].mxu0  ;;  %v1188_v14 = vpop.f32.mrb[13].mxu1 }
 0x121   :  { %v1163_v12 = vpop.f32.mrb[15].mxu0  ;;  %v1189_v15 = vadd.f32 %v1188_v14, %v1187_v11  ;;  %v1190_v16 = vpop.f32.mrb[14].mxu1 }
 0x122   :  { %v833_v13 = vadd.f32 %v1161_v9, %v785_v54  ;;  %v1191_v17 = vpop.f32.mrb[15].mxu1 }
 0x124   :  { %v881_v18 = vadd.f32 %v1189_v15, %v833_v13 }
 0x136   :  { %v1221_v19 = vpop.f32.mrb[16].mxu0 }
 0x137   :  { %v929_v21 = vadd.f32 %v1221_v19, %v881_v18  ;;  %v920_v22 = vpop.f32.mrb[17].mxu0 }
 0x138   :  { %v921_v23 = vadd.f32 %v920_v22, %v873_v5  ;;  %v1222_v24 = vpop.f32.mrb[18].mxu0 }
 0x139   :  { %v955_v25 = vadd.f32 %v1069_v20, %v929_v21  ;;  %v923_v26 = vpop.f32.mrb[19].mxu0 }
 0x13a   :  { %v953_v27 = vadd.f32 %v1069_v20, %v921_v23  ;;  %v924_v28 = vadd.f32 %v923_v26, %v876_v8 }
 0x13b   :  { %v958_v29 = vmax.f32 %v955_v25, 0.0 }
 0x13c   :  { %v954_v30 = vadd.f32 %v1069_v20, %v924_v28  ;;  %v956_v32 = vmax.f32 %v953_v27, 0.0 }
 0x13d   :  { %v1075_v31 = vpack.c.bf16 %v958_v29, %v958_v29 }
 0x13e   :  { %v957_v33 = vmax.f32 %v954_v30, 0.0 }
 0x13f   :  { %974 = vst [vmem:[%s1607_s3 + $0x8] sm:$0xf] %v1075_v31 }
 0x140   :  { %v1079_v34 = vpack.c.bf16 %v957_v33, %v956_v32 }
 0x142   :  { %1080 = vst [vmem:[%s1607_s3] sm:$0xff] %v1079_v34  }

// kernel: forward.16
= control target key start
LH: loop header
LB: loop body
LE: loop exit
PB: predicated region body
PF: predicated region fallthrough
CT: control target
= control target key end

     0   :  { %s297_s9 = smov 0   ;;  %s317_s0 = inlined_call_operand.vmem [shape: bf16[2,3,2,128], index: 0, kind: input, shape index: {}]   ;;  %s318_s1 = inlined_call_operand.vmem [shape: bf16[2,3,1,128], index: 1, kind: input, shape index: {}]   ;;  %s319_s2 = inlined_call_operand.vmem [shape: bf16[2,1,1,128], index: 2, kind: output, shape index: {}]  }
   0x1 LB: > { %s255_s10 = sadd.s32 4294967295, %s280_s9   ;;  %p259_p0 = scmp.ge.s32.totalorder %s280_s9, 1  ;;  %s280_s9 = sphi %s297_s9, %s12_s9  }
   0x2   : > { %p120_p1 = scmp.lt.s32.totalorder %s280_s9, 3 }
   0x4   : > { %p121_p2 = pnand %p259_p0, %p120_p1 }
   0x5   : > { %p143_p3 = scmp.lt.s32.totalorder (!%p121_p2), %s255_s10, 1  ;;  %vm185_vm0 = vcmask (!%p121_p2), 1040384   ;;  %vm186_vm1 = vsmask.f32 (!%p121_p2), 256 }
   0x6   : > { %124 = sbr.rel (%p121_p2) target bundleno = 31 (0x1f), region = 28  ;;  %vm187_vm2 = vmand (!%p121_p2), %vm185_vm0, %vm186_vm1 }
   0xd   : > { %s321_s10 = smov (!%p143_p3, %s255_s10), 1 }
   0xe   : > { %s265_s11 = smul.u32 3, %s321_s10  ;;  %s153_s20 = scalar_lea.vmem %s319_s2, %s321_s10 }
   0xf   : > { %v193_v19 = vld [vmem:[%s153_s20] sm:$0x1] }
  0x10   : > { %s146_s14 = scalar_lea.vmem %s317_s0, %s265_s11  ;;  %s150_s17 = scalar_lea.vmem %s318_s1, %s265_s11 }
  0x11   : > { %v155_v0 = vld [vmem:[%s146_s14] sm:$0x1]  ;;  %v156_v1 = vld [vmem:[%s146_s14 + $0x1] sm:$0x1]  ;;  %v157_v2 = vld [vmem:[%s146_s14 + $0x2] sm:$0x1] }
  0x12   : > { %v158_v3 = vld [vmem:[%s150_s17] sm:$0x1]  ;;  %v159_v4 = vld [vmem:[%s150_s17 + $0x1] sm:$0x1]  ;;  %v160_v5 = vld [vmem:[%s150_s17 + $0x2] sm:$0x1] }
  0x13   : > { %v161_v6 = vmax.bf16 %v158_v3, %v155_v0  ;;  %v162_v7 = vmax.bf16 %v159_v4, %v156_v1  ;;  %v163_v8 = vmax.bf16 %v160_v5, %v157_v2  ;;  %v165_v9 = vshrl.u32 %v155_v0, 16 }
  0x14   : > { %v170_v10 = vshrl.u32 %v156_v1, 16  ;;  %v175_v11 = vshrl.u32 %v157_v2, 16 }
  0x15   : > { %v182_v12 = vmax.bf16 %v165_v9, %v161_v6 }
  0x16   : > { %v183_v13 = vmax.bf16 %v170_v10, %v162_v7  ;;  %v184_v14 = vmax.bf16 %v175_v11, %v163_v8 }
  0x17   : > { %v188_v15 = vsel %vm187_vm2, %v182_v12, 4286644096 }
  0x18   : > { %v189_v16 = vsel %vm187_vm2, %v183_v13, 4286644096  ;;  %v190_v17 = vsel %vm187_vm2, %v184_v14, 4286644096 }
  0x19   : > { %v191_v18 = vmax.bf16 %v189_v16, %v188_v15 }
  0x1b   : > { %v192_v20 = vmax.bf16 %v191_v18, %v190_v17 }
  0x1d   : > { %v194_v21 = vsel %vm187_vm2, %v192_v20, %v193_v19 }
  0x1e   : > { %195 = vst [vmem:[%s153_s20] sm:$0x1] %v194_v21 }
  0x1f PF: > { %s12_s9 = sadd.s32 1, %s280_s9  }
  0x20   : > { %p9_p4 = scmp.ge.s32.totalorder %s12_s9, 4  }
  0x22   :  { %11 = sbr.rel (!%p9_p4) target bundleno = 1 (0x1), region = 61 }

// kernel: forward.17
= control target key start
LH: loop header
LB: loop body
LE: loop exit
PB: predicated region body
PF: predicated region fallthrough
CT: control target
= control target key end

     0   :  { %v911_v1 = vmov 0   ;;  %v912_v50 = vmov 0.0   ;;  %vm913_vm0 = vmmov 0   ;;  %vm509_vm1 = vcmask 1041408   ;;  %s1189_s2 = inlined_call_operand.vmem [shape: bf16[128,256], index: 2, kind: input, shape index: {}]   ;;  %s1190_s4 = inlined_call_operand.vmem [shape: bf16[256,256], index: 4, kind: input, shape index: {}]   ;;  %s1191_s0 = inlined_call_operand.vmem [shape: bf16[8,128], index: 0, kind: input, shape index: {}]   ;;  %s1192_s7 = inlined_call_operand.vmem [shape: bf16[68,128], index: 7, kind: input, shape index: {}]   ;;  %s1193_s6 = inlined_call_operand.vmem [shape: bf16[256,128], index: 6, kind: input, shape index: {}]   ;;  %s1194_s1 = inlined_call_operand.vmem [shape: bf16[8,68], index: 1, kind: input, shape index: {}]   ;;  %s1195_s3 = inlined_call_operand.vmem [shape: f32[1,256], index: 3, kind: input, shape index: {}]   ;;  %s1196_s5 = inlined_call_operand.vmem [shape: f32[1,256], index: 5, kind: input, shape index: {}]   ;;  %s1197_s8 = inlined_call_operand.vmem [shape: f32[1,128], index: 8, kind: input, shape index: {}]   ;;  %s1198_s9 = inlined_call_operand.vmem [shape: f32[8,128], index: 9, kind: output, shape index: {}]  }
   0x1   :  { %v818_v0 = vld [vmem:[%s1189_s2 + $0x4] ss:$8 sps:$4 sm:$0xff]   ;;  %174 = vmatprep.mubr.bf16.mxu0 %v911_v1  ;;  %v820_v2 = vld [vmem:[%s1189_s2] ss:$8 sps:$4 sm:$0xff]   ;;  %v821_v3 = vld [vmem:[%s1189_s2 + $0x14] ss:$8 sps:$4 sm:$0xff]  }
   0x2   :  { %142 = vmatprep.subr.bf16.mxu0 %v818_v0  ;;  %v823_v4 = vld [vmem:[%s1189_s2 + $0x10] ss:$8 sps:$4 sm:$0xff]   ;;  %v824_v5 = vld [vmem:[%s1189_s2 + $0x24] ss:$8 sps:$4 sm:$0xff]   ;;  %v826_v6 = vld [vmem:[%s1189_s2 + $0x20] ss:$8 sps:$4 sm:$0xff]  }
   0x3   :  { %143 = vmatpush1.bf16.msra.mxu0 %v820_v2  ;;  %v827_v7 = vld [vmem:[%s1189_s2 + $0x34] ss:$8 sps:$4 sm:$0xff]   ;;  %v829_v8 = vld [vmem:[%s1189_s2 + $0x30] ss:$8 sps:$4 sm:$0xff]   ;;  %v830_v9 = vld [vmem:[%s1189_s2 + $0x44] ss:$8 sps:$4 sm:$0xff]  }
   0x4   :  { %144 = vmatprep.subr.bf16.mxu0 %v821_v3  ;;  %v842_v10 = vld [vmem:[%s1190_s4 + $0x4] ss:$8 sps:$4 sm:$0xff]   ;;  %v844_v11 = vld [vmem:[%s1190_s4] ss:$8 sps:$4 sm:$0xff]   ;;  %v845_v12 = vld [vmem:[%s1190_s4 + $0x14] ss:$8 sps:$4 sm:$0xff]  }
   0x5   :  { %391 = vmatprep.subr.bf16.mxu1 %v842_v10  ;;  %v832_v13 = vld [vmem:[%s1189_s2 + $0x40] ss:$8 sps:$4 sm:$0xff]   ;;  %v847_v14 = vld [vmem:[%s1190_s4 + $0x10] ss:$8 sps:$4 sm:$0xff]   ;;  %v848_v15 = vld [vmem:[%s1190_s4 + $0x24] ss:$8 sps:$4 sm:$0xff]  }
   0x6   :  { %392 = vmatpush1.bf16.msra.mxu1 %v844_v11  ;;  %v833_v16 = vld [vmem:[%s1189_s2 + $0x54] ss:$8 sps:$4 sm:$0xff]   ;;  %v835_v17 = vld [vmem:[%s1189_s2 + $0x50] ss:$8 sps:$4 sm:$0xff]   ;;  %v850_v18 = vld [vmem:[%s1190_s4 + $0x20] ss:$8 sps:$4 sm:$0xff]  }
   0x7   :  { %145 = vmatpush1.bf16.msra.mxu0 %v823_v4  ;;  %393 = vmatprep.subr.bf16.mxu1 %v845_v12  ;;  %v851_v19 = vld [vmem:[%s1190_s4 + $0x34] ss:$8 sps:$4 sm:$0xff]   ;;  %v836_v20 = vld [vmem:[%s1189_s2 + $0x64] ss:$8 sps:$4 sm:$0xff]   ;;  %v838_v21 = vld [vmem:[%s1189_s2 + $0x60] ss:$8 sps:$4 sm:$0xff]  }
   0x8   :  { %146 = vmatprep.subr.bf16.mxu0 %v824_v5  ;;  %v853_v22 = vld [vmem:[%s1190_s4 + $0x30] ss:$8 sps:$4 sm:$0xff]   ;;  %v854_v23 = vld [vmem:[%s1190_s4 + $0x44] ss:$8 sps:$4 sm:$0xff]   ;;  %v839_v24 = vld [vmem:[%s1189_s2 + $0x74] ss:$8 sps:$4 sm:$0xff]  }
   0x9   :  { %v841_v25 = vld [vmem:[%s1189_s2 + $0x70] ss:$8 sps:$4 sm:$0xff]   ;;  %v856_v26 = vld [vmem:[%s1190_s4 + $0x40] ss:$8 sps:$4 sm:$0xff]   ;;  %v857_v27 = vld [vmem:[%s1190_s4 + $0x54] ss:$8 sps:$4 sm:$0xff]  }
   0xa   :  { %394 = vmatpush1.bf16.msra.mxu1 %v847_v14  ;;  %v859_v28 = vld [vmem:[%s1190_s4 + $0x50] ss:$8 sps:$4 sm:$0xff]   ;;  %v33_v29 = vld [vmem:[%s1191_s0] sm:$0xf]  ;;  %v860_v30 = vld [vmem:[%s1190_s4 + $0x64] ss:$8 sps:$4 sm:$0xff]  }
   0xb   :  { %147 = vmatpush1.bf16.msra.mxu0 %v826_v6  ;;  %395 = vmatprep.subr.bf16.mxu1 %v848_v15  ;;  %v862_v31 = vld [vmem:[%s1190_s4 + $0x60] ss:$8 sps:$4 sm:$0xff]   ;;  %v863_v32 = vld [vmem:[%s1190_s4 + $0x74] ss:$8 sps:$4 sm:$0xff]   ;;  %v865_v33 = vld [vmem:[%s1190_s4 + $0x70] ss:$8 sps:$4 sm:$0xff]   ;;  %v52_v6 = vlaneseq }
   0xc   :  { %148 = vmatprep.subr.bf16.mxu0 %v827_v7  ;;  %v866_v34 = vld [vmem:[%s1190_s4 + $0x84] ss:$8 sps:$4 sm:$0xff]   ;;  %v868_v35 = vld [vmem:[%s1190_s4 + $0x80] ss:$8 sps:$4 sm:$0xff]   ;;  %v869_v36 = vld [vmem:[%s1190_s4 + $0x94] ss:$8 sps:$4 sm:$0xff]  }
   0xd   :  { %v871_v37 = vld [vmem:[%s1190_s4 + $0x90] ss:$8 sps:$4 sm:$0xff]   ;;  %v872_v38 = vld [vmem:[%s1190_s4 + $0xa4] ss:$8 sps:$4 sm:$0xff]   ;;  %v874_v39 = vld [vmem:[%s1190_s4 + $0xa0] ss:$8 sps:$4 sm:$0xff]  }
   0xe   :  { %396 = vmatpush1.bf16.msra.mxu1 %v850_v18  ;;  %v875_v40 = vld [vmem:[%s1190_s4 + $0xb4] ss:$8 sps:$4 sm:$0xff]   ;;  %v877_v41 = vld [vmem:[%s1190_s4 + $0xb0] ss:$8 sps:$4 sm:$0xff]   ;;  %v878_v42 = vld [vmem:[%s1190_s4 + $0xc4] ss:$8 sps:$4 sm:$0xff]  }
   0xf   :  { %149 = vmatpush1.bf16.msra.mxu0 %v829_v8  ;;  %397 = vmatprep.subr.bf16.mxu1 %v851_v19  ;;  %v880_v43 = vld [vmem:[%s1190_s4 + $0xc0] ss:$8 sps:$4 sm:$0xff]   ;;  %v881_v44 = vld [vmem:[%s1190_s4 + $0xd4] ss:$8 sps:$4 sm:$0xff]   ;;  %v883_v45 = vld [vmem:[%s1190_s4 + $0xd0] ss:$8 sps:$4 sm:$0xff]  }
  0x10   :  { %150 = vmatprep.subr.bf16.mxu0 %v830_v9  ;;  %v884_v46 = vld [vmem:[%s1190_s4 + $0xe4] ss:$8 sps:$4 sm:$0xff]   ;;  %v886_v47 = vld [vmem:[%s1190_s4 + $0xe0] ss:$8 sps:$4 sm:$0xff]   ;;  %v887_v48 = vld [vmem:[%s1190_s4 + $0xf4] ss:$8 sps:$4 sm:$0xff]  }
  0x11   :  { %v889_v49 = vld [vmem:[%s1190_s4 + $0xf0] ss:$8 sps:$4 sm:$0xff]   ;;  %v890_v51 = vld [vmem:[%s1192_s7] sm:$0xff]   ;;  %v891_v52 = vld [vmem:[%s1192_s7 + $0x8] sm:$0xff]   ;;  %vm505_vm2 = vcmask 556032   ;;  %v53_v7 = vshrl.u32 %v52_v6, 7 }
  0x12   :  { %398 = vmatpush1.bf16.msra.mxu1 %v853_v22  ;;  %v892_v53 = vld [vmem:[%s1192_s7 + $0x10] sm:$0xff]   ;;  %v894_v54 = vld [vmem:[%s1192_s7 + $0x20] ss:$0 sps:$4 sm:$0x33]   ;;  %v893_v55 = vld [vmem:[%s1192_s7 + $0x18] sm:$0xff]  }
  0x13   :  { %151 = vmatpush1.bf16.msra.mxu0 %v832_v13  ;;  %399 = vmatprep.subr.bf16.mxu1 %v854_v23  ;;  %v511_v56 = vsel %vm509_vm1, %v894_v54, 0  ;;  %v895_v57 = vld [vmem:[%s1193_s6 + $0x40] sm:$0xff]   ;;  %v897_v60 = vld [vmem:[%s1193_s6 + $0x48] sm:$0xff]   ;;  %v899_v62 = vld [vmem:[%s1193_s6 + $0x50] sm:$0xff]   ;;  %v54_v8 = vsub.s32 0, %v53_v7  ;;  %v58_v10 = vsub.s32 1, %v53_v7 }
  0x14   :  { %152 = vmatprep.subr.bf16.mxu0 %v833_v16  ;;  %v468_v58 = vld [vmem:[%s1194_s1] sm:$0xf]  ;;  %v898_v61 = vld [vmem:[%s1193_s6 + $0x8] sm:$0xff]   ;;  %v900_v63 = vld [vmem:[%s1193_s6 + $0x10] sm:$0xff]  }
  0x15   :  { %v896_v59 = vld [vmem:[%s1193_s6] sm:$0xff]   ;;  %v901_v0 = vld [vmem:[%s1193_s6 + $0x58] sm:$0xff]   ;;  %v905_v4 = vld [vmem:[%s1193_s6 + $0x68] sm:$0xff]  }
  0x16   :  { %400 = vmatpush1.bf16.msra.mxu1 %v856_v26  ;;  %v902_v1 = vld [vmem:[%s1193_s6 + $0x18] sm:$0xff]   ;;  %v903_v2 = vld [vmem:[%s1193_s6 + $0x60] sm:$0xff]   ;;  %v906_v5 = vld [vmem:[%s1193_s6 + $0x28] sm:$0xff]  }
  0x17   :  { %153 = vmatpush1.bf16.msra.mxu0 %v835_v17  ;;  %401 = vmatprep.subr.bf16.mxu1 %v857_v27  ;;  %v904_v3 = vld [vmem:[%s1193_s6 + $0x20] sm:$0xff]   ;;  %v907_v23 = vld [vmem:[%s1193_s6 + $0x70] sm:$0xff]   ;;  %v910_v26 = vld [vmem:[%s1193_s6 + $0x38] sm:$0xff]  }
  0x18   :  { %154 = vmatprep.subr.bf16.mxu0 %v836_v20  ;;  %v50_v9 = vld [vmem:[%s1195_s3] sm:$0x3] }
  0x19   :  { %v55_v11 = vrot.slane %v50_v9, %v54_v8  ;;  %v59_v12 = vrot.slane %v50_v9, %v58_v10 }
  0x1a   :  { %402 = vmatpush1.bf16.msra.mxu1 %v859_v28 }
  0x1b   :  { %155 = vmatpush1.bf16.msra.mxu0 %v838_v21  ;;  %403 = vmatprep.subr.bf16.mxu1 %v860_v30 }
  0x1c   :  { %156 = vmatprep.subr.bf16.mxu0 %v839_v24  ;;  %v908_v24 = vld [vmem:[%s1193_s6 + $0x30] sm:$0xff]  }
  0x1e   :  { %404 = vmatpush1.bf16.msra.mxu1 %v862_v31  ;;  %v219_v31 = vld [vmem:[%s1196_s5] sm:$0x3] }
  0x1f   :  { %157 = vmatpush1.bf16.msra.mxu0 %v841_v25  ;;  %405 = vmatprep.subr.bf16.mxu1 %v863_v32  ;;  %v909_v25 = vld [vmem:[%s1193_s6 + $0x78] sm:$0xff]   ;;  %v224_v32 = vrot.slane %v219_v31, %v54_v8 }
  0x20   :  { %801 = vmatprep.subr.bf16.mxu0 %v912_v50 }
  0x22   :  { %175 = vmatmul.mubr.bf16.vlgmr.msra.gmra.mrb[0].mxu0 %v33_v29  ;;  %406 = vmatpush1.bf16.msra.mxu1 %v865_v33  ;;  %v228_v33 = vrot.slane %v219_v31, %v58_v10 }
  0x23   :  { %407 = vmatprep.subr.bf16.mxu1 %v866_v34  ;;  %811 = vmatprep.mubr.msk.bf16.mxu0 %vm913_vm0, %v912_v50 }
  0x24   :  { %802 = vmatpush3.bf16.msra.mxu0 %v890_v51 }
  0x25   :  { %803 = vmatprep.subr.bf16.mxu0 %v912_v50 }
  0x26   :  { %408 = vmatpush1.bf16.msra.mxu1 %v868_v35 }
  0x27   :  { %409 = vmatprep.subr.bf16.mxu1 %v869_v36 }
  0x28   :  { %804 = vmatpush3.bf16.msra.mxu0 %v891_v52 }
  0x29   :  { %805 = vmatprep.subr.bf16.mxu0 %v912_v50 }
  0x2a   :  { %410 = vmatpush1.bf16.msra.mxu1 %v871_v37 }
  0x2b   :  { %411 = vmatprep.subr.bf16.mxu1 %v872_v38 }
  0x2c   :  { %806 = vmatpush3.bf16.msra.mxu0 %v892_v53 }
  0x2d   :  { %807 = vmatprep.subr.bf16.mxu0 %v912_v50 }
  0x2e   :  { %412 = vmatpush1.bf16.msra.mxu1 %v874_v39 }
  0x2f   :  { %413 = vmatprep.subr.bf16.mxu1 %v875_v40 }
  0x30   :  { %808 = vmatpush3.bf16.msra.mxu0 %v893_v55 }
  0x31   :  { %809 = vmatprep.subr.bf16.mxu0 %v912_v50 }
  0x32   :  { %414 = vmatpush1.bf16.msra.mxu1 %v877_v41 }
  0x33   :  { %415 = vmatprep.subr.bf16.mxu1 %v878_v42 }
  0x34   :  { %810 = vmatpush3.bf16.msra.mxu0 %v511_v56 }
  0x35   :  { %779 = vmatprep.subr.bf16.mxu0 %v895_v57 }
  0x36   :  { %416 = vmatpush1.bf16.msra.mxu1 %v880_v43 }
  0x37   :  { %417 = vmatprep.subr.bf16.mxu1 %v881_v44  ;;  %812 = vmatmul.mubr.msk.bf16.vlgmr.msra.gmra.mrb[4].mxu0 %vm505_vm2, %v468_v58 }
  0x38   :  { %780 = vmatpush3.bf16.msra.mxu0 %v896_v59 }
  0x39   :  { %781 = vmatprep.subr.bf16.mxu0 %v897_v60 }
  0x3a   :  { %418 = vmatpush1.bf16.msra.mxu1 %v883_v45 }
  0x3b   :  { %419 = vmatprep.subr.bf16.mxu1 %v884_v46 }
  0x3c   :  { %782 = vmatpush3.bf16.msra.mxu0 %v898_v61 }
  0x3d   :  { %783 = vmatprep.subr.bf16.mxu0 %v899_v62 }
  0x3e   :  { %420 = vmatpush1.bf16.msra.mxu1 %v886_v47 }
  0x3f   :  { %421 = vmatprep.subr.bf16.mxu1 %v887_v48  ;;  %v772_v48 = vld [vmem:[%s1197_s8] ss:$0 sm:$0xff] }
  0x40   :  { %784 = vmatpush3.bf16.msra.mxu0 %v900_v63 }
  0x41   :  { %785 = vmatprep.subr.bf16.mxu0 %v901_v0 }
  0x42   :  { %422 = vmatpush1.bf16.msra.mxu1 %v889_v49 }
  0x44   :  { %786 = vmatpush3.bf16.msra.mxu0 %v902_v1 }
  0x45   :  { %787 = vmatprep.subr.bf16.mxu0 %v903_v2 }
  0x48   :  { %788 = vmatpush3.bf16.msra.mxu0 %v904_v3 }
  0x49   :  { %789 = vmatprep.subr.bf16.mxu0 %v905_v4 }
  0x4c   :  { %790 = vmatpush3.bf16.msra.mxu0 %v906_v5 }
  0x4d   :  { %791 = vmatprep.subr.bf16.mxu0 %v907_v23 }
  0x50   :  { %792 = vmatpush3.bf16.msra.mxu0 %v908_v24 }
  0x51   :  { %793 = vmatprep.subr.bf16.mxu0 %v909_v25 }
  0x54   :  { %794 = vmatpush3.bf16.msra.mxu0 %v910_v26 }
  0xf5   :  { %v176_v13 = vpop.f32.mrb[0].mxu0 }
  0xf6   :  { %v177_v14 = vadd.f32 %v176_v13, %v55_v11  ;;  %v178_v15 = vpop.f32.mrb[1].mxu0 }
  0xf7   :  { %v179_v16 = vadd.f32 %v178_v15, %v59_v12  ;;  %v180_v17 = vpop.f32.mrb[2].mxu0 }
  0xf8   :  { %v183_v18 = vmax.f32 %v177_v14, 0.0  ;;  %v181_v19 = vpop.f32.mrb[3].mxu0 }
  0xf9   :  { %v184_v20 = vmax.f32 %v179_v16, 0.0 }
  0xfa   :  { %v185_v22 = vpack.c.bf16 %v183_v18, %v183_v18 }
  0xfb   :  { %v186_v21 = vpack.c.bf16 %v184_v20, %v184_v20 }
  0xfd   :  { %423 = vmatprep.mubr.bf16.mxu1 %v186_v21 }
  0xfe   :  { %424 = vmatmul.mubr.bf16.vlgmr.msra.gmra.mrb[0].mxu1 %v185_v22 }
 0x10a   :  { %v547_v27 = vpop.f32.mrb[4].mxu0 }
 0x10b   :  { %v813_v28 = vpop.f32.mrb[5].mxu0 }
 0x10c   :  { %v550_v29 = vpop.f32.mrb[6].mxu0 }
 0x10d   :  { %v814_v30 = vpop.f32.mrb[7].mxu0 }
 0x1d1   :  { %v425_v34 = vpop.f32.mrb[0].mxu1 }
 0x1d2   :  { %v426_v35 = vadd.f32 %v425_v34, %v224_v32  ;;  %v427_v36 = vpop.f32.mrb[1].mxu1 }
 0x1d3   :  { %v428_v37 = vadd.f32 %v427_v36, %v228_v33  ;;  %v429_v38 = vpop.f32.mrb[2].mxu1 }
 0x1d4   :  { %v432_v39 = vmax.f32 %v426_v35, 0.0  ;;  %v430_v40 = vpop.f32.mrb[3].mxu1 }
 0x1d5   :  { %v433_v41 = vmax.f32 %v428_v37, 0.0 }
 0x1d6   :  { %v434_v43 = vpack.c.bf16 %v432_v39, %v432_v39 }
 0x1d7   :  { %v435_v42 = vpack.c.bf16 %v433_v41, %v433_v41 }
 0x1d9   :  { %681 = vmatprep.mubr.bf16.mxu0 %v435_v42 }
 0x1da   :  { %682 = vmatmul.mubr.bf16.vlgmr.msra.gmra.mrb[8].mxu0 %v434_v43 }
 0x2ad   :  { %v795_v44 = vpop.f32.mrb[8].mxu0 }
 0x2ae   :  { %v796_v45 = vpop.f32.mrb[9].mxu0 }
 0x2af   :  { %v797_v46 = vadd.f32 %v796_v45, %v795_v44  ;;  %v798_v47 = vpop.f32.mrb[10].mxu0 }
 0x2b0   :  { %v799_v49 = vpop.f32.mrb[11].mxu0 }
 0x2b1   :  { %v684_v50 = vadd.f32 %v797_v46, %v547_v27 }
 0x2b3   :  { %v696_v51 = vadd.f32 %v772_v48, %v684_v50 }
 0x2b5   :  { %697 = vst [vmem:[%s1198_s9] sm:$0xff] %v696_v51 }

</bundles_post_ra>
